<compile_context>
chip_gen: v5e
topology: v5e:2x2
jax: 0.10.0
libtpu: 0.0.40
codegen_flags: <defaults>
</compile_context>

<pallas_src>
import functools

import jax
import jax.numpy as jnp
import numpy as np
from jax import lax
from jax.experimental import pallas as pl
from jax.experimental.pallas import tpu as pltpu

LANE = 128  # channel axes are padded to a multiple of this


def _round_up(n, m):
    return ((n + m - 1) // m) * m


def _vmem_capacity_bytes():
    """Best-effort physical VMEM query; falls back to the smallest (v7x)."""
    try:
        info = pltpu.get_tpu_info()
        cap = getattr(info, "vmem_capacity_bytes", None)
        if cap:
            return int(cap)
    except Exception:
        pass
    return 64 * 1024 * 1024


# ---------------------------------------------------------------------------
# Fused kernel: [prev-block BN affine + tanh]  ->  Conv1d(k=5, pad=2, no bias)
#               ->  per-tile BatchNorm partial statistics (+ halo record).
# ---------------------------------------------------------------------------
def _conv_stats_kernel(xc_ref, hl_ref, hr_ref, scale_ref, shift_ref, w_ref,
                       conv_ref, halo_ref, sum_ref, sumsq_ref,
                       xwin_ref, *,
                       tile_t, t_real, n_tiles, mask_rows, fuse_prev_bn):
    i = pl.program_id(0)
    B = xc_ref.shape[0]
    cin = xc_ref.shape[2]

    def activate(v):
        # BN affine + tanh of the *previous* block, fused into this block.
        if fuse_prev_bn:
            return jnp.tanh(v.astype(jnp.float32) * scale_ref[...][None]
                            + shift_ref[...][None])
        return v  # block 0: raw (already bf16, padded rows/channels are 0)

    # ---- assemble the activated (tile_t + 4)-row window in bf16 ------------
    cen = activate(xc_ref[...])                                  # centre tile
    xwin_ref[:, 2:2 + tile_t, :] = cen.astype(jnp.bfloat16)
    if mask_rows and fuse_prev_bn:
        # only the tail tile can contain rows >= t_real; after the affine they
        # would be tanh(shift) != 0, so re-zero them (pl.when => tail only).
        @pl.when(i == n_tiles - 1)
        def _():
            rows = i * tile_t + lax.broadcasted_iota(jnp.int32, (1, tile_t, 1), 1)
            xwin_ref[:, 2:2 + tile_t, :] = jnp.where(
                rows < t_real, cen, 0.0).astype(jnp.bfloat16)

    lh = activate(hl_ref[:, 2:4, :])      # last 2 rows of tile i-1 (left halo)
    rh = activate(hr_ref[:, 0:2, :])      # first 2 rows of tile i+1 (right halo)
    if mask_rows and fuse_prev_bn:
        # the right halo of the second-to-last tile may also straddle t_real;
        # 2 rows only -> masking is negligible, apply unconditionally.
        rrows = (i + 1) * tile_t + lax.broadcasted_iota(jnp.int32, (1, 2, 1), 1)
        rh = jnp.where(rrows < t_real, rh, 0.0)
    xwin_ref[:, 0:2, :] = lh.astype(jnp.bfloat16)
    xwin_ref[:, tile_t + 2:tile_t + 4, :] = rh.astype(jnp.bfloat16)

    @pl.when(i == 0)                       # Conv1d zero padding, left edge
    def _():
        xwin_ref[:, 0:2, :] = jnp.zeros((B, 2, cin), jnp.bfloat16)

    @pl.when(i == n_tiles - 1)             # Conv1d zero padding, right edge
    def _():
        xwin_ref[:, tile_t + 2:tile_t + 4, :] = jnp.zeros((B, 2, cin), jnp.bfloat16)

    # ---- Conv1d as 5 MXU matmuls over the aligned full window --------------
    # out[t] = sum_k window[t + k] @ w[k]  =>  matmul the full window once per
    # tap and shift the f32 results; the bf16 window is loaded aligned, once.
    xw = xwin_ref[...]                                           # (B, tile_t+4, cin) bf16
    dn = (((2,), (0,)), ((), ()))
    acc = lax.dot_general(xw, w_ref[0], dn,
                          preferred_element_type=jnp.float32)[:, 0:tile_t, :]
    for k in range(1, 5):
        p = lax.dot_general(xw, w_ref[k], dn, preferred_element_type=jnp.float32)
        acc = acc + p[:, k:k + tile_t, :]

    def _emit(a):
        conv_ref[...] = a.astype(jnp.bfloat16)                   # bf16 inter-block storage
        halo_ref[:, 0:2, :] = a[:, 0:2, :].astype(jnp.bfloat16)  # halo record for next block
        halo_ref[:, 2:4, :] = a[:, tile_t - 2:tile_t, :].astype(jnp.bfloat16)
        sum_ref[...] = jnp.sum(a, axis=(0, 1), keepdims=True)    # BN partials (f32)
        sumsq_ref[...] = jnp.sum(a * a, axis=(0, 1), keepdims=True)

    if mask_rows:
        # rows past the true sequence length must not pollute the statistics;
        # only the tail tile pays for the iota+select.
        @pl.when(i < n_tiles - 1)
        def _():
            _emit(acc)

        @pl.when(i == n_tiles - 1)
        def _():
            rows = i * tile_t + lax.broadcasted_iota(jnp.int32, (1, tile_t, 1), 1)
            _emit(jnp.where(rows < t_real, acc, 0.0))
    else:
        _emit(acc)


# ---------------------------------------------------------------------------
# Final pass (last block only): BN affine (no tanh) + residual add + un-pad.
# ---------------------------------------------------------------------------
def _final_bn_residual_kernel(conv_ref, scale_ref, shift_ref, res_ref, out_ref,
                              *, c_out):
    y = (conv_ref[...].astype(jnp.float32) * scale_ref[...][None]
         + shift_ref[...][None])
    out_ref[...] = res_ref[...] + y[:, :, 0:c_out]


# ---------------------------------------------------------------------------
# pallas_call wrappers
# ---------------------------------------------------------------------------
def _conv_block_call(x, halo, scale, shift, w, *, tile_t, t_real, n_tiles,
                     mask_rows, fuse_prev_bn, vmem_limit):
    B, t_pad, cin = x.shape
    K, cin_w, cout = w.shape
    assert K == 5 and cin_w == cin and t_pad == n_tiles * tile_t

    kern = functools.partial(_conv_stats_kernel, tile_t=tile_t, t_real=t_real,
                             n_tiles=n_tiles, mask_rows=mask_rows,
                             fuse_prev_bn=fuse_prev_bn)
    return pl.pallas_call(
        kern,
        out_shape=(jax.ShapeDtypeStruct((B, t_pad, cout), jnp.bfloat16),
                   jax.ShapeDtypeStruct((n_tiles, B, 4, cout), jnp.bfloat16),
                   jax.ShapeDtypeStruct((n_tiles, 1, cout), jnp.float32),
                   jax.ShapeDtypeStruct((n_tiles, 1, cout), jnp.float32)),
        grid_spec=pltpu.PrefetchScalarGridSpec(
            num_scalar_prefetch=0,
            grid=(n_tiles,),
            in_specs=[
                # centre tile of the previous block's raw conv output (bf16)
                pl.BlockSpec((B, tile_t, cin), lambda i: (0, i, 0)),
                # halo records of neighbouring tiles (clamped at the edges;
                # edge rows are zero-filled in-kernel anyway)
                pl.BlockSpec((None, B, 4, cin),
                             lambda i: (jnp.maximum(i - 1, 0), 0, 0, 0)),
                pl.BlockSpec((None, B, 4, cin),
                             lambda i: (jnp.minimum(i + 1, n_tiles - 1), 0, 0, 0)),
                # previous block's folded BN scale / shift (ignored for block 0)
                pl.BlockSpec((1, cin), lambda i: (0, 0)),
                pl.BlockSpec((1, cin), lambda i: (0, 0)),
                # bf16 conv weights (constant across the grid)
                pl.BlockSpec((K, cin, cout), lambda i: (0, 0, 0)),
            ],
            out_specs=[
                pl.BlockSpec((B, tile_t, cout), lambda i: (0, i, 0)),
                pl.BlockSpec((None, B, 4, cout), lambda i: (i, 0, 0, 0)),
                pl.BlockSpec((1, 1, cout), lambda i: (i, 0, 0)),
                pl.BlockSpec((1, 1, cout), lambda i: (i, 0, 0)),
            ],
            scratch_shapes=[pltpu.VMEM((B, tile_t + 4, cin), jnp.bfloat16)]),
        compiler_params=pltpu.CompilerParams(
            dimension_semantics=("parallel",),
            vmem_limit_bytes=vmem_limit),
    )(x, halo, halo, scale, shift, w)


def _final_call(conv, scale, shift, batch, *, tile_t, n_tiles, vmem_limit):
    B, T, C = batch.shape
    c_pad = conv.shape[2]
    kern = functools.partial(_final_bn_residual_kernel, c_out=C)
    return pl.pallas_call(
        kern,
        out_shape=jax.ShapeDtypeStruct((B, T, C), batch.dtype),
        grid_spec=pltpu.PrefetchScalarGridSpec(
            num_scalar_prefetch=0,
            grid=(n_tiles,),
            in_specs=[
                pl.BlockSpec((B, tile_t, c_pad), lambda i: (0, i, 0)),
                pl.BlockSpec((1, c_pad), lambda i: (0, 0)),
                pl.BlockSpec((1, c_pad), lambda i: (0, 0)),
                # residual: partial boundary blocks are handled by Pallas
                pl.BlockSpec((B, tile_t, C), lambda i: (0, i, 0)),
            ],
            out_specs=pl.BlockSpec((B, tile_t, C), lambda i: (0, i, 0))),
        compiler_params=pltpu.CompilerParams(
            dimension_semantics=("parallel",),
            vmem_limit_bytes=vmem_limit),
    )(conv, scale, shift, batch)


# ---------------------------------------------------------------------------
# Parameters (PyTorch layout) + glue to kernel layout
# ---------------------------------------------------------------------------
def init_postnet_params(key, d_postnet, output_mel_channels, num_blocks=6):
    """PyTorch-layout params: Conv1d weight (Cout, Cin, 5), bias, BN gamma/beta."""
    dims = ([(output_mel_channels, d_postnet)]
            + [(d_postnet, d_postnet)] * (num_blocks - 2)
            + [(d_postnet, output_mel_channels)])
    params = []
    for cin, cout in dims:
        key, kw, kb = jax.random.split(key, 3)
        params.append(dict(
            weight=0.1 * jax.random.normal(kw, (cout, cin, 5), jnp.float32),
            bias=0.1 * jax.random.normal(kb, (cout,), jnp.float32),
            gamma=jnp.ones((cout,), jnp.float32),
            beta=jnp.zeros((cout,), jnp.float32)))
    return params


def prepare_kernel_params(params):
    """Transpose conv weights to (K, Cin, Cout), lane-pad channels to a
    multiple of 128, cast weights to bf16 (MXU inputs).  The conv bias is
    DROPPED: a per-channel constant is cancelled exactly by training-mode
    BatchNorm's mean subtraction."""
    kparams = []
    for p in params:
        cout, cin, _ = p["weight"].shape
        cin_p, cout_p = _round_up(cin, LANE), _round_up(cout, LANE)
        w = jnp.transpose(p["weight"], (2, 1, 0))                  # (5, Cin, Cout)
        w = jnp.pad(w, ((0, 0), (0, cin_p - cin), (0, cout_p - cout)))
        gamma = jnp.pad(p["gamma"], (0, cout_p - cout), constant_values=1.0)
        beta = jnp.pad(p["beta"], (0, cout_p - cout))
        kparams.append(dict(w=w.astype(jnp.bfloat16), gamma=gamma, beta=beta))
    return kparams


def _choose_tile_t(batch_size, seq_len, c_max, vmem_budget):
    # working set per grid step ~ 2x double-buffered bf16 weights + ~10 bf16
    # (B, tile, C) row-slabs (in/out double buffers + window scratch).
    weight_bytes = 2 * 5 * c_max * c_max * 2
    avail = max(vmem_budget - weight_bytes - (8 << 20), 4 << 20)
    per_row = 10 * batch_size * c_max * 2
    tile = avail // max(1, per_row)
    tile = max(8, min(1024, (tile // 8) * 8))
    tile = min(tile, _round_up(seq_len, 8))
    # keep at least two time-tiles so both v7x TensorCores get work
    if pl.cdiv(seq_len, tile) < 2 and seq_len > 8:
        tile = max(8, _round_up(pl.cdiv(seq_len, 2), 8))
    return int(tile)


# ---------------------------------------------------------------------------
# Forward pass
# ---------------------------------------------------------------------------
def postnet_forward(batch, kparams, *, tile_t=None, eps=1e-5):
    B, T, C = batch.shape
    cin0 = kparams[0]["w"].shape[1]
    c_max = max(max(p["w"].shape[1], p["w"].shape[2]) for p in kparams)

    vmem_cap = _vmem_capacity_bytes()                      # generation-aware budget
    vmem_limit = int(max(32 << 20, min(vmem_cap * 3 // 4, 100 << 20)))
    if tile_t is None:
        tile_t = _choose_tile_t(B, T, c_max, vmem_limit)
    tile_t = max(8, (int(tile_t) // 8) * 8)
    t_pad = _round_up(T, tile_t)
    n_tiles = t_pad // tile_t
    mask_rows = (t_pad != T)

    # One-time layout glue: zero-pad time & channels, cast to bf16 (MXU input).
    x = jnp.pad(batch, ((0, 0), (0, t_pad - T), (0, cin0 - C))).astype(jnp.bfloat16)
    # Per-tile halo records (first-2 / last-2 rows of every tile) for block 0;
    # subsequent blocks get their halo records emitted by the previous kernel.
    xr = x.reshape(B, n_tiles, tile_t, cin0)
    halo = jnp.transpose(
        jnp.concatenate([xr[:, :, 0:2, :], xr[:, :, tile_t - 2:tile_t, :]], axis=2),
        (1, 0, 2, 3))                                      # (n_tiles, B, 4, cin0)

    scale = jnp.ones((1, cin0), jnp.float32)               # unused for block 0
    shift = jnp.zeros((1, cin0), jnp.float32)
    n_rows = float(B * T)

    for idx, p in enumerate(kparams):
        x, halo, psum, psumsq = _conv_block_call(
            x, halo, scale, shift, p["w"], tile_t=tile_t, t_real=T,
            n_tiles=n_tiles, mask_rows=mask_rows, fuse_prev_bn=(idx > 0),
            vmem_limit=vmem_limit)
        # Fold training-mode BatchNorm into one per-channel scale/shift
        # (tiny (C,) vectors; applied fused in the *next* kernel).
        mean = jnp.sum(psum[:, 0, :], axis=0) / n_rows
        var = jnp.maximum(jnp.sum(psumsq[:, 0, :], axis=0) / n_rows - mean * mean, 0.0)
        s = p["gamma"] * lax.rsqrt(var + eps)
        scale = s.reshape(1, -1)
        shift = (p["beta"] - mean * s).reshape(1, -1)

    # Last block: BN affine (no tanh) + residual add + un-padding, in one pass.
    return _final_call(x, scale, shift, batch, tile_t=tile_t, n_tiles=n_tiles,
                       vmem_limit=vmem_limit)


# ---------------------------------------------------------------------------
# Pure-JAX reference (PyTorch-shaped numerics: f32 intermediates, bf16 MXU
# inputs; keeps the conv bias to demonstrate that dropping it is exact).
# ---------------------------------------------------------------------------
def postnet_reference(batch, params, eps=1e-5):
    x = batch
    n = len(params)
    dn = (((2,), (0,)), ((), ()))
    for idx, p in enumerate(params):
        w = jnp.transpose(p["weight"], (2, 1, 0)).astype(jnp.bfloat16)  # (5, Cin, Cout)
        T = x.shape[1]
        xp = jnp.pad(x, ((0, 0), (2, 2), (0, 0)))
        acc = jnp.zeros((x.shape[0], T, w.shape[-1]), jnp.float32)
        for k in range(5):
            acc = acc + lax.dot_general(xp[:, k:k + T, :].astype(jnp.bfloat16),
                                        w[k], dn, preferred_element_type=jnp.float32)
        acc = acc + p["bias"][None, None, :]
        mean = jnp.mean(acc, axis=(0, 1), keepdims=True)
        var = jnp.mean((acc - mean) ** 2, axis=(0, 1), keepdims=True)
        y = (acc - mean) * lax.rsqrt(var + eps)
        y = y * p["gamma"][None, None, :] + p["beta"][None, None, :]
        if idx < n - 1:
            y = jnp.tanh(y)
        x = y
    return batch + x


if __name__ == "__main__":
    B, T = 2, 40                   # T not a tile multiple (exercises tail masking)
    output_mel_channels = 8
    d_postnet = 16

    key = jax.random.PRNGKey(0)
    key, kx = jax.random.split(key)
    batch = jax.random.normal(kx, (B, T, output_mel_channels), jnp.float32)

    params = init_postnet_params(key, d_postnet, output_mel_channels, num_blocks=6)
    kparams = prepare_kernel_params(params)

    # tile_t=16 -> 3 time-tiles: exercises the BlockSpec-delivered halo records
    # (including clamped edge indices), edge zero-fill, tail-only masking,
    # per-tile BN partials, fused cross-block BN+tanh and the fused residual.
    fwd = jax.jit(functools.partial(postnet_forward, kparams=kparams, tile_t=16))
    out = jax.block_until_ready(fwd(batch))

    ref = jax.block_until_ready(postnet_reference(batch, params))
    # Kernel stores inter-block activations in bf16 (reference keeps f32
    # intermediates); tolerance covers bf16 storage/rounding and accumulation
    # order over the 6 blocks.
    np.testing.assert_allclose(np.asarray(out), np.asarray(ref),
                               rtol=2e-2, atol=2e-2)

    print("KERNEL_OK")
</pallas_src>

<mosaic_0001>
module attributes {stable_mosaic.version = 11 : i64} {
  func.func @_conv_stats_kernel(%arg0: i32, %arg1: memref<2x16x128xbf16, #tpu.memory_space<vmem>>, %arg2: memref<1x2x4x128xbf16, #tpu.memory_space<vmem>>, %arg3: memref<1x2x4x128xbf16, #tpu.memory_space<vmem>>, %arg4: memref<1x128xf32, #tpu.memory_space<vmem>>, %arg5: memref<1x128xf32, #tpu.memory_space<vmem>>, %arg6: memref<5x128x128xbf16, #tpu.memory_space<vmem>>, %arg7: memref<2x16x128xbf16, #tpu.memory_space<vmem>>, %arg8: memref<1x2x4x128xbf16, #tpu.memory_space<vmem>>, %arg9: memref<1x1x128xf32, #tpu.memory_space<vmem>>, %arg10: memref<1x1x128xf32, #tpu.memory_space<vmem>>, %arg11: memref<2x20x128xbf16, #tpu.memory_space<vmem>>) attributes {dimension_semantics = [#tpu.dimension_semantics<parallel>], iteration_bounds = array<i64: 3>, scalar_prefetch = 0 : i64, scratch_operands = 1 : i64, tpu.core_type = #tpu.core_type<tc>, window_params = [{transform_indices = @transform_0, window_bounds = array<i64: 2, 16, 128>}, {transform_indices = @transform_1, window_bounds = array<i64: 1, 2, 4, 128>}, {transform_indices = @transform_2, window_bounds = array<i64: 1, 2, 4, 128>}, {pipeline_mode = #tpu.pipeline_mode<synchronous>, transform_indices = @transform_3, window_bounds = array<i64: 1, 128>}, {pipeline_mode = #tpu.pipeline_mode<synchronous>, transform_indices = @transform_4, window_bounds = array<i64: 1, 128>}, {pipeline_mode = #tpu.pipeline_mode<synchronous>, transform_indices = @transform_5, window_bounds = array<i64: 5, 128, 128>}, {transform_indices = @transform_6, window_bounds = array<i64: 2, 16, 128>}, {transform_indices = @transform_7, window_bounds = array<i64: 1, 2, 4, 128>}, {transform_indices = @transform_8, window_bounds = array<i64: 1, 1, 128>}, {transform_indices = @transform_9, window_bounds = array<i64: 1, 1, 128>}]} {
    %c0 = arith.constant 0 : index
    %c0_0 = arith.constant 0 : index
    %c0_1 = arith.constant 0 : index
    %0 = vector.load %arg1[%c0, %c0_0, %c0_1] : memref<2x16x128xbf16, #tpu.memory_space<vmem>>, vector<2x16x128xbf16>
    %1 = arith.extf %0 : vector<2x16x128xbf16> to vector<2x16x128xf32>
    %c0_2 = arith.constant 0 : index
    %c0_3 = arith.constant 0 : index
    %2 = vector.load %arg4[%c0_2, %c0_3] : memref<1x128xf32, #tpu.memory_space<vmem>>, vector<1x128xf32>
    %3 = vector.shape_cast %2 : vector<1x128xf32> to vector<1x1x128xf32>
    %4 = vector.broadcast %3 : vector<1x1x128xf32> to vector<2x16x128xf32>
    %5 = arith.mulf %1, %4 : vector<2x16x128xf32>
    %c0_4 = arith.constant 0 : index
    %c0_5 = arith.constant 0 : index
    %6 = vector.load %arg5[%c0_4, %c0_5] : memref<1x128xf32, #tpu.memory_space<vmem>>, vector<1x128xf32>
    %7 = vector.shape_cast %6 : vector<1x128xf32> to vector<1x1x128xf32>
    %8 = vector.broadcast %7 : vector<1x1x128xf32> to vector<2x16x128xf32>
    %9 = arith.addf %5, %8 : vector<2x16x128xf32>
    %10 = math.tanh %9 : vector<2x16x128xf32>
    %11 = arith.truncf %10 : vector<2x16x128xf32> to vector<2x16x128xbf16>
    %c0_6 = arith.constant 0 : index
    %c2 = arith.constant 2 : index
    %c0_7 = arith.constant 0 : index
    %12 = vector.load %arg11[%c0_6, %c2, %c0_7] : memref<2x20x128xbf16, #tpu.memory_space<vmem>>, vector<2x16x128xbf16>
    tpu.vector_store %arg11[%c0_6, %c2, %c0_7], %11 {strides = array<i32>} : memref<2x20x128xbf16, #tpu.memory_space<vmem>>, vector<2x16x128xbf16>,
    %c2_i32 = arith.constant 2 : i32
    %13 = arith.cmpi eq, %arg0, %c2_i32 : i32
    %14 = arith.extui %13 : i1 to i32
    %c0_i32 = arith.constant 0 : i32
    %15 = arith.cmpi ne, %14, %c0_i32 : i32
    scf.if %15 {
      %c16_i32_57 = arith.constant 16 : i32
      %92 = arith.muli %arg0, %c16_i32_57 : i32
      %93 = tpu.iota {dimensions = array<i32: 1>} : vector<1x16x1xi32>
      %94 = vector.broadcast %92 : i32 to vector<1x16x1xi32>
      %95 = arith.addi %94, %93 : vector<1x16x1xi32>
      %c40_i32_58 = arith.constant 40 : i32
      %96 = vector.broadcast %c40_i32_58 : i32 to vector<1x16x1xi32>
      %97 = arith.cmpi slt, %95, %96 : vector<1x16x1xi32>
      %cst_59 = arith.constant 0.000000e+00 : f32
      %98 = vector.shape_cast %97 : vector<1x16x1xi1> to vector<1x16x1xi1>
      %99 = vector.broadcast %98 : vector<1x16x1xi1> to vector<2x16x128xi1>
      %100 = vector.broadcast %cst_59 : f32 to vector<2x16x128xf32>
      %101 = arith.select %99, %10, %100 : vector<2x16x128xi1>, vector<2x16x128xf32>
      %102 = arith.truncf %101 : vector<2x16x128xf32> to vector<2x16x128xbf16>
      %c0_60 = arith.constant 0 : index
      %c2_61 = arith.constant 2 : index
      %c0_62 = arith.constant 0 : index
      %103 = vector.load %arg11[%c0_60, %c2_61, %c0_62] : memref<2x20x128xbf16, #tpu.memory_space<vmem>>, vector<2x16x128xbf16>
      tpu.vector_store %arg11[%c0_60, %c2_61, %c0_62], %102 {strides = array<i32>} : memref<2x20x128xbf16, #tpu.memory_space<vmem>>, vector<2x16x128xbf16>,
    } else {
    }
    %c0_8 = arith.constant 0 : index
    %c0_9 = arith.constant 0 : index
    %c2_10 = arith.constant 2 : index
    %c0_11 = arith.constant 0 : index
    %16 = vector.load %arg2[%c0_8, %c0_9, %c2_10, %c0_11] : memref<1x2x4x128xbf16, #tpu.memory_space<vmem>>, vector<1x2x2x128xbf16>
    %17 = vector.shape_cast %16 : vector<1x2x2x128xbf16> to vector<2x2x128xbf16>
    %18 = arith.extf %17 : vector<2x2x128xbf16> to vector<2x2x128xf32>
    %c0_12 = arith.constant 0 : index
    %c0_13 = arith.constant 0 : index
    %19 = vector.load %arg4[%c0_12, %c0_13] : memref<1x128xf32, #tpu.memory_space<vmem>>, vector<1x128xf32>
    %20 = vector.shape_cast %19 : vector<1x128xf32> to vector<1x1x128xf32>
    %21 = vector.broadcast %20 : vector<1x1x128xf32> to vector<2x2x128xf32>
    %22 = arith.mulf %18, %21 : vector<2x2x128xf32>
    %c0_14 = arith.constant 0 : index
    %c0_15 = arith.constant 0 : index
    %23 = vector.load %arg5[%c0_14, %c0_15] : memref<1x128xf32, #tpu.memory_space<vmem>>, vector<1x128xf32>
    %24 = vector.shape_cast %23 : vector<1x128xf32> to vector<1x1x128xf32>
    %25 = vector.broadcast %24 : vector<1x1x128xf32> to vector<2x2x128xf32>
    %26 = arith.addf %22, %25 : vector<2x2x128xf32>
    %27 = math.tanh %26 : vector<2x2x128xf32>
    %c0_16 = arith.constant 0 : index
    %c0_17 = arith.constant 0 : index
    %c0_18 = arith.constant 0 : index
    %c0_19 = arith.constant 0 : index
    %28 = vector.load %arg3[%c0_16, %c0_17, %c0_18, %c0_19] : memref<1x2x4x128xbf16, #tpu.memory_space<vmem>>, vector<1x2x2x128xbf16>
    %29 = vector.shape_cast %28 : vector<1x2x2x128xbf16> to vector<2x2x128xbf16>
    %30 = arith.extf %29 : vector<2x2x128xbf16> to vector<2x2x128xf32>
    %c0_20 = arith.constant 0 : index
    %c0_21 = arith.constant 0 : index
    %31 = vector.load %arg4[%c0_20, %c0_21] : memref<1x128xf32, #tpu.memory_space<vmem>>, vector<1x128xf32>
    %32 = vector.shape_cast %31 : vector<1x128xf32> to vector<1x1x128xf32>
    %33 = vector.broadcast %32 : vector<1x1x128xf32> to vector<2x2x128xf32>
    %34 = arith.mulf %30, %33 : vector<2x2x128xf32>
    %c0_22 = arith.constant 0 : index
    %c0_23 = arith.constant 0 : index
    %35 = vector.load %arg5[%c0_22, %c0_23] : memref<1x128xf32, #tpu.memory_space<vmem>>, vector<1x128xf32>
    %36 = vector.shape_cast %35 : vector<1x128xf32> to vector<1x1x128xf32>
    %37 = vector.broadcast %36 : vector<1x1x128xf32> to vector<2x2x128xf32>
    %38 = arith.addf %34, %37 : vector<2x2x128xf32>
    %39 = math.tanh %38 : vector<2x2x128xf32>
    %c1_i32 = arith.constant 1 : i32
    %40 = arith.addi %arg0, %c1_i32 : i32
    %c16_i32 = arith.constant 16 : i32
    %41 = arith.muli %40, %c16_i32 : i32
    %42 = tpu.iota {dimensions = array<i32: 1>} : vector<1x2x1xi32>
    %43 = vector.broadcast %41 : i32 to vector<1x2x1xi32>
    %44 = arith.addi %43, %42 : vector<1x2x1xi32>
    %c40_i32 = arith.constant 40 : i32
    %45 = vector.broadcast %c40_i32 : i32 to vector<1x2x1xi32>
    %46 = arith.cmpi slt, %44, %45 : vector<1x2x1xi32>
    %cst = arith.constant 0.000000e+00 : f32
    %47 = vector.shape_cast %46 : vector<1x2x1xi1> to vector<1x2x1xi1>
    %48 = vector.broadcast %47 : vector<1x2x1xi1> to vector<2x2x128xi1>
    %49 = vector.broadcast %cst : f32 to vector<2x2x128xf32>
    %50 = arith.select %48, %39, %49 : vector<2x2x128xi1>, vector<2x2x128xf32>
    %51 = arith.truncf %27 : vector<2x2x128xf32> to vector<2x2x128xbf16>
    %c0_24 = arith.constant 0 : index
    %c0_25 = arith.constant 0 : index
    %c0_26 = arith.constant 0 : index
    %52 = vector.load %arg11[%c0_24, %c0_25, %c0_26] : memref<2x20x128xbf16, #tpu.memory_space<vmem>>, vector<2x2x128xbf16>
    tpu.vector_store %arg11[%c0_24, %c0_25, %c0_26], %51 {strides = array<i32>} : memref<2x20x128xbf16, #tpu.memory_space<vmem>>, vector<2x2x128xbf16>,
    %53 = arith.truncf %50 : vector<2x2x128xf32> to vector<2x2x128xbf16>
    %c0_27 = arith.constant 0 : index
    %c18 = arith.constant 18 : index
    %c0_28 = arith.constant 0 : index
    %54 = vector.load %arg11[%c0_27, %c18, %c0_28] : memref<2x20x128xbf16, #tpu.memory_space<vmem>>, vector<2x2x128xbf16>
    tpu.vector_store %arg11[%c0_27, %c18, %c0_28], %53 {strides = array<i32>} : memref<2x20x128xbf16, #tpu.memory_space<vmem>>, vector<2x2x128xbf16>,
    %c0_i32_29 = arith.constant 0 : i32
    %55 = arith.cmpi eq, %arg0, %c0_i32_29 : i32
    %56 = arith.extui %55 : i1 to i32
    %c0_i32_30 = arith.constant 0 : i32
    %57 = arith.cmpi ne, %56, %c0_i32_30 : i32
    scf.if %57 {
      %cst_57 = arith.constant 0.000000e+00 : bf16
      %92 = vector.broadcast %cst_57 : bf16 to vector<2x2x128xbf16>
      %c0_58 = arith.constant 0 : index
      %c0_59 = arith.constant 0 : index
      %c0_60 = arith.constant 0 : index
      %93 = vector.load %arg11[%c0_58, %c0_59, %c0_60] : memref<2x20x128xbf16, #tpu.memory_space<vmem>>, vector<2x2x128xbf16>
      tpu.vector_store %arg11[%c0_58, %c0_59, %c0_60], %92 {strides = array<i32>} : memref<2x20x128xbf16, #tpu.memory_space<vmem>>, vector<2x2x128xbf16>,
    } else {
    }
    %c2_i32_31 = arith.constant 2 : i32
    %58 = arith.cmpi eq, %arg0, %c2_i32_31 : i32
    %59 = arith.extui %58 : i1 to i32
    %c0_i32_32 = arith.constant 0 : i32
    %60 = arith.cmpi ne, %59, %c0_i32_32 : i32
    scf.if %60 {
      %cst_57 = arith.constant 0.000000e+00 : bf16
      %92 = vector.broadcast %cst_57 : bf16 to vector<2x2x128xbf16>
      %c0_58 = arith.constant 0 : index
      %c18_59 = arith.constant 18 : index
      %c0_60 = arith.constant 0 : index
      %93 = vector.load %arg11[%c0_58, %c18_59, %c0_60] : memref<2x20x128xbf16, #tpu.memory_space<vmem>>, vector<2x2x128xbf16>
      tpu.vector_store %arg11[%c0_58, %c18_59, %c0_60], %92 {strides = array<i32>} : memref<2x20x128xbf16, #tpu.memory_space<vmem>>, vector<2x2x128xbf16>,
    } else {
    }
    %c0_33 = arith.constant 0 : index
    %c0_34 = arith.constant 0 : index
    %c0_35 = arith.constant 0 : index
    %61 = vector.load %arg11[%c0_33, %c0_34, %c0_35] : memref<2x20x128xbf16, #tpu.memory_space<vmem>>, vector<2x20x128xbf16>
    %c0_36 = arith.constant 0 : index
    %c0_37 = arith.constant 0 : index
    %c0_38 = arith.constant 0 : index
    %62 = vector.load %arg6[%c0_36, %c0_37, %c0_38] : memref<5x128x128xbf16, #tpu.memory_space<vmem>>, vector<1x128x128xbf16>
    %63 = vector.shape_cast %62 : vector<1x128x128xbf16> to vector<128x128xbf16>
    %cst_39 = arith.constant dense<0.000000e+00> : vector<2x20x128xf32>
    %64 = tpu.matmul %61, %63, %cst_39 {dimension_numbers = #tpu.dot_dimension_numbers<[2], [0], [0, 1], [1], [0, 0, 0, 1, 1, 1], [], []>} : vector<2x20x128xbf16>, vector<128x128xbf16>, vector<2x20x128xf32> -> vector<2x20x128xf32>
    %65 = vector.extract_strided_slice %64 {offsets = [0, 0, 0], sizes = [2, 16, 128], strides = [1, 1, 1]} : vector<2x20x128xf32> to vector<2x16x128xf32>
    %c1 = arith.constant 1 : index
    %c0_40 = arith.constant 0 : index
    %c0_41 = arith.constant 0 : index
    %66 = vector.load %arg6[%c1, %c0_40, %c0_41] : memref<5x128x128xbf16, #tpu.memory_space<vmem>>, vector<1x128x128xbf16>
    %67 = vector.shape_cast %66 : vector<1x128x128xbf16> to vector<128x128xbf16>
    %cst_42 = arith.constant dense<0.000000e+00> : vector<2x20x128xf32>
    %68 = tpu.matmul %61, %67, %cst_42 {dimension_numbers = #tpu.dot_dimension_numbers<[2], [0], [0, 1], [1], [0, 0, 0, 1, 1, 1], [], []>} : vector<2x20x128xbf16>, vector<128x128xbf16>, vector<2x20x128xf32> -> vector<2x20x128xf32>
    %69 = vector.extract_strided_slice %68 {offsets = [0, 1, 0], sizes = [2, 16, 128], strides = [1, 1, 1]} : vector<2x20x128xf32> to vector<2x16x128xf32>
    %70 = arith.addf %65, %69 : vector<2x16x128xf32>
    %c2_43 = arith.constant 2 : index
    %c0_44 = arith.constant 0 : index
    %c0_45 = arith.constant 0 : index
    %71 = vector.load %arg6[%c2_43, %c0_44, %c0_45] : memref<5x128x128xbf16, #tpu.memory_space<vmem>>, vector<1x128x128xbf16>
    %72 = vector.shape_cast %71 : vector<1x128x128xbf16> to vector<128x128xbf16>
    %cst_46 = arith.constant dense<0.000000e+00> : vector<2x20x128xf32>
    %73 = tpu.matmul %61, %72, %cst_46 {dimension_numbers = #tpu.dot_dimension_numbers<[2], [0], [0, 1], [1], [0, 0, 0, 1, 1, 1], [], []>} : vector<2x20x128xbf16>, vector<128x128xbf16>, vector<2x20x128xf32> -> vector<2x20x128xf32>
    %74 = vector.extract_strided_slice %73 {offsets = [0, 2, 0], sizes = [2, 16, 128], strides = [1, 1, 1]} : vector<2x20x128xf32> to vector<2x16x128xf32>
    %75 = arith.addf %70, %74 : vector<2x16x128xf32>
    %c3 = arith.constant 3 : index
    %c0_47 = arith.constant 0 : index
    %c0_48 = arith.constant 0 : index
    %76 = vector.load %arg6[%c3, %c0_47, %c0_48] : memref<5x128x128xbf16, #tpu.memory_space<vmem>>, vector<1x128x128xbf16>
    %77 = vector.shape_cast %76 : vector<1x128x128xbf16> to vector<128x128xbf16>
    %cst_49 = arith.constant dense<0.000000e+00> : vector<2x20x128xf32>
    %78 = tpu.matmul %61, %77, %cst_49 {dimension_numbers = #tpu.dot_dimension_numbers<[2], [0], [0, 1], [1], [0, 0, 0, 1, 1, 1], [], []>} : vector<2x20x128xbf16>, vector<128x128xbf16>, vector<2x20x128xf32> -> vector<2x20x128xf32>
    %79 = vector.extract_strided_slice %78 {offsets = [0, 3, 0], sizes = [2, 16, 128], strides = [1, 1, 1]} : vector<2x20x128xf32> to vector<2x16x128xf32>
    %80 = arith.addf %75, %79 : vector<2x16x128xf32>
    %c4 = arith.constant 4 : index
    %c0_50 = arith.constant 0 : index
    %c0_51 = arith.constant 0 : index
    %81 = vector.load %arg6[%c4, %c0_50, %c0_51] : memref<5x128x128xbf16, #tpu.memory_space<vmem>>, vector<1x128x128xbf16>
    %82 = vector.shape_cast %81 : vector<1x128x128xbf16> to vector<128x128xbf16>
    %cst_52 = arith.constant dense<0.000000e+00> : vector<2x20x128xf32>
    %83 = tpu.matmul %61, %82, %cst_52 {dimension_numbers = #tpu.dot_dimension_numbers<[2], [0], [0, 1], [1], [0, 0, 0, 1, 1, 1], [], []>} : vector<2x20x128xbf16>, vector<128x128xbf16>, vector<2x20x128xf32> -> vector<2x20x128xf32>
    %84 = vector.extract_strided_slice %83 {offsets = [0, 4, 0], sizes = [2, 16, 128], strides = [1, 1, 1]} : vector<2x20x128xf32> to vector<2x16x128xf32>
    %85 = arith.addf %80, %84 : vector<2x16x128xf32>
    %c2_i32_53 = arith.constant 2 : i32
    %86 = arith.cmpi slt, %arg0, %c2_i32_53 : i32
    %87 = arith.extui %86 : i1 to i32
    %c0_i32_54 = arith.constant 0 : i32
    %88 = arith.cmpi ne, %87, %c0_i32_54 : i32
    scf.if %88 {
      %92 = arith.truncf %85 : vector<2x16x128xf32> to vector<2x16x128xbf16>
      %c0_57 = arith.constant 0 : index
      %c0_58 = arith.constant 0 : index
      %c0_59 = arith.constant 0 : index
      %93 = vector.load %arg7[%c0_57, %c0_58, %c0_59] : memref<2x16x128xbf16, #tpu.memory_space<vmem>>, vector<2x16x128xbf16>
      tpu.vector_store %arg7[%c0_57, %c0_58, %c0_59], %92 {strides = array<i32>} : memref<2x16x128xbf16, #tpu.memory_space<vmem>>, vector<2x16x128xbf16>,
      %94 = vector.extract_strided_slice %85 {offsets = [0, 0, 0], sizes = [2, 2, 128], strides = [1, 1, 1]} : vector<2x16x128xf32> to vector<2x2x128xf32>
      %95 = arith.truncf %94 : vector<2x2x128xf32> to vector<2x2x128xbf16>
      %c0_60 = arith.constant 0 : index
      %c0_61 = arith.constant 0 : index
      %c0_62 = arith.constant 0 : index
      %c0_63 = arith.constant 0 : index
      %96 = vector.load %arg8[%c0_60, %c0_61, %c0_62, %c0_63] : memref<1x2x4x128xbf16, #tpu.memory_space<vmem>>, vector<1x2x2x128xbf16>
      %97 = vector.shape_cast %96 : vector<1x2x2x128xbf16> to vector<2x2x128xbf16>
      %98 = vector.shape_cast %95 : vector<2x2x128xbf16> to vector<1x2x2x128xbf16>
      tpu.vector_store %arg8[%c0_60, %c0_61, %c0_62, %c0_63], %98 {strides = array<i32>} : memref<1x2x4x128xbf16, #tpu.memory_space<vmem>>, vector<1x2x2x128xbf16>,
      %99 = vector.extract_strided_slice %85 {offsets = [0, 14, 0], sizes = [2, 2, 128], strides = [1, 1, 1]} : vector<2x16x128xf32> to vector<2x2x128xf32>
      %100 = arith.truncf %99 : vector<2x2x128xf32> to vector<2x2x128xbf16>
      %c0_64 = arith.constant 0 : index
      %c0_65 = arith.constant 0 : index
      %c2_66 = arith.constant 2 : index
      %c0_67 = arith.constant 0 : index
      %101 = vector.load %arg8[%c0_64, %c0_65, %c2_66, %c0_67] : memref<1x2x4x128xbf16, #tpu.memory_space<vmem>>, vector<1x2x2x128xbf16>
      %102 = vector.shape_cast %101 : vector<1x2x2x128xbf16> to vector<2x2x128xbf16>
      %103 = vector.shape_cast %100 : vector<2x2x128xbf16> to vector<1x2x2x128xbf16>
      tpu.vector_store %arg8[%c0_64, %c0_65, %c2_66, %c0_67], %103 {strides = array<i32>} : memref<1x2x4x128xbf16, #tpu.memory_space<vmem>>, vector<1x2x2x128xbf16>,
      %cst_68 = arith.constant dense<0.000000e+00> : vector<128xf32>
      %104 = vector.multi_reduction <add>, %85, %cst_68 [0, 1] : vector<2x16x128xf32> to vector<128xf32>
      %105 = vector.shape_cast %104 : vector<128xf32> to vector<1x1x128xf32>
      %c0_69 = arith.constant 0 : index
      %c0_70 = arith.constant 0 : index
      %c0_71 = arith.constant 0 : index
      %106 = vector.load %arg9[%c0_69, %c0_70, %c0_71] : memref<1x1x128xf32, #tpu.memory_space<vmem>>, vector<1x1x128xf32>
      tpu.vector_store %arg9[%c0_69, %c0_70, %c0_71], %105 {strides = array<i32>} : memref<1x1x128xf32, #tpu.memory_space<vmem>>, vector<1x1x128xf32>,
      %107 = arith.mulf %85, %85 : vector<2x16x128xf32>
      %cst_72 = arith.constant dense<0.000000e+00> : vector<128xf32>
      %108 = vector.multi_reduction <add>, %107, %cst_72 [0, 1] : vector<2x16x128xf32> to vector<128xf32>
      %109 = vector.shape_cast %108 : vector<128xf32> to vector<1x1x128xf32>
      %c0_73 = arith.constant 0 : index
      %c0_74 = arith.constant 0 : index
      %c0_75 = arith.constant 0 : index
      %110 = vector.load %arg10[%c0_73, %c0_74, %c0_75] : memref<1x1x128xf32, #tpu.memory_space<vmem>>, vector<1x1x128xf32>
      tpu.vector_store %arg10[%c0_73, %c0_74, %c0_75], %109 {strides = array<i32>} : memref<1x1x128xf32, #tpu.memory_space<vmem>>, vector<1x1x128xf32>,
    } else {
    }
    %c2_i32_55 = arith.constant 2 : i32
    %89 = arith.cmpi eq, %arg0, %c2_i32_55 : i32
    %90 = arith.extui %89 : i1 to i32
    %c0_i32_56 = arith.constant 0 : i32
    %91 = arith.cmpi ne, %90, %c0_i32_56 : i32
    scf.if %91 {
      %c16_i32_57 = arith.constant 16 : i32
      %92 = arith.muli %arg0, %c16_i32_57 : i32
      %93 = tpu.iota {dimensions = array<i32: 1>} : vector<1x16x1xi32>
      %94 = vector.broadcast %92 : i32 to vector<1x16x1xi32>
      %95 = arith.addi %94, %93 : vector<1x16x1xi32>
      %c40_i32_58 = arith.constant 40 : i32
      %96 = vector.broadcast %c40_i32_58 : i32 to vector<1x16x1xi32>
      %97 = arith.cmpi slt, %95, %96 : vector<1x16x1xi32>
      %cst_59 = arith.constant 0.000000e+00 : f32
      %98 = vector.shape_cast %97 : vector<1x16x1xi1> to vector<1x16x1xi1>
      %99 = vector.broadcast %98 : vector<1x16x1xi1> to vector<2x16x128xi1>
      %100 = vector.broadcast %cst_59 : f32 to vector<2x16x128xf32>
      %101 = arith.select %99, %85, %100 : vector<2x16x128xi1>, vector<2x16x128xf32>
      %102 = arith.truncf %101 : vector<2x16x128xf32> to vector<2x16x128xbf16>
      %c0_60 = arith.constant 0 : index
      %c0_61 = arith.constant 0 : index
      %c0_62 = arith.constant 0 : index
      %103 = vector.load %arg7[%c0_60, %c0_61, %c0_62] : memref<2x16x128xbf16, #tpu.memory_space<vmem>>, vector<2x16x128xbf16>
      tpu.vector_store %arg7[%c0_60, %c0_61, %c0_62], %102 {strides = array<i32>} : memref<2x16x128xbf16, #tpu.memory_space<vmem>>, vector<2x16x128xbf16>,
      %104 = vector.extract_strided_slice %101 {offsets = [0, 0, 0], sizes = [2, 2, 128], strides = [1, 1, 1]} : vector<2x16x128xf32> to vector<2x2x128xf32>
      %105 = arith.truncf %104 : vector<2x2x128xf32> to vector<2x2x128xbf16>
      %c0_63 = arith.constant 0 : index
      %c0_64 = arith.constant 0 : index
      %c0_65 = arith.constant 0 : index
      %c0_66 = arith.constant 0 : index
      %106 = vector.load %arg8[%c0_63, %c0_64, %c0_65, %c0_66] : memref<1x2x4x128xbf16, #tpu.memory_space<vmem>>, vector<1x2x2x128xbf16>
      %107 = vector.shape_cast %106 : vector<1x2x2x128xbf16> to vector<2x2x128xbf16>
      %108 = vector.shape_cast %105 : vector<2x2x128xbf16> to vector<1x2x2x128xbf16>
      tpu.vector_store %arg8[%c0_63, %c0_64, %c0_65, %c0_66], %108 {strides = array<i32>} : memref<1x2x4x128xbf16, #tpu.memory_space<vmem>>, vector<1x2x2x128xbf16>,
      %109 = vector.extract_strided_slice %101 {offsets = [0, 14, 0], sizes = [2, 2, 128], strides = [1, 1, 1]} : vector<2x16x128xf32> to vector<2x2x128xf32>
      %110 = arith.truncf %109 : vector<2x2x128xf32> to vector<2x2x128xbf16>
      %c0_67 = arith.constant 0 : index
      %c0_68 = arith.constant 0 : index
      %c2_69 = arith.constant 2 : index
      %c0_70 = arith.constant 0 : index
      %111 = vector.load %arg8[%c0_67, %c0_68, %c2_69, %c0_70] : memref<1x2x4x128xbf16, #tpu.memory_space<vmem>>, vector<1x2x2x128xbf16>
      %112 = vector.shape_cast %111 : vector<1x2x2x128xbf16> to vector<2x2x128xbf16>
      %113 = vector.shape_cast %110 : vector<2x2x128xbf16> to vector<1x2x2x128xbf16>
      tpu.vector_store %arg8[%c0_67, %c0_68, %c2_69, %c0_70], %113 {strides = array<i32>} : memref<1x2x4x128xbf16, #tpu.memory_space<vmem>>, vector<1x2x2x128xbf16>,
      %cst_71 = arith.constant dense<0.000000e+00> : vector<128xf32>
      %114 = vector.multi_reduction <add>, %101, %cst_71 [0, 1] : vector<2x16x128xf32> to vector<128xf32>
      %115 = vector.shape_cast %114 : vector<128xf32> to vector<1x1x128xf32>
      %c0_72 = arith.constant 0 : index
      %c0_73 = arith.constant 0 : index
      %c0_74 = arith.constant 0 : index
      %116 = vector.load %arg9[%c0_72, %c0_73, %c0_74] : memref<1x1x128xf32, #tpu.memory_space<vmem>>, vector<1x1x128xf32>
      tpu.vector_store %arg9[%c0_72, %c0_73, %c0_74], %115 {strides = array<i32>} : memref<1x1x128xf32, #tpu.memory_space<vmem>>, vector<1x1x128xf32>,
      %117 = arith.mulf %101, %101 : vector<2x16x128xf32>
      %cst_75 = arith.constant dense<0.000000e+00> : vector<128xf32>
      %118 = vector.multi_reduction <add>, %117, %cst_75 [0, 1] : vector<2x16x128xf32> to vector<128xf32>
      %119 = vector.shape_cast %118 : vector<128xf32> to vector<1x1x128xf32>
      %c0_76 = arith.constant 0 : index
      %c0_77 = arith.constant 0 : index
      %c0_78 = arith.constant 0 : index
      %120 = vector.load %arg10[%c0_76, %c0_77, %c0_78] : memref<1x1x128xf32, #tpu.memory_space<vmem>>, vector<1x1x128xf32>
      tpu.vector_store %arg10[%c0_76, %c0_77, %c0_78], %119 {strides = array<i32>} : memref<1x1x128xf32, #tpu.memory_space<vmem>>, vector<1x1x128xf32>,
    } else {
    }
    return
  }
  func.func @transform_0(%arg0: i32) -> (i32, i32, i32) {
    %c0_i32 = arith.constant 0 : i32
    %c0_i32_0 = arith.constant 0 : i32
    %c0_i32_1 = arith.constant 0 : i32
    return %c0_i32, %arg0, %c0_i32_0 : i32, i32, i32
  }
  func.func @transform_1(%arg0: i32) -> (i32, i32, i32, i32) {
    %c1_i32 = arith.constant 1 : i32
    %0 = arith.subi %arg0, %c1_i32 : i32
    %c0_i32 = arith.constant 0 : i32
    %1 = arith.maxsi %0, %c0_i32 : i32
    %c0_i32_0 = arith.constant 0 : i32
    %c0_i32_1 = arith.constant 0 : i32
    %c0_i32_2 = arith.constant 0 : i32
    %c0_i32_3 = arith.constant 0 : i32
    return %1, %c0_i32_0, %c0_i32_1, %c0_i32_2 : i32, i32, i32, i32
  }
  func.func @transform_2(%arg0: i32) -> (i32, i32, i32, i32) {
    %c1_i32 = arith.constant 1 : i32
    %0 = arith.addi %arg0, %c1_i32 : i32
    %c2_i32 = arith.constant 2 : i32
    %1 = arith.minsi %0, %c2_i32 : i32
    %c0_i32 = arith.constant 0 : i32
    %c0_i32_0 = arith.constant 0 : i32
    %c0_i32_1 = arith.constant 0 : i32
    %c0_i32_2 = arith.constant 0 : i32
    return %1, %c0_i32, %c0_i32_0, %c0_i32_1 : i32, i32, i32, i32
  }
  func.func @transform_3(%arg0: i32) -> (i32, i32) {
    %c0_i32 = arith.constant 0 : i32
    %c0_i32_0 = arith.constant 0 : i32
    %c0_i32_1 = arith.constant 0 : i32
    return %c0_i32, %c0_i32_0 : i32, i32
  }
  func.func @transform_4(%arg0: i32) -> (i32, i32) {
    %c0_i32 = arith.constant 0 : i32
    %c0_i32_0 = arith.constant 0 : i32
    %c0_i32_1 = arith.constant 0 : i32
    return %c0_i32, %c0_i32_0 : i32, i32
  }
  func.func @transform_5(%arg0: i32) -> (i32, i32, i32) {
    %c0_i32 = arith.constant 0 : i32
    %c0_i32_0 = arith.constant 0 : i32
    %c0_i32_1 = arith.constant 0 : i32
    %c0_i32_2 = arith.constant 0 : i32
    return %c0_i32, %c0_i32_0, %c0_i32_1 : i32, i32, i32
  }
  func.func @transform_6(%arg0: i32) -> (i32, i32, i32) {
    %c0_i32 = arith.constant 0 : i32
    %c0_i32_0 = arith.constant 0 : i32
    %c0_i32_1 = arith.constant 0 : i32
    return %c0_i32, %arg0, %c0_i32_0 : i32, i32, i32
  }
  func.func @transform_7(%arg0: i32) -> (i32, i32, i32, i32) {
    %c0_i32 = arith.constant 0 : i32
    %c0_i32_0 = arith.constant 0 : i32
    %c0_i32_1 = arith.constant 0 : i32
    %c0_i32_2 = arith.constant 0 : i32
    return %arg0, %c0_i32, %c0_i32_0, %c0_i32_1 : i32, i32, i32, i32
  }
  func.func @transform_8(%arg0: i32) -> (i32, i32, i32) {
    %c0_i32 = arith.constant 0 : i32
    %c0_i32_0 = arith.constant 0 : i32
    %c0_i32_1 = arith.constant 0 : i32
    return %arg0, %c0_i32, %c0_i32_0 : i32, i32, i32
  }
  func.func @transform_9(%arg0: i32) -> (i32, i32, i32) {
    %c0_i32 = arith.constant 0 : i32
    %c0_i32_0 = arith.constant 0 : i32
    %c0_i32_1 = arith.constant 0 : i32
    return %arg0, %c0_i32, %c0_i32_0 : i32, i32, i32
  }
}

module attributes {stable_mosaic.version = 11 : i64} {
  func.func @_conv_stats_kernel(%arg0: i32, %arg1: memref<2x16x128xbf16, #tpu.memory_space<vmem>>, %arg2: memref<1x2x4x128xbf16, #tpu.memory_space<vmem>>, %arg3: memref<1x2x4x128xbf16, #tpu.memory_space<vmem>>, %arg4: memref<1x128xf32, #tpu.memory_space<vmem>>, %arg5: memref<1x128xf32, #tpu.memory_space<vmem>>, %arg6: memref<5x128x128xbf16, #tpu.memory_space<vmem>>, %arg7: memref<2x16x128xbf16, #tpu.memory_space<vmem>>, %arg8: memref<1x2x4x128xbf16, #tpu.memory_space<vmem>>, %arg9: memref<1x1x128xf32, #tpu.memory_space<vmem>>, %arg10: memref<1x1x128xf32, #tpu.memory_space<vmem>>, %arg11: memref<2x20x128xbf16, #tpu.memory_space<vmem>>) attributes {dimension_semantics = [#tpu.dimension_semantics<parallel>], iteration_bounds = array<i64: 3>, scalar_prefetch = 0 : i64, scratch_operands = 1 : i64, tpu.core_type = #tpu.core_type<tc>, window_params = [{transform_indices = @transform_0, window_bounds = array<i64: 2, 16, 128>}, {transform_indices = @transform_1, window_bounds = array<i64: 1, 2, 4, 128>}, {transform_indices = @transform_2, window_bounds = array<i64: 1, 2, 4, 128>}, {pipeline_mode = #tpu.pipeline_mode<synchronous>, transform_indices = @transform_3, window_bounds = array<i64: 1, 128>}, {pipeline_mode = #tpu.pipeline_mode<synchronous>, transform_indices = @transform_4, window_bounds = array<i64: 1, 128>}, {pipeline_mode = #tpu.pipeline_mode<synchronous>, transform_indices = @transform_5, window_bounds = array<i64: 5, 128, 128>}, {transform_indices = @transform_6, window_bounds = array<i64: 2, 16, 128>}, {transform_indices = @transform_7, window_bounds = array<i64: 1, 2, 4, 128>}, {transform_indices = @transform_8, window_bounds = array<i64: 1, 1, 128>}, {transform_indices = @transform_9, window_bounds = array<i64: 1, 1, 128>}]} {
    %c0 = arith.constant 0 : index
    %c0_0 = arith.constant 0 : index
    %c0_1 = arith.constant 0 : index
    %0 = vector.load %arg1[%c0, %c0_0, %c0_1] : memref<2x16x128xbf16, #tpu.memory_space<vmem>>, vector<2x16x128xbf16>
    %c0_2 = arith.constant 0 : index
    %c2 = arith.constant 2 : index
    %c0_3 = arith.constant 0 : index
    %1 = vector.load %arg11[%c0_2, %c2, %c0_3] : memref<2x20x128xbf16, #tpu.memory_space<vmem>>, vector<2x16x128xbf16>
    tpu.vector_store %arg11[%c0_2, %c2, %c0_3], %0 {strides = array<i32>} : memref<2x20x128xbf16, #tpu.memory_space<vmem>>, vector<2x16x128xbf16>,
    %c0_4 = arith.constant 0 : index
    %c0_5 = arith.constant 0 : index
    %c2_6 = arith.constant 2 : index
    %c0_7 = arith.constant 0 : index
    %2 = vector.load %arg2[%c0_4, %c0_5, %c2_6, %c0_7] : memref<1x2x4x128xbf16, #tpu.memory_space<vmem>>, vector<1x2x2x128xbf16>
    %3 = vector.shape_cast %2 : vector<1x2x2x128xbf16> to vector<2x2x128xbf16>
    %c0_8 = arith.constant 0 : index
    %c0_9 = arith.constant 0 : index
    %c0_10 = arith.constant 0 : index
    %c0_11 = arith.constant 0 : index
    %4 = vector.load %arg3[%c0_8, %c0_9, %c0_10, %c0_11] : memref<1x2x4x128xbf16, #tpu.memory_space<vmem>>, vector<1x2x2x128xbf16>
    %5 = vector.shape_cast %4 : vector<1x2x2x128xbf16> to vector<2x2x128xbf16>
    %c0_12 = arith.constant 0 : index
    %c0_13 = arith.constant 0 : index
    %c0_14 = arith.constant 0 : index
    %6 = vector.load %arg11[%c0_12, %c0_13, %c0_14] : memref<2x20x128xbf16, #tpu.memory_space<vmem>>, vector<2x2x128xbf16>
    tpu.vector_store %arg11[%c0_12, %c0_13, %c0_14], %3 {strides = array<i32>} : memref<2x20x128xbf16, #tpu.memory_space<vmem>>, vector<2x2x128xbf16>,
    %c0_15 = arith.constant 0 : index
    %c18 = arith.constant 18 : index
    %c0_16 = arith.constant 0 : index
    %7 = vector.load %arg11[%c0_15, %c18, %c0_16] : memref<2x20x128xbf16, #tpu.memory_space<vmem>>, vector<2x2x128xbf16>
    tpu.vector_store %arg11[%c0_15, %c18, %c0_16], %5 {strides = array<i32>} : memref<2x20x128xbf16, #tpu.memory_space<vmem>>, vector<2x2x128xbf16>,
    %c0_i32 = arith.constant 0 : i32
    %8 = arith.cmpi eq, %arg0, %c0_i32 : i32
    %9 = arith.extui %8 : i1 to i32
    %c0_i32_17 = arith.constant 0 : i32
    %10 = arith.cmpi ne, %9, %c0_i32_17 : i32
    scf.if %10 {
      %cst_42 = arith.constant 0.000000e+00 : bf16
      %45 = vector.broadcast %cst_42 : bf16 to vector<2x2x128xbf16>
      %c0_43 = arith.constant 0 : index
      %c0_44 = arith.constant 0 : index
      %c0_45 = arith.constant 0 : index
      %46 = vector.load %arg11[%c0_43, %c0_44, %c0_45] : memref<2x20x128xbf16, #tpu.memory_space<vmem>>, vector<2x2x128xbf16>
      tpu.vector_store %arg11[%c0_43, %c0_44, %c0_45], %45 {strides = array<i32>} : memref<2x20x128xbf16, #tpu.memory_space<vmem>>, vector<2x2x128xbf16>,
    } else {
    }
    %c2_i32 = arith.constant 2 : i32
    %11 = arith.cmpi eq, %arg0, %c2_i32 : i32
    %12 = arith.extui %11 : i1 to i32
    %c0_i32_18 = arith.constant 0 : i32
    %13 = arith.cmpi ne, %12, %c0_i32_18 : i32
    scf.if %13 {
      %cst_42 = arith.constant 0.000000e+00 : bf16
      %45 = vector.broadcast %cst_42 : bf16 to vector<2x2x128xbf16>
      %c0_43 = arith.constant 0 : index
      %c18_44 = arith.constant 18 : index
      %c0_45 = arith.constant 0 : index
      %46 = vector.load %arg11[%c0_43, %c18_44, %c0_45] : memref<2x20x128xbf16, #tpu.memory_space<vmem>>, vector<2x2x128xbf16>
      tpu.vector_store %arg11[%c0_43, %c18_44, %c0_45], %45 {strides = array<i32>} : memref<2x20x128xbf16, #tpu.memory_space<vmem>>, vector<2x2x128xbf16>,
    } else {
    }
    %c0_19 = arith.constant 0 : index
    %c0_20 = arith.constant 0 : index
    %c0_21 = arith.constant 0 : index
    %14 = vector.load %arg11[%c0_19, %c0_20, %c0_21] : memref<2x20x128xbf16, #tpu.memory_space<vmem>>, vector<2x20x128xbf16>
    %c0_22 = arith.constant 0 : index
    %c0_23 = arith.constant 0 : index
    %c0_24 = arith.constant 0 : index
    %15 = vector.load %arg6[%c0_22, %c0_23, %c0_24] : memref<5x128x128xbf16, #tpu.memory_space<vmem>>, vector<1x128x128xbf16>
    %16 = vector.shape_cast %15 : vector<1x128x128xbf16> to vector<128x128xbf16>
    %cst = arith.constant dense<0.000000e+00> : vector<2x20x128xf32>
    %17 = tpu.matmul %14, %16, %cst {dimension_numbers = #tpu.dot_dimension_numbers<[2], [0], [0, 1], [1], [0, 0, 0, 1, 1, 1], [], []>} : vector<2x20x128xbf16>, vector<128x128xbf16>, vector<2x20x128xf32> -> vector<2x20x128xf32>
    %18 = vector.extract_strided_slice %17 {offsets = [0, 0, 0], sizes = [2, 16, 128], strides = [1, 1, 1]} : vector<2x20x128xf32> to vector<2x16x128xf32>
    %c1 = arith.constant 1 : index
    %c0_25 = arith.constant 0 : index
    %c0_26 = arith.constant 0 : index
    %19 = vector.load %arg6[%c1, %c0_25, %c0_26] : memref<5x128x128xbf16, #tpu.memory_space<vmem>>, vector<1x128x128xbf16>
    %20 = vector.shape_cast %19 : vector<1x128x128xbf16> to vector<128x128xbf16>
    %cst_27 = arith.constant dense<0.000000e+00> : vector<2x20x128xf32>
    %21 = tpu.matmul %14, %20, %cst_27 {dimension_numbers = #tpu.dot_dimension_numbers<[2], [0], [0, 1], [1], [0, 0, 0, 1, 1, 1], [], []>} : vector<2x20x128xbf16>, vector<128x128xbf16>, vector<2x20x128xf32> -> vector<2x20x128xf32>
    %22 = vector.extract_strided_slice %21 {offsets = [0, 1, 0], sizes = [2, 16, 128], strides = [1, 1, 1]} : vector<2x20x128xf32> to vector<2x16x128xf32>
    %23 = arith.addf %18, %22 : vector<2x16x128xf32>
    %c2_28 = arith.constant 2 : index
    %c0_29 = arith.constant 0 : index
    %c0_30 = arith.constant 0 : index
    %24 = vector.load %arg6[%c2_28, %c0_29, %c0_30] : memref<5x128x128xbf16, #tpu.memory_space<vmem>>, vector<1x128x128xbf16>
    %25 = vector.shape_cast %24 : vector<1x128x128xbf16> to vector<128x128xbf16>
    %cst_31 = arith.constant dense<0.000000e+00> : vector<2x20x128xf32>
    %26 = tpu.matmul %14, %25, %cst_31 {dimension_numbers = #tpu.dot_dimension_numbers<[2], [0], [0, 1], [1], [0, 0, 0, 1, 1, 1], [], []>} : vector<2x20x128xbf16>, vector<128x128xbf16>, vector<2x20x128xf32> -> vector<2x20x128xf32>
    %27 = vector.extract_strided_slice %26 {offsets = [0, 2, 0], sizes = [2, 16, 128], strides = [1, 1, 1]} : vector<2x20x128xf32> to vector<2x16x128xf32>
    %28 = arith.addf %23, %27 : vector<2x16x128xf32>
    %c3 = arith.constant 3 : index
    %c0_32 = arith.constant 0 : index
    %c0_33 = arith.constant 0 : index
    %29 = vector.load %arg6[%c3, %c0_32, %c0_33] : memref<5x128x128xbf16, #tpu.memory_space<vmem>>, vector<1x128x128xbf16>
    %30 = vector.shape_cast %29 : vector<1x128x128xbf16> to vector<128x128xbf16>
    %cst_34 = arith.constant dense<0.000000e+00> : vector<2x20x128xf32>
    %31 = tpu.matmul %14, %30, %cst_34 {dimension_numbers = #tpu.dot_dimension_numbers<[2], [0], [0, 1], [1], [0, 0, 0, 1, 1, 1], [], []>} : vector<2x20x128xbf16>, vector<128x128xbf16>, vector<2x20x128xf32> -> vector<2x20x128xf32>
    %32 = vector.extract_strided_slice %31 {offsets = [0, 3, 0], sizes = [2, 16, 128], strides = [1, 1, 1]} : vector<2x20x128xf32> to vector<2x16x128xf32>
    %33 = arith.addf %28, %32 : vector<2x16x128xf32>
    %c4 = arith.constant 4 : index
    %c0_35 = arith.constant 0 : index
    %c0_36 = arith.constant 0 : index
    %34 = vector.load %arg6[%c4, %c0_35, %c0_36] : memref<5x128x128xbf16, #tpu.memory_space<vmem>>, vector<1x128x128xbf16>
    %35 = vector.shape_cast %34 : vector<1x128x128xbf16> to vector<128x128xbf16>
    %cst_37 = arith.constant dense<0.000000e+00> : vector<2x20x128xf32>
    %36 = tpu.matmul %14, %35, %cst_37 {dimension_numbers = #tpu.dot_dimension_numbers<[2], [0], [0, 1], [1], [0, 0, 0, 1, 1, 1], [], []>} : vector<2x20x128xbf16>, vector<128x128xbf16>, vector<2x20x128xf32> -> vector<2x20x128xf32>
    %37 = vector.extract_strided_slice %36 {offsets = [0, 4, 0], sizes = [2, 16, 128], strides = [1, 1, 1]} : vector<2x20x128xf32> to vector<2x16x128xf32>
    %38 = arith.addf %33, %37 : vector<2x16x128xf32>
    %c2_i32_38 = arith.constant 2 : i32
    %39 = arith.cmpi slt, %arg0, %c2_i32_38 : i32
    %40 = arith.extui %39 : i1 to i32
    %c0_i32_39 = arith.constant 0 : i32
    %41 = arith.cmpi ne, %40, %c0_i32_39 : i32
    scf.if %41 {
      %45 = arith.truncf %38 : vector<2x16x128xf32> to vector<2x16x128xbf16>
      %c0_42 = arith.constant 0 : index
      %c0_43 = arith.constant 0 : index
      %c0_44 = arith.constant 0 : index
      %46 = vector.load %arg7[%c0_42, %c0_43, %c0_44] : memref<2x16x128xbf16, #tpu.memory_space<vmem>>, vector<2x16x128xbf16>
      tpu.vector_store %arg7[%c0_42, %c0_43, %c0_44], %45 {strides = array<i32>} : memref<2x16x128xbf16, #tpu.memory_space<vmem>>, vector<2x16x128xbf16>,
      %47 = vector.extract_strided_slice %38 {offsets = [0, 0, 0], sizes = [2, 2, 128], strides = [1, 1, 1]} : vector<2x16x128xf32> to vector<2x2x128xf32>
      %48 = arith.truncf %47 : vector<2x2x128xf32> to vector<2x2x128xbf16>
      %c0_45 = arith.constant 0 : index
      %c0_46 = arith.constant 0 : index
      %c0_47 = arith.constant 0 : index
      %c0_48 = arith.constant 0 : index
      %49 = vector.load %arg8[%c0_45, %c0_46, %c0_47, %c0_48] : memref<1x2x4x128xbf16, #tpu.memory_space<vmem>>, vector<1x2x2x128xbf16>
      %50 = vector.shape_cast %49 : vector<1x2x2x128xbf16> to vector<2x2x128xbf16>
      %51 = vector.shape_cast %48 : vector<2x2x128xbf16> to vector<1x2x2x128xbf16>
      tpu.vector_store %arg8[%c0_45, %c0_46, %c0_47, %c0_48], %51 {strides = array<i32>} : memref<1x2x4x128xbf16, #tpu.memory_space<vmem>>, vector<1x2x2x128xbf16>,
      %52 = vector.extract_strided_slice %38 {offsets = [0, 14, 0], sizes = [2, 2, 128], strides = [1, 1, 1]} : vector<2x16x128xf32> to vector<2x2x128xf32>
      %53 = arith.truncf %52 : vector<2x2x128xf32> to vector<2x2x128xbf16>
      %c0_49 = arith.constant 0 : index
      %c0_50 = arith.constant 0 : index
      %c2_51 = arith.constant 2 : index
      %c0_52 = arith.constant 0 : index
      %54 = vector.load %arg8[%c0_49, %c0_50, %c2_51, %c0_52] : memref<1x2x4x128xbf16, #tpu.memory_space<vmem>>, vector<1x2x2x128xbf16>
      %55 = vector.shape_cast %54 : vector<1x2x2x128xbf16> to vector<2x2x128xbf16>
      %56 = vector.shape_cast %53 : vector<2x2x128xbf16> to vector<1x2x2x128xbf16>
      tpu.vector_store %arg8[%c0_49, %c0_50, %c2_51, %c0_52], %56 {strides = array<i32>} : memref<1x2x4x128xbf16, #tpu.memory_space<vmem>>, vector<1x2x2x128xbf16>,
      %cst_53 = arith.constant dense<0.000000e+00> : vector<128xf32>
      %57 = vector.multi_reduction <add>, %38, %cst_53 [0, 1] : vector<2x16x128xf32> to vector<128xf32>
      %58 = vector.shape_cast %57 : vector<128xf32> to vector<1x1x128xf32>
      %c0_54 = arith.constant 0 : index
      %c0_55 = arith.constant 0 : index
      %c0_56 = arith.constant 0 : index
      %59 = vector.load %arg9[%c0_54, %c0_55, %c0_56] : memref<1x1x128xf32, #tpu.memory_space<vmem>>, vector<1x1x128xf32>
      tpu.vector_store %arg9[%c0_54, %c0_55, %c0_56], %58 {strides = array<i32>} : memref<1x1x128xf32, #tpu.memory_space<vmem>>, vector<1x1x128xf32>,
      %60 = arith.mulf %38, %38 : vector<2x16x128xf32>
      %cst_57 = arith.constant dense<0.000000e+00> : vector<128xf32>
      %61 = vector.multi_reduction <add>, %60, %cst_57 [0, 1] : vector<2x16x128xf32> to vector<128xf32>
      %62 = vector.shape_cast %61 : vector<128xf32> to vector<1x1x128xf32>
      %c0_58 = arith.constant 0 : index
      %c0_59 = arith.constant 0 : index
      %c0_60 = arith.constant 0 : index
      %63 = vector.load %arg10[%c0_58, %c0_59, %c0_60] : memref<1x1x128xf32, #tpu.memory_space<vmem>>, vector<1x1x128xf32>
      tpu.vector_store %arg10[%c0_58, %c0_59, %c0_60], %62 {strides = array<i32>} : memref<1x1x128xf32, #tpu.memory_space<vmem>>, vector<1x1x128xf32>,
    } else {
    }
    %c2_i32_40 = arith.constant 2 : i32
    %42 = arith.cmpi eq, %arg0, %c2_i32_40 : i32
    %43 = arith.extui %42 : i1 to i32
    %c0_i32_41 = arith.constant 0 : i32
    %44 = arith.cmpi ne, %43, %c0_i32_41 : i32
    scf.if %44 {
      %c16_i32 = arith.constant 16 : i32
      %45 = arith.muli %arg0, %c16_i32 : i32
      %46 = tpu.iota {dimensions = array<i32: 1>} : vector<1x16x1xi32>
      %47 = vector.broadcast %45 : i32 to vector<1x16x1xi32>
      %48 = arith.addi %47, %46 : vector<1x16x1xi32>
      %c40_i32 = arith.constant 40 : i32
      %49 = vector.broadcast %c40_i32 : i32 to vector<1x16x1xi32>
      %50 = arith.cmpi slt, %48, %49 : vector<1x16x1xi32>
      %cst_42 = arith.constant 0.000000e+00 : f32
      %51 = vector.shape_cast %50 : vector<1x16x1xi1> to vector<1x16x1xi1>
      %52 = vector.broadcast %51 : vector<1x16x1xi1> to vector<2x16x128xi1>
      %53 = vector.broadcast %cst_42 : f32 to vector<2x16x128xf32>
      %54 = arith.select %52, %38, %53 : vector<2x16x128xi1>, vector<2x16x128xf32>
      %55 = arith.truncf %54 : vector<2x16x128xf32> to vector<2x16x128xbf16>
      %c0_43 = arith.constant 0 : index
      %c0_44 = arith.constant 0 : index
      %c0_45 = arith.constant 0 : index
      %56 = vector.load %arg7[%c0_43, %c0_44, %c0_45] : memref<2x16x128xbf16, #tpu.memory_space<vmem>>, vector<2x16x128xbf16>
      tpu.vector_store %arg7[%c0_43, %c0_44, %c0_45], %55 {strides = array<i32>} : memref<2x16x128xbf16, #tpu.memory_space<vmem>>, vector<2x16x128xbf16>,
      %57 = vector.extract_strided_slice %54 {offsets = [0, 0, 0], sizes = [2, 2, 128], strides = [1, 1, 1]} : vector<2x16x128xf32> to vector<2x2x128xf32>
      %58 = arith.truncf %57 : vector<2x2x128xf32> to vector<2x2x128xbf16>
      %c0_46 = arith.constant 0 : index
      %c0_47 = arith.constant 0 : index
      %c0_48 = arith.constant 0 : index
      %c0_49 = arith.constant 0 : index
      %59 = vector.load %arg8[%c0_46, %c0_47, %c0_48, %c0_49] : memref<1x2x4x128xbf16, #tpu.memory_space<vmem>>, vector<1x2x2x128xbf16>
      %60 = vector.shape_cast %59 : vector<1x2x2x128xbf16> to vector<2x2x128xbf16>
      %61 = vector.shape_cast %58 : vector<2x2x128xbf16> to vector<1x2x2x128xbf16>
      tpu.vector_store %arg8[%c0_46, %c0_47, %c0_48, %c0_49], %61 {strides = array<i32>} : memref<1x2x4x128xbf16, #tpu.memory_space<vmem>>, vector<1x2x2x128xbf16>,
      %62 = vector.extract_strided_slice %54 {offsets = [0, 14, 0], sizes = [2, 2, 128], strides = [1, 1, 1]} : vector<2x16x128xf32> to vector<2x2x128xf32>
      %63 = arith.truncf %62 : vector<2x2x128xf32> to vector<2x2x128xbf16>
      %c0_50 = arith.constant 0 : index
      %c0_51 = arith.constant 0 : index
      %c2_52 = arith.constant 2 : index
      %c0_53 = arith.constant 0 : index
      %64 = vector.load %arg8[%c0_50, %c0_51, %c2_52, %c0_53] : memref<1x2x4x128xbf16, #tpu.memory_space<vmem>>, vector<1x2x2x128xbf16>
      %65 = vector.shape_cast %64 : vector<1x2x2x128xbf16> to vector<2x2x128xbf16>
      %66 = vector.shape_cast %63 : vector<2x2x128xbf16> to vector<1x2x2x128xbf16>
      tpu.vector_store %arg8[%c0_50, %c0_51, %c2_52, %c0_53], %66 {strides = array<i32>} : memref<1x2x4x128xbf16, #tpu.memory_space<vmem>>, vector<1x2x2x128xbf16>,
      %cst_54 = arith.constant dense<0.000000e+00> : vector<128xf32>
      %67 = vector.multi_reduction <add>, %54, %cst_54 [0, 1] : vector<2x16x128xf32> to vector<128xf32>
      %68 = vector.shape_cast %67 : vector<128xf32> to vector<1x1x128xf32>
      %c0_55 = arith.constant 0 : index
      %c0_56 = arith.constant 0 : index
      %c0_57 = arith.constant 0 : index
      %69 = vector.load %arg9[%c0_55, %c0_56, %c0_57] : memref<1x1x128xf32, #tpu.memory_space<vmem>>, vector<1x1x128xf32>
      tpu.vector_store %arg9[%c0_55, %c0_56, %c0_57], %68 {strides = array<i32>} : memref<1x1x128xf32, #tpu.memory_space<vmem>>, vector<1x1x128xf32>,
      %70 = arith.mulf %54, %54 : vector<2x16x128xf32>
      %cst_58 = arith.constant dense<0.000000e+00> : vector<128xf32>
      %71 = vector.multi_reduction <add>, %70, %cst_58 [0, 1] : vector<2x16x128xf32> to vector<128xf32>
      %72 = vector.shape_cast %71 : vector<128xf32> to vector<1x1x128xf32>
      %c0_59 = arith.constant 0 : index
      %c0_60 = arith.constant 0 : index
      %c0_61 = arith.constant 0 : index
      %73 = vector.load %arg10[%c0_59, %c0_60, %c0_61] : memref<1x1x128xf32, #tpu.memory_space<vmem>>, vector<1x1x128xf32>
      tpu.vector_store %arg10[%c0_59, %c0_60, %c0_61], %72 {strides = array<i32>} : memref<1x1x128xf32, #tpu.memory_space<vmem>>, vector<1x1x128xf32>,
    } else {
    }
    return
  }
  func.func @transform_0(%arg0: i32) -> (i32, i32, i32) {
    %c0_i32 = arith.constant 0 : i32
    %c0_i32_0 = arith.constant 0 : i32
    %c0_i32_1 = arith.constant 0 : i32
    return %c0_i32, %arg0, %c0_i32_0 : i32, i32, i32
  }
  func.func @transform_1(%arg0: i32) -> (i32, i32, i32, i32) {
    %c1_i32 = arith.constant 1 : i32
    %0 = arith.subi %arg0, %c1_i32 : i32
    %c0_i32 = arith.constant 0 : i32
    %1 = arith.maxsi %0, %c0_i32 : i32
    %c0_i32_0 = arith.constant 0 : i32
    %c0_i32_1 = arith.constant 0 : i32
    %c0_i32_2 = arith.constant 0 : i32
    %c0_i32_3 = arith.constant 0 : i32
    return %1, %c0_i32_0, %c0_i32_1, %c0_i32_2 : i32, i32, i32, i32
  }
  func.func @transform_2(%arg0: i32) -> (i32, i32, i32, i32) {
    %c1_i32 = arith.constant 1 : i32
    %0 = arith.addi %arg0, %c1_i32 : i32
    %c2_i32 = arith.constant 2 : i32
    %1 = arith.minsi %0, %c2_i32 : i32
    %c0_i32 = arith.constant 0 : i32
    %c0_i32_0 = arith.constant 0 : i32
    %c0_i32_1 = arith.constant 0 : i32
    %c0_i32_2 = arith.constant 0 : i32
    return %1, %c0_i32, %c0_i32_0, %c0_i32_1 : i32, i32, i32, i32
  }
  func.func @transform_3(%arg0: i32) -> (i32, i32) {
    %c0_i32 = arith.constant 0 : i32
    %c0_i32_0 = arith.constant 0 : i32
    %c0_i32_1 = arith.constant 0 : i32
    return %c0_i32, %c0_i32_0 : i32, i32
  }
  func.func @transform_4(%arg0: i32) -> (i32, i32) {
    %c0_i32 = arith.constant 0 : i32
    %c0_i32_0 = arith.constant 0 : i32
    %c0_i32_1 = arith.constant 0 : i32
    return %c0_i32, %c0_i32_0 : i32, i32
  }
  func.func @transform_5(%arg0: i32) -> (i32, i32, i32) {
    %c0_i32 = arith.constant 0 : i32
    %c0_i32_0 = arith.constant 0 : i32
    %c0_i32_1 = arith.constant 0 : i32
    %c0_i32_2 = arith.constant 0 : i32
    return %c0_i32, %c0_i32_0, %c0_i32_1 : i32, i32, i32
  }
  func.func @transform_6(%arg0: i32) -> (i32, i32, i32) {
    %c0_i32 = arith.constant 0 : i32
    %c0_i32_0 = arith.constant 0 : i32
    %c0_i32_1 = arith.constant 0 : i32
    return %c0_i32, %arg0, %c0_i32_0 : i32, i32, i32
  }
  func.func @transform_7(%arg0: i32) -> (i32, i32, i32, i32) {
    %c0_i32 = arith.constant 0 : i32
    %c0_i32_0 = arith.constant 0 : i32
    %c0_i32_1 = arith.constant 0 : i32
    %c0_i32_2 = arith.constant 0 : i32
    return %arg0, %c0_i32, %c0_i32_0, %c0_i32_1 : i32, i32, i32, i32
  }
  func.func @transform_8(%arg0: i32) -> (i32, i32, i32) {
    %c0_i32 = arith.constant 0 : i32
    %c0_i32_0 = arith.constant 0 : i32
    %c0_i32_1 = arith.constant 0 : i32
    return %arg0, %c0_i32, %c0_i32_0 : i32, i32, i32
  }
  func.func @transform_9(%arg0: i32) -> (i32, i32, i32) {
    %c0_i32 = arith.constant 0 : i32
    %c0_i32_0 = arith.constant 0 : i32
    %c0_i32_1 = arith.constant 0 : i32
    return %arg0, %c0_i32, %c0_i32_0 : i32, i32, i32
  }
}

module attributes {stable_mosaic.version = 11 : i64} {
  func.func @_final_bn_residual_kernel(%arg0: i32, %arg1: memref<2x16x128xbf16, #tpu.memory_space<vmem>>, %arg2: memref<1x128xf32, #tpu.memory_space<vmem>>, %arg3: memref<1x128xf32, #tpu.memory_space<vmem>>, %arg4: memref<2x16x8xf32, #tpu.memory_space<vmem>>, %arg5: memref<2x16x8xf32, #tpu.memory_space<vmem>>) attributes {dimension_semantics = [#tpu.dimension_semantics<parallel>], iteration_bounds = array<i64: 3>, scalar_prefetch = 0 : i64, scratch_operands = 0 : i64, tpu.core_type = #tpu.core_type<tc>, window_params = [{transform_indices = @transform_0, window_bounds = array<i64: 2, 16, 128>}, {pipeline_mode = #tpu.pipeline_mode<synchronous>, transform_indices = @transform_1, window_bounds = array<i64: 1, 128>}, {pipeline_mode = #tpu.pipeline_mode<synchronous>, transform_indices = @transform_2, window_bounds = array<i64: 1, 128>}, {transform_indices = @transform_3, window_bounds = array<i64: 2, 16, 8>}, {transform_indices = @transform_4, window_bounds = array<i64: 2, 16, 8>}]} {
    %c0 = arith.constant 0 : index
    %c0_0 = arith.constant 0 : index
    %c0_1 = arith.constant 0 : index
    %0 = vector.load %arg1[%c0, %c0_0, %c0_1] : memref<2x16x128xbf16, #tpu.memory_space<vmem>>, vector<2x16x128xbf16>
    %1 = arith.extf %0 : vector<2x16x128xbf16> to vector<2x16x128xf32>
    %c0_2 = arith.constant 0 : index
    %c0_3 = arith.constant 0 : index
    %2 = vector.load %arg2[%c0_2, %c0_3] : memref<1x128xf32, #tpu.memory_space<vmem>>, vector<1x128xf32>
    %3 = vector.shape_cast %2 : vector<1x128xf32> to vector<1x1x128xf32>
    %4 = vector.broadcast %3 : vector<1x1x128xf32> to vector<2x16x128xf32>
    %5 = arith.mulf %1, %4 : vector<2x16x128xf32>
    %c0_4 = arith.constant 0 : index
    %c0_5 = arith.constant 0 : index
    %6 = vector.load %arg3[%c0_4, %c0_5] : memref<1x128xf32, #tpu.memory_space<vmem>>, vector<1x128xf32>
    %7 = vector.shape_cast %6 : vector<1x128xf32> to vector<1x1x128xf32>
    %8 = vector.broadcast %7 : vector<1x1x128xf32> to vector<2x16x128xf32>
    %9 = arith.addf %5, %8 : vector<2x16x128xf32>
    %c0_6 = arith.constant 0 : index
    %c0_7 = arith.constant 0 : index
    %c0_8 = arith.constant 0 : index
    %10 = vector.load %arg4[%c0_6, %c0_7, %c0_8] : memref<2x16x8xf32, #tpu.memory_space<vmem>>, vector<2x16x8xf32>
    %11 = vector.extract_strided_slice %9 {offsets = [0, 0, 0], sizes = [2, 16, 8], strides = [1, 1, 1]} : vector<2x16x128xf32> to vector<2x16x8xf32>
    %12 = arith.addf %10, %11 : vector<2x16x8xf32>
    %c0_9 = arith.constant 0 : index
    %c0_10 = arith.constant 0 : index
    %c0_11 = arith.constant 0 : index
    %13 = vector.load %arg5[%c0_9, %c0_10, %c0_11] : memref<2x16x8xf32, #tpu.memory_space<vmem>>, vector<2x16x8xf32>
    tpu.vector_store %arg5[%c0_9, %c0_10, %c0_11], %12 {strides = array<i32>} : memref<2x16x8xf32, #tpu.memory_space<vmem>>, vector<2x16x8xf32>,
    return
  }
  func.func @transform_0(%arg0: i32) -> (i32, i32, i32) {
    %c0_i32 = arith.constant 0 : i32
    %c0_i32_0 = arith.constant 0 : i32
    %c0_i32_1 = arith.constant 0 : i32
    return %c0_i32, %arg0, %c0_i32_0 : i32, i32, i32
  }
  func.func @transform_1(%arg0: i32) -> (i32, i32) {
    %c0_i32 = arith.constant 0 : i32
    %c0_i32_0 = arith.constant 0 : i32
    %c0_i32_1 = arith.constant 0 : i32
    return %c0_i32, %c0_i32_0 : i32, i32
  }
  func.func @transform_2(%arg0: i32) -> (i32, i32) {
    %c0_i32 = arith.constant 0 : i32
    %c0_i32_0 = arith.constant 0 : i32
    %c0_i32_1 = arith.constant 0 : i32
    return %c0_i32, %c0_i32_0 : i32, i32
  }
  func.func @transform_3(%arg0: i32) -> (i32, i32, i32) {
    %c0_i32 = arith.constant 0 : i32
    %c0_i32_0 = arith.constant 0 : i32
    %c0_i32_1 = arith.constant 0 : i32
    return %c0_i32, %arg0, %c0_i32_0 : i32, i32, i32
  }
  func.func @transform_4(%arg0: i32) -> (i32, i32, i32) {
    %c0_i32 = arith.constant 0 : i32
    %c0_i32_0 = arith.constant 0 : i32
    %c0_i32_1 = arith.constant 0 : i32
    return %c0_i32, %arg0, %c0_i32_0 : i32, i32, i32
  }
}

module attributes {stable_mosaic.version = 11 : i64} {
  func.func @_conv_stats_kernel(%arg0: i32, %arg1: memref<2x16x128xbf16, #tpu.memory_space<vmem>>, %arg2: memref<1x2x4x128xbf16, #tpu.memory_space<vmem>>, %arg3: memref<1x2x4x128xbf16, #tpu.memory_space<vmem>>, %arg4: memref<1x128xf32, #tpu.memory_space<vmem>>, %arg5: memref<1x128xf32, #tpu.memory_space<vmem>>, %arg6: memref<5x128x128xbf16, #tpu.memory_space<vmem>>, %arg7: memref<2x16x128xbf16, #tpu.memory_space<vmem>>, %arg8: memref<1x2x4x128xbf16, #tpu.memory_space<vmem>>, %arg9: memref<1x1x128xf32, #tpu.memory_space<vmem>>, %arg10: memref<1x1x128xf32, #tpu.memory_space<vmem>>, %arg11: memref<2x20x128xbf16, #tpu.memory_space<vmem>>) attributes {dimension_semantics = [#tpu.dimension_semantics<parallel>], iteration_bounds = array<i64: 3>, scalar_prefetch = 0 : i64, scratch_operands = 1 : i64, tpu.core_type = #tpu.core_type<tc>, window_params = [{transform_indices = @transform_0, window_bounds = array<i64: 2, 16, 128>}, {transform_indices = @transform_1, window_bounds = array<i64: 1, 2, 4, 128>}, {transform_indices = @transform_2, window_bounds = array<i64: 1, 2, 4, 128>}, {pipeline_mode = #tpu.pipeline_mode<synchronous>, transform_indices = @transform_3, window_bounds = array<i64: 1, 128>}, {pipeline_mode = #tpu.pipeline_mode<synchronous>, transform_indices = @transform_4, window_bounds = array<i64: 1, 128>}, {pipeline_mode = #tpu.pipeline_mode<synchronous>, transform_indices = @transform_5, window_bounds = array<i64: 5, 128, 128>}, {transform_indices = @transform_6, window_bounds = array<i64: 2, 16, 128>}, {transform_indices = @transform_7, window_bounds = array<i64: 1, 2, 4, 128>}, {transform_indices = @transform_8, window_bounds = array<i64: 1, 1, 128>}, {transform_indices = @transform_9, window_bounds = array<i64: 1, 1, 128>}]} {
    %c0 = arith.constant 0 : index
    %c0_0 = arith.constant 0 : index
    %c0_1 = arith.constant 0 : index
    %0 = vector.load %arg1[%c0, %c0_0, %c0_1] : memref<2x16x128xbf16, #tpu.memory_space<vmem>>, vector<2x16x128xbf16>
    %1 = arith.extf %0 : vector<2x16x128xbf16> to vector<2x16x128xf32>
    %c0_2 = arith.constant 0 : index
    %c0_3 = arith.constant 0 : index
    %2 = vector.load %arg4[%c0_2, %c0_3] : memref<1x128xf32, #tpu.memory_space<vmem>>, vector<1x128xf32>
    %3 = vector.shape_cast %2 : vector<1x128xf32> to vector<1x1x128xf32>
    %4 = vector.broadcast %3 : vector<1x1x128xf32> to vector<2x16x128xf32>
    %5 = arith.mulf %1, %4 : vector<2x16x128xf32>
    %c0_4 = arith.constant 0 : index
    %c0_5 = arith.constant 0 : index
    %6 = vector.load %arg5[%c0_4, %c0_5] : memref<1x128xf32, #tpu.memory_space<vmem>>, vector<1x128xf32>
    %7 = vector.shape_cast %6 : vector<1x128xf32> to vector<1x1x128xf32>
    %8 = vector.broadcast %7 : vector<1x1x128xf32> to vector<2x16x128xf32>
    %9 = arith.addf %5, %8 : vector<2x16x128xf32>
    %10 = math.tanh %9 : vector<2x16x128xf32>
    %11 = arith.truncf %10 : vector<2x16x128xf32> to vector<2x16x128xbf16>
    %c0_6 = arith.constant 0 : index
    %c2 = arith.constant 2 : index
    %c0_7 = arith.constant 0 : index
    %12 = vector.load %arg11[%c0_6, %c2, %c0_7] : memref<2x20x128xbf16, #tpu.memory_space<vmem>>, vector<2x16x128xbf16>
    tpu.vector_store %arg11[%c0_6, %c2, %c0_7], %11 {strides = array<i32>} : memref<2x20x128xbf16, #tpu.memory_space<vmem>>, vector<2x16x128xbf16>,
    %c2_i32 = arith.constant 2 : i32
    %13 = arith.cmpi eq, %arg0, %c2_i32 : i32
    %14 = arith.extui %13 : i1 to i32
    %c0_i32 = arith.constant 0 : i32
    %15 = arith.cmpi ne, %14, %c0_i32 : i32
    scf.if %15 {
      %c16_i32_57 = arith.constant 16 : i32
      %92 = arith.muli %arg0, %c16_i32_57 : i32
      %93 = tpu.iota {dimensions = array<i32: 1>} : vector<1x16x1xi32>
      %94 = vector.broadcast %92 : i32 to vector<1x16x1xi32>
      %95 = arith.addi %94, %93 : vector<1x16x1xi32>
      %c40_i32_58 = arith.constant 40 : i32
      %96 = vector.broadcast %c40_i32_58 : i32 to vector<1x16x1xi32>
      %97 = arith.cmpi slt, %95, %96 : vector<1x16x1xi32>
      %cst_59 = arith.constant 0.000000e+00 : f32
      %98 = vector.shape_cast %97 : vector<1x16x1xi1> to vector<1x16x1xi1>
      %99 = vector.broadcast %98 : vector<1x16x1xi1> to vector<2x16x128xi1>
      %100 = vector.broadcast %cst_59 : f32 to vector<2x16x128xf32>
      %101 = arith.select %99, %10, %100 : vector<2x16x128xi1>, vector<2x16x128xf32>
      %102 = arith.truncf %101 : vector<2x16x128xf32> to vector<2x16x128xbf16>
      %c0_60 = arith.constant 0 : index
      %c2_61 = arith.constant 2 : index
      %c0_62 = arith.constant 0 : index
      %103 = vector.load %arg11[%c0_60, %c2_61, %c0_62] : memref<2x20x128xbf16, #tpu.memory_space<vmem>>, vector<2x16x128xbf16>
      tpu.vector_store %arg11[%c0_60, %c2_61, %c0_62], %102 {strides = array<i32>} : memref<2x20x128xbf16, #tpu.memory_space<vmem>>, vector<2x16x128xbf16>,
    } else {
    }
    %c0_8 = arith.constant 0 : index
    %c0_9 = arith.constant 0 : index
    %c2_10 = arith.constant 2 : index
    %c0_11 = arith.constant 0 : index
    %16 = vector.load %arg2[%c0_8, %c0_9, %c2_10, %c0_11] : memref<1x2x4x128xbf16, #tpu.memory_space<vmem>>, vector<1x2x2x128xbf16>
    %17 = vector.shape_cast %16 : vector<1x2x2x128xbf16> to vector<2x2x128xbf16>
    %18 = arith.extf %17 : vector<2x2x128xbf16> to vector<2x2x128xf32>
    %c0_12 = arith.constant 0 : index
    %c0_13 = arith.constant 0 : index
    %19 = vector.load %arg4[%c0_12, %c0_13] : memref<1x128xf32, #tpu.memory_space<vmem>>, vector<1x128xf32>
    %20 = vector.shape_cast %19 : vector<1x128xf32> to vector<1x1x128xf32>
    %21 = vector.broadcast %20 : vector<1x1x128xf32> to vector<2x2x128xf32>
    %22 = arith.mulf %18, %21 : vector<2x2x128xf32>
    %c0_14 = arith.constant 0 : index
    %c0_15 = arith.constant 0 : index
    %23 = vector.load %arg5[%c0_14, %c0_15] : memref<1x128xf32, #tpu.memory_space<vmem>>, vector<1x128xf32>
    %24 = vector.shape_cast %23 : vector<1x128xf32> to vector<1x1x128xf32>
    %25 = vector.broadcast %24 : vector<1x1x128xf32> to vector<2x2x128xf32>
    %26 = arith.addf %22, %25 : vector<2x2x128xf32>
    %27 = math.tanh %26 : vector<2x2x128xf32>
    %c0_16 = arith.constant 0 : index
    %c0_17 = arith.constant 0 : index
    %c0_18 = arith.constant 0 : index
    %c0_19 = arith.constant 0 : index
    %28 = vector.load %arg3[%c0_16, %c0_17, %c0_18, %c0_19] : memref<1x2x4x128xbf16, #tpu.memory_space<vmem>>, vector<1x2x2x128xbf16>
    %29 = vector.shape_cast %28 : vector<1x2x2x128xbf16> to vector<2x2x128xbf16>
    %30 = arith.extf %29 : vector<2x2x128xbf16> to vector<2x2x128xf32>
    %c0_20 = arith.constant 0 : index
    %c0_21 = arith.constant 0 : index
    %31 = vector.load %arg4[%c0_20, %c0_21] : memref<1x128xf32, #tpu.memory_space<vmem>>, vector<1x128xf32>
    %32 = vector.shape_cast %31 : vector<1x128xf32> to vector<1x1x128xf32>
    %33 = vector.broadcast %32 : vector<1x1x128xf32> to vector<2x2x128xf32>
    %34 = arith.mulf %30, %33 : vector<2x2x128xf32>
    %c0_22 = arith.constant 0 : index
    %c0_23 = arith.constant 0 : index
    %35 = vector.load %arg5[%c0_22, %c0_23] : memref<1x128xf32, #tpu.memory_space<vmem>>, vector<1x128xf32>
    %36 = vector.shape_cast %35 : vector<1x128xf32> to vector<1x1x128xf32>
    %37 = vector.broadcast %36 : vector<1x1x128xf32> to vector<2x2x128xf32>
    %38 = arith.addf %34, %37 : vector<2x2x128xf32>
    %39 = math.tanh %38 : vector<2x2x128xf32>
    %c1_i32 = arith.constant 1 : i32
    %40 = arith.addi %arg0, %c1_i32 : i32
    %c16_i32 = arith.constant 16 : i32
    %41 = arith.muli %40, %c16_i32 : i32
    %42 = tpu.iota {dimensions = array<i32: 1>} : vector<1x2x1xi32>
    %43 = vector.broadcast %41 : i32 to vector<1x2x1xi32>
    %44 = arith.addi %43, %42 : vector<1x2x1xi32>
    %c40_i32 = arith.constant 40 : i32
    %45 = vector.broadcast %c40_i32 : i32 to vector<1x2x1xi32>
    %46 = arith.cmpi slt, %44, %45 : vector<1x2x1xi32>
    %cst = arith.constant 0.000000e+00 : f32
    %47 = vector.shape_cast %46 : vector<1x2x1xi1> to vector<1x2x1xi1>
    %48 = vector.broadcast %47 : vector<1x2x1xi1> to vector<2x2x128xi1>
    %49 = vector.broadcast %cst : f32 to vector<2x2x128xf32>
    %50 = arith.select %48, %39, %49 : vector<2x2x128xi1>, vector<2x2x128xf32>
    %51 = arith.truncf %27 : vector<2x2x128xf32> to vector<2x2x128xbf16>
    %c0_24 = arith.constant 0 : index
    %c0_25 = arith.constant 0 : index
    %c0_26 = arith.constant 0 : index
    %52 = vector.load %arg11[%c0_24, %c0_25, %c0_26] : memref<2x20x128xbf16, #tpu.memory_space<vmem>>, vector<2x2x128xbf16>
    tpu.vector_store %arg11[%c0_24, %c0_25, %c0_26], %51 {strides = array<i32>} : memref<2x20x128xbf16, #tpu.memory_space<vmem>>, vector<2x2x128xbf16>,
    %53 = arith.truncf %50 : vector<2x2x128xf32> to vector<2x2x128xbf16>
    %c0_27 = arith.constant 0 : index
    %c18 = arith.constant 18 : index
    %c0_28 = arith.constant 0 : index
    %54 = vector.load %arg11[%c0_27, %c18, %c0_28] : memref<2x20x128xbf16, #tpu.memory_space<vmem>>, vector<2x2x128xbf16>
    tpu.vector_store %arg11[%c0_27, %c18, %c0_28], %53 {strides = array<i32>} : memref<2x20x128xbf16, #tpu.memory_space<vmem>>, vector<2x2x128xbf16>,
    %c0_i32_29 = arith.constant 0 : i32
    %55 = arith.cmpi eq, %arg0, %c0_i32_29 : i32
    %56 = arith.extui %55 : i1 to i32
    %c0_i32_30 = arith.constant 0 : i32
    %57 = arith.cmpi ne, %56, %c0_i32_30 : i32
    scf.if %57 {
      %cst_57 = arith.constant 0.000000e+00 : bf16
      %92 = vector.broadcast %cst_57 : bf16 to vector<2x2x128xbf16>
      %c0_58 = arith.constant 0 : index
      %c0_59 = arith.constant 0 : index
      %c0_60 = arith.constant 0 : index
      %93 = vector.load %arg11[%c0_58, %c0_59, %c0_60] : memref<2x20x128xbf16, #tpu.memory_space<vmem>>, vector<2x2x128xbf16>
      tpu.vector_store %arg11[%c0_58, %c0_59, %c0_60], %92 {strides = array<i32>} : memref<2x20x128xbf16, #tpu.memory_space<vmem>>, vector<2x2x128xbf16>,
    } else {
    }
    %c2_i32_31 = arith.constant 2 : i32
    %58 = arith.cmpi eq, %arg0, %c2_i32_31 : i32
    %59 = arith.extui %58 : i1 to i32
    %c0_i32_32 = arith.constant 0 : i32
    %60 = arith.cmpi ne, %59, %c0_i32_32 : i32
    scf.if %60 {
      %cst_57 = arith.constant 0.000000e+00 : bf16
      %92 = vector.broadcast %cst_57 : bf16 to vector<2x2x128xbf16>
      %c0_58 = arith.constant 0 : index
      %c18_59 = arith.constant 18 : index
      %c0_60 = arith.constant 0 : index
      %93 = vector.load %arg11[%c0_58, %c18_59, %c0_60] : memref<2x20x128xbf16, #tpu.memory_space<vmem>>, vector<2x2x128xbf16>
      tpu.vector_store %arg11[%c0_58, %c18_59, %c0_60], %92 {strides = array<i32>} : memref<2x20x128xbf16, #tpu.memory_space<vmem>>, vector<2x2x128xbf16>,
    } else {
    }
    %c0_33 = arith.constant 0 : index
    %c0_34 = arith.constant 0 : index
    %c0_35 = arith.constant 0 : index
    %61 = vector.load %arg11[%c0_33, %c0_34, %c0_35] : memref<2x20x128xbf16, #tpu.memory_space<vmem>>, vector<2x20x128xbf16>
    %c0_36 = arith.constant 0 : index
    %c0_37 = arith.constant 0 : index
    %c0_38 = arith.constant 0 : index
    %62 = vector.load %arg6[%c0_36, %c0_37, %c0_38] : memref<5x128x128xbf16, #tpu.memory_space<vmem>>, vector<1x128x128xbf16>
    %63 = vector.shape_cast %62 : vector<1x128x128xbf16> to vector<128x128xbf16>
    %cst_39 = arith.constant dense<0.000000e+00> : vector<2x20x128xf32>
    %64 = tpu.matmul %61, %63, %cst_39 {dimension_numbers = #tpu.dot_dimension_numbers<[2], [0], [0, 1], [1], [0, 0, 0, 1, 1, 1], [], []>} : vector<2x20x128xbf16>, vector<128x128xbf16>, vector<2x20x128xf32> -> vector<2x20x128xf32>
    %65 = vector.extract_strided_slice %64 {offsets = [0, 0, 0], sizes = [2, 16, 128], strides = [1, 1, 1]} : vector<2x20x128xf32> to vector<2x16x128xf32>
    %c1 = arith.constant 1 : index
    %c0_40 = arith.constant 0 : index
    %c0_41 = arith.constant 0 : index
    %66 = vector.load %arg6[%c1, %c0_40, %c0_41] : memref<5x128x128xbf16, #tpu.memory_space<vmem>>, vector<1x128x128xbf16>
    %67 = vector.shape_cast %66 : vector<1x128x128xbf16> to vector<128x128xbf16>
    %cst_42 = arith.constant dense<0.000000e+00> : vector<2x20x128xf32>
    %68 = tpu.matmul %61, %67, %cst_42 {dimension_numbers = #tpu.dot_dimension_numbers<[2], [0], [0, 1], [1], [0, 0, 0, 1, 1, 1], [], []>} : vector<2x20x128xbf16>, vector<128x128xbf16>, vector<2x20x128xf32> -> vector<2x20x128xf32>
    %69 = vector.extract_strided_slice %68 {offsets = [0, 1, 0], sizes = [2, 16, 128], strides = [1, 1, 1]} : vector<2x20x128xf32> to vector<2x16x128xf32>
    %70 = arith.addf %65, %69 : vector<2x16x128xf32>
    %c2_43 = arith.constant 2 : index
    %c0_44 = arith.constant 0 : index
    %c0_45 = arith.constant 0 : index
    %71 = vector.load %arg6[%c2_43, %c0_44, %c0_45] : memref<5x128x128xbf16, #tpu.memory_space<vmem>>, vector<1x128x128xbf16>
    %72 = vector.shape_cast %71 : vector<1x128x128xbf16> to vector<128x128xbf16>
    %cst_46 = arith.constant dense<0.000000e+00> : vector<2x20x128xf32>
    %73 = tpu.matmul %61, %72, %cst_46 {dimension_numbers = #tpu.dot_dimension_numbers<[2], [0], [0, 1], [1], [0, 0, 0, 1, 1, 1], [], []>} : vector<2x20x128xbf16>, vector<128x128xbf16>, vector<2x20x128xf32> -> vector<2x20x128xf32>
    %74 = vector.extract_strided_slice %73 {offsets = [0, 2, 0], sizes = [2, 16, 128], strides = [1, 1, 1]} : vector<2x20x128xf32> to vector<2x16x128xf32>
    %75 = arith.addf %70, %74 : vector<2x16x128xf32>
    %c3 = arith.constant 3 : index
    %c0_47 = arith.constant 0 : index
    %c0_48 = arith.constant 0 : index
    %76 = vector.load %arg6[%c3, %c0_47, %c0_48] : memref<5x128x128xbf16, #tpu.memory_space<vmem>>, vector<1x128x128xbf16>
    %77 = vector.shape_cast %76 : vector<1x128x128xbf16> to vector<128x128xbf16>
    %cst_49 = arith.constant dense<0.000000e+00> : vector<2x20x128xf32>
    %78 = tpu.matmul %61, %77, %cst_49 {dimension_numbers = #tpu.dot_dimension_numbers<[2], [0], [0, 1], [1], [0, 0, 0, 1, 1, 1], [], []>} : vector<2x20x128xbf16>, vector<128x128xbf16>, vector<2x20x128xf32> -> vector<2x20x128xf32>
    %79 = vector.extract_strided_slice %78 {offsets = [0, 3, 0], sizes = [2, 16, 128], strides = [1, 1, 1]} : vector<2x20x128xf32> to vector<2x16x128xf32>
    %80 = arith.addf %75, %79 : vector<2x16x128xf32>
    %c4 = arith.constant 4 : index
    %c0_50 = arith.constant 0 : index
    %c0_51 = arith.constant 0 : index
    %81 = vector.load %arg6[%c4, %c0_50, %c0_51] : memref<5x128x128xbf16, #tpu.memory_space<vmem>>, vector<1x128x128xbf16>
    %82 = vector.shape_cast %81 : vector<1x128x128xbf16> to vector<128x128xbf16>
    %cst_52 = arith.constant dense<0.000000e+00> : vector<2x20x128xf32>
    %83 = tpu.matmul %61, %82, %cst_52 {dimension_numbers = #tpu.dot_dimension_numbers<[2], [0], [0, 1], [1], [0, 0, 0, 1, 1, 1], [], []>} : vector<2x20x128xbf16>, vector<128x128xbf16>, vector<2x20x128xf32> -> vector<2x20x128xf32>
    %84 = vector.extract_strided_slice %83 {offsets = [0, 4, 0], sizes = [2, 16, 128], strides = [1, 1, 1]} : vector<2x20x128xf32> to vector<2x16x128xf32>
    %85 = arith.addf %80, %84 : vector<2x16x128xf32>
    %c2_i32_53 = arith.constant 2 : i32
    %86 = arith.cmpi slt, %arg0, %c2_i32_53 : i32
    %87 = arith.extui %86 : i1 to i32
    %c0_i32_54 = arith.constant 0 : i32
    %88 = arith.cmpi ne, %87, %c0_i32_54 : i32
    scf.if %88 {
      %92 = arith.truncf %85 : vector<2x16x128xf32> to vector<2x16x128xbf16>
      %c0_57 = arith.constant 0 : index
      %c0_58 = arith.constant 0 : index
      %c0_59 = arith.constant 0 : index
      %93 = vector.load %arg7[%c0_57, %c0_58, %c0_59] : memref<2x16x128xbf16, #tpu.memory_space<vmem>>, vector<2x16x128xbf16>
      tpu.vector_store %arg7[%c0_57, %c0_58, %c0_59], %92 {strides = array<i32>} : memref<2x16x128xbf16, #tpu.memory_space<vmem>>, vector<2x16x128xbf16>,
      %94 = vector.extract_strided_slice %85 {offsets = [0, 0, 0], sizes = [2, 2, 128], strides = [1, 1, 1]} : vector<2x16x128xf32> to vector<2x2x128xf32>
      %95 = arith.truncf %94 : vector<2x2x128xf32> to vector<2x2x128xbf16>
      %c0_60 = arith.constant 0 : index
      %c0_61 = arith.constant 0 : index
      %c0_62 = arith.constant 0 : index
      %c0_63 = arith.constant 0 : index
      %96 = vector.load %arg8[%c0_60, %c0_61, %c0_62, %c0_63] : memref<1x2x4x128xbf16, #tpu.memory_space<vmem>>, vector<1x2x2x128xbf16>
      %97 = vector.shape_cast %96 : vector<1x2x2x128xbf16> to vector<2x2x128xbf16>
      %98 = vector.shape_cast %95 : vector<2x2x128xbf16> to vector<1x2x2x128xbf16>
      tpu.vector_store %arg8[%c0_60, %c0_61, %c0_62, %c0_63], %98 {strides = array<i32>} : memref<1x2x4x128xbf16, #tpu.memory_space<vmem>>, vector<1x2x2x128xbf16>,
      %99 = vector.extract_strided_slice %85 {offsets = [0, 14, 0], sizes = [2, 2, 128], strides = [1, 1, 1]} : vector<2x16x128xf32> to vector<2x2x128xf32>
      %100 = arith.truncf %99 : vector<2x2x128xf32> to vector<2x2x128xbf16>
      %c0_64 = arith.constant 0 : index
      %c0_65 = arith.constant 0 : index
      %c2_66 = arith.constant 2 : index
      %c0_67 = arith.constant 0 : index
      %101 = vector.load %arg8[%c0_64, %c0_65, %c2_66, %c0_67] : memref<1x2x4x128xbf16, #tpu.memory_space<vmem>>, vector<1x2x2x128xbf16>
      %102 = vector.shape_cast %101 : vector<1x2x2x128xbf16> to vector<2x2x128xbf16>
      %103 = vector.shape_cast %100 : vector<2x2x128xbf16> to vector<1x2x2x128xbf16>
      tpu.vector_store %arg8[%c0_64, %c0_65, %c2_66, %c0_67], %103 {strides = array<i32>} : memref<1x2x4x128xbf16, #tpu.memory_space<vmem>>, vector<1x2x2x128xbf16>,
      %cst_68 = arith.constant dense<0.000000e+00> : vector<128xf32>
      %104 = vector.multi_reduction <add>, %85, %cst_68 [0, 1] : vector<2x16x128xf32> to vector<128xf32>
      %105 = vector.shape_cast %104 : vector<128xf32> to vector<1x1x128xf32>
      %c0_69 = arith.constant 0 : index
      %c0_70 = arith.constant 0 : index
      %c0_71 = arith.constant 0 : index
      %106 = vector.load %arg9[%c0_69, %c0_70, %c0_71] : memref<1x1x128xf32, #tpu.memory_space<vmem>>, vector<1x1x128xf32>
      tpu.vector_store %arg9[%c0_69, %c0_70, %c0_71], %105 {strides = array<i32>} : memref<1x1x128xf32, #tpu.memory_space<vmem>>, vector<1x1x128xf32>,
      %107 = arith.mulf %85, %85 : vector<2x16x128xf32>
      %cst_72 = arith.constant dense<0.000000e+00> : vector<128xf32>
      %108 = vector.multi_reduction <add>, %107, %cst_72 [0, 1] : vector<2x16x128xf32> to vector<128xf32>
      %109 = vector.shape_cast %108 : vector<128xf32> to vector<1x1x128xf32>
      %c0_73 = arith.constant 0 : index
      %c0_74 = arith.constant 0 : index
      %c0_75 = arith.constant 0 : index
      %110 = vector.load %arg10[%c0_73, %c0_74, %c0_75] : memref<1x1x128xf32, #tpu.memory_space<vmem>>, vector<1x1x128xf32>
      tpu.vector_store %arg10[%c0_73, %c0_74, %c0_75], %109 {strides = array<i32>} : memref<1x1x128xf32, #tpu.memory_space<vmem>>, vector<1x1x128xf32>,
    } else {
    }
    %c2_i32_55 = arith.constant 2 : i32
    %89 = arith.cmpi eq, %arg0, %c2_i32_55 : i32
    %90 = arith.extui %89 : i1 to i32
    %c0_i32_56 = arith.constant 0 : i32
    %91 = arith.cmpi ne, %90, %c0_i32_56 : i32
    scf.if %91 {
      %c16_i32_57 = arith.constant 16 : i32
      %92 = arith.muli %arg0, %c16_i32_57 : i32
      %93 = tpu.iota {dimensions = array<i32: 1>} : vector<1x16x1xi32>
      %94 = vector.broadcast %92 : i32 to vector<1x16x1xi32>
      %95 = arith.addi %94, %93 : vector<1x16x1xi32>
      %c40_i32_58 = arith.constant 40 : i32
      %96 = vector.broadcast %c40_i32_58 : i32 to vector<1x16x1xi32>
      %97 = arith.cmpi slt, %95, %96 : vector<1x16x1xi32>
      %cst_59 = arith.constant 0.000000e+00 : f32
      %98 = vector.shape_cast %97 : vector<1x16x1xi1> to vector<1x16x1xi1>
      %99 = vector.broadcast %98 : vector<1x16x1xi1> to vector<2x16x128xi1>
      %100 = vector.broadcast %cst_59 : f32 to vector<2x16x128xf32>
      %101 = arith.select %99, %85, %100 : vector<2x16x128xi1>, vector<2x16x128xf32>
      %102 = arith.truncf %101 : vector<2x16x128xf32> to vector<2x16x128xbf16>
      %c0_60 = arith.constant 0 : index
      %c0_61 = arith.constant 0 : index
      %c0_62 = arith.constant 0 : index
      %103 = vector.load %arg7[%c0_60, %c0_61, %c0_62] : memref<2x16x128xbf16, #tpu.memory_space<vmem>>, vector<2x16x128xbf16>
      tpu.vector_store %arg7[%c0_60, %c0_61, %c0_62], %102 {strides = array<i32>} : memref<2x16x128xbf16, #tpu.memory_space<vmem>>, vector<2x16x128xbf16>,
      %104 = vector.extract_strided_slice %101 {offsets = [0, 0, 0], sizes = [2, 2, 128], strides = [1, 1, 1]} : vector<2x16x128xf32> to vector<2x2x128xf32>
      %105 = arith.truncf %104 : vector<2x2x128xf32> to vector<2x2x128xbf16>
      %c0_63 = arith.constant 0 : index
      %c0_64 = arith.constant 0 : index
      %c0_65 = arith.constant 0 : index
      %c0_66 = arith.constant 0 : index
      %106 = vector.load %arg8[%c0_63, %c0_64, %c0_65, %c0_66] : memref<1x2x4x128xbf16, #tpu.memory_space<vmem>>, vector<1x2x2x128xbf16>
      %107 = vector.shape_cast %106 : vector<1x2x2x128xbf16> to vector<2x2x128xbf16>
      %108 = vector.shape_cast %105 : vector<2x2x128xbf16> to vector<1x2x2x128xbf16>
      tpu.vector_store %arg8[%c0_63, %c0_64, %c0_65, %c0_66], %108 {strides = array<i32>} : memref<1x2x4x128xbf16, #tpu.memory_space<vmem>>, vector<1x2x2x128xbf16>,
      %109 = vector.extract_strided_slice %101 {offsets = [0, 14, 0], sizes = [2, 2, 128], strides = [1, 1, 1]} : vector<2x16x128xf32> to vector<2x2x128xf32>
      %110 = arith.truncf %109 : vector<2x2x128xf32> to vector<2x2x128xbf16>
      %c0_67 = arith.constant 0 : index
      %c0_68 = arith.constant 0 : index
      %c2_69 = arith.constant 2 : index
      %c0_70 = arith.constant 0 : index
      %111 = vector.load %arg8[%c0_67, %c0_68, %c2_69, %c0_70] : memref<1x2x4x128xbf16, #tpu.memory_space<vmem>>, vector<1x2x2x128xbf16>
      %112 = vector.shape_cast %111 : vector<1x2x2x128xbf16> to vector<2x2x128xbf16>
      %113 = vector.shape_cast %110 : vector<2x2x128xbf16> to vector<1x2x2x128xbf16>
      tpu.vector_store %arg8[%c0_67, %c0_68, %c2_69, %c0_70], %113 {strides = array<i32>} : memref<1x2x4x128xbf16, #tpu.memory_space<vmem>>, vector<1x2x2x128xbf16>,
      %cst_71 = arith.constant dense<0.000000e+00> : vector<128xf32>
      %114 = vector.multi_reduction <add>, %101, %cst_71 [0, 1] : vector<2x16x128xf32> to vector<128xf32>
      %115 = vector.shape_cast %114 : vector<128xf32> to vector<1x1x128xf32>
      %c0_72 = arith.constant 0 : index
      %c0_73 = arith.constant 0 : index
      %c0_74 = arith.constant 0 : index
      %116 = vector.load %arg9[%c0_72, %c0_73, %c0_74] : memref<1x1x128xf32, #tpu.memory_space<vmem>>, vector<1x1x128xf32>
      tpu.vector_store %arg9[%c0_72, %c0_73, %c0_74], %115 {strides = array<i32>} : memref<1x1x128xf32, #tpu.memory_space<vmem>>, vector<1x1x128xf32>,
      %117 = arith.mulf %101, %101 : vector<2x16x128xf32>
      %cst_75 = arith.constant dense<0.000000e+00> : vector<128xf32>
      %118 = vector.multi_reduction <add>, %117, %cst_75 [0, 1] : vector<2x16x128xf32> to vector<128xf32>
      %119 = vector.shape_cast %118 : vector<128xf32> to vector<1x1x128xf32>
      %c0_76 = arith.constant 0 : index
      %c0_77 = arith.constant 0 : index
      %c0_78 = arith.constant 0 : index
      %120 = vector.load %arg10[%c0_76, %c0_77, %c0_78] : memref<1x1x128xf32, #tpu.memory_space<vmem>>, vector<1x1x128xf32>
      tpu.vector_store %arg10[%c0_76, %c0_77, %c0_78], %119 {strides = array<i32>} : memref<1x1x128xf32, #tpu.memory_space<vmem>>, vector<1x1x128xf32>,
    } else {
    }
    return
  }
  func.func @transform_0(%arg0: i32) -> (i32, i32, i32) {
    %c0_i32 = arith.constant 0 : i32
    %c0_i32_0 = arith.constant 0 : i32
    %c0_i32_1 = arith.constant 0 : i32
    return %c0_i32, %arg0, %c0_i32_0 : i32, i32, i32
  }
  func.func @transform_1(%arg0: i32) -> (i32, i32, i32, i32) {
    %c1_i32 = arith.constant 1 : i32
    %0 = arith.subi %arg0, %c1_i32 : i32
    %c0_i32 = arith.constant 0 : i32
    %1 = arith.maxsi %0, %c0_i32 : i32
    %c0_i32_0 = arith.constant 0 : i32
    %c0_i32_1 = arith.constant 0 : i32
    %c0_i32_2 = arith.constant 0 : i32
    %c0_i32_3 = arith.constant 0 : i32
    return %1, %c0_i32_0, %c0_i32_1, %c0_i32_2 : i32, i32, i32, i32
  }
  func.func @transform_2(%arg0: i32) -> (i32, i32, i32, i32) {
    %c1_i32 = arith.constant 1 : i32
    %0 = arith.addi %arg0, %c1_i32 : i32
    %c2_i32 = arith.constant 2 : i32
    %1 = arith.minsi %0, %c2_i32 : i32
    %c0_i32 = arith.constant 0 : i32
    %c0_i32_0 = arith.constant 0 : i32
    %c0_i32_1 = arith.constant 0 : i32
    %c0_i32_2 = arith.constant 0 : i32
    return %1, %c0_i32, %c0_i32_0, %c0_i32_1 : i32, i32, i32, i32
  }
  func.func @transform_3(%arg0: i32) -> (i32, i32) {
    %c0_i32 = arith.constant 0 : i32
    %c0_i32_0 = arith.constant 0 : i32
    %c0_i32_1 = arith.constant 0 : i32
    return %c0_i32, %c0_i32_0 : i32, i32
  }
  func.func @transform_4(%arg0: i32) -> (i32, i32) {
    %c0_i32 = arith.constant 0 : i32
    %c0_i32_0 = arith.constant 0 : i32
    %c0_i32_1 = arith.constant 0 : i32
    return %c0_i32, %c0_i32_0 : i32, i32
  }
  func.func @transform_5(%arg0: i32) -> (i32, i32, i32) {
    %c0_i32 = arith.constant 0 : i32
    %c0_i32_0 = arith.constant 0 : i32
    %c0_i32_1 = arith.constant 0 : i32
    %c0_i32_2 = arith.constant 0 : i32
    return %c0_i32, %c0_i32_0, %c0_i32_1 : i32, i32, i32
  }
  func.func @transform_6(%arg0: i32) -> (i32, i32, i32) {
    %c0_i32 = arith.constant 0 : i32
    %c0_i32_0 = arith.constant 0 : i32
    %c0_i32_1 = arith.constant 0 : i32
    return %c0_i32, %arg0, %c0_i32_0 : i32, i32, i32
  }
  func.func @transform_7(%arg0: i32) -> (i32, i32, i32, i32) {
    %c0_i32 = arith.constant 0 : i32
    %c0_i32_0 = arith.constant 0 : i32
    %c0_i32_1 = arith.constant 0 : i32
    %c0_i32_2 = arith.constant 0 : i32
    return %arg0, %c0_i32, %c0_i32_0, %c0_i32_1 : i32, i32, i32, i32
  }
  func.func @transform_8(%arg0: i32) -> (i32, i32, i32) {
    %c0_i32 = arith.constant 0 : i32
    %c0_i32_0 = arith.constant 0 : i32
    %c0_i32_1 = arith.constant 0 : i32
    return %arg0, %c0_i32, %c0_i32_0 : i32, i32, i32
  }
  func.func @transform_9(%arg0: i32) -> (i32, i32, i32) {
    %c0_i32 = arith.constant 0 : i32
    %c0_i32_0 = arith.constant 0 : i32
    %c0_i32_1 = arith.constant 0 : i32
    return %arg0, %c0_i32, %c0_i32_0 : i32, i32, i32
  }
}

</mosaic_0001>

<bundles_post_ra>
// kernel: postnet_forward.13
= control target key start
LH: loop header
LB: loop body
LE: loop exit
PB: predicated region body
PF: predicated region fallthrough
CT: control target
= control target key end

     0   :  { %s1135_s15 = smov 0   ;;  %s1137_s16 = smov 0   ;;  %s1310_s0 = inlined_call_operand.vmem [shape: bf16[2,48,128], index: 0, kind: input, shape index: {}]   ;;  %s1311_s1 = inlined_call_operand.vmem [shape: f32[1,128], index: 1, kind: input, shape index: {}]   ;;  %s1312_s2 = inlined_call_operand.vmem [shape: f32[1,128], index: 2, kind: input, shape index: {}]   ;;  %s1313_s3 = inlined_call_operand.vmem [shape: f32[2,40,8], index: 3, kind: input, shape index: {}]   ;;  %s1314_s4 = inlined_call_operand.vmem [shape: f32[2,40,8], index: 4, kind: output, shape index: {}]  }
   0x1   :  { %s1139_s17 = smov 0  }
   0x2 LB: > { %s1151_s18 = sadd.s32 4294967295, %s1044_s17   ;;  %s1154_s19 = sadd.s32 1, %s1044_s17   ;;  %s1044_s17 = sphi %s1139_s17, %s1325_s17   ;;  %s1040_s16 = sphi %s1137_s16, %s1324_s16   ;;  %s1036_s15 = sphi %s1135_s15, %s1323_s15  }
   0x3   : > { %s18_s20 = ssub.s32 %s1044_s17, %s1154_s19  ;;  %s21_s21 = sadd.s32 1, %s1040_s16 }
   0x4   : > { %p19_p0 = scmp.eq.s32.totalorder %s18_s20, 0  ;;  %p28_p1 = scmp.ne.s32.totalorder %s1040_s16, %s1036_s15 }
   0x5   : > { %p29_p2 = scmp.eq.s32.totalorder %s1044_s17, 0  ;;  %p126_p3 = scmp.eq.s32.totalorder %s1151_s18, 2 }
   0x6   : > { %s1164_s22 = scalar_select %p19_p0, %s1040_s16, %s21_s21  }
   0x7   : > { %p1166_p4 = por %p29_p2, %p28_p1  ;;  %p1170_p5 = por %p126_p3, %p28_p1 }
   0x8   : > { %p748_p6 = scmp.ge.s32.totalorder %s1044_s17, 3 }
   0xa   : > { %154 = sbr.rel (%p748_p6) target bundleno = 65 (0x41), region = 24 }
   0xf   : > { %157 = sbr.rel (!%p1166_p4) target bundleno = 21 (0x15), region = 28  ;;  %s159_s25 = sand.u32 (%p1166_p4), 1, %s1040_s16  }
  0x10   : > { %s788_s26 = sshll.u32 (%p1166_p4), %s1044_s17, 3  ;;  %s749_s27 = sshll.u32 (%p1166_p4), %s159_s25, 4 }
  0x11   : > { %s164_s30 = scalar_lea.vmem (%p1166_p4), %s1310_s0, %s788_s26  ;;  %s161_s5 = scalar_lea.vmem (%p1166_p4), [#allocation2], %s749_s27 }
  0x12   : > { %v181_v0 = vld [vmem:[%s164_s30] sm:$0xff] (%p1166_p4)   ;;  %v185_v1 = vld [vmem:[%s164_s30 + $0x18] sm:$0xff] (%p1166_p4)  }
  0x13   : > { %182 = vst [vmem:[%s161_s5] sm:$0xff] (%p1166_p4), %v181_v0  }
  0x14   : > { %186 = vst [vmem:[%s161_s5 + $0x8] sm:$0xff] %v185_v1  }
  0x15 PF: > { %220 = sbr.rel (!%p1166_p4) target bundleno = 65 (0x41), region = 69  ;;  %s222_s6 = sand.u32 (%p1166_p4), 1, %s1040_s16  }
  0x16   : > { %s753_s7 = sshll.u32 (%p1166_p4), %s1044_s17, 1  ;;  %s752_s8 = sshll.u32 (%p1166_p4), %s222_s6, 5 }
  0x17   : > { %s226_s9 = ssub.s32 (%p1166_p4), 5, %s753_s7  ;;  %s789_s10 = sshll.u32 (%p1166_p4), %s1044_s17, 4 }
  0x18   : > { %p227_p7 = scmp.lt.s32.totalorder (%p1166_p4), %s226_s9, 2  ;;  %s1192_s13 = scalar_lea.vmem (%p1166_p4), %s1313_s3, %s789_s10  }
  0x19   : > { %s1195_s20 = scalar_lea.vmem (%p1166_p4), [#allocation3], %s752_s8  }
  0x1a   : > { %s1327_s9 = smov (!%p227_p7, %s226_s9), 2 }
  0x1b   : > { %s754_s14 = sshll.u32 %s1327_s9, 4 }
  0x1c   : > { %p757_p8 = scmp.eq.s32.totalorder %s754_s14, 0 }
  0x1d   : > { %s1198_s21 = sshrl.u32 (!%p757_p8), %s1327_s9, 1 }
  0x1e   : > { %235 = sbr.rel (%p757_p8) target bundleno = 65 (0x41), region = 73  ;;  %p758_p9 = scmp.le.s32.totalorder (!%p757_p8), %s1198_s21, 0 }
  0x23   : > { %668 = sbr.rel (%p758_p9) target bundleno = 48 (0x30), region = 234  ;;  %s1317_s23 = smov (!%p758_p9), %s1195_s20 }
  0x24   : > { %s1318_s25 = smov (!%p758_p9), %s1192_s13  ;;  %s1207_s26 = smov (!%p758_p9), 0  }
  0x25   : > { %s1058_s27 = smov (!%p758_p9), 0  }
  0x28 LB: >> { %v306_v2 = vld [vmem:[%s1052_s25] sm:$0xff]  ;;  %v308_v3 = vld [vmem:[%s1052_s25 + $0x8] sm:$0xff]  ;;  %s314_s28 = sadd.s32 1, %s1056_s26  ;;  %v312_v5 = vld [vmem:[%s1052_s25 + $0x30] sm:$0xff]  ;;  %s300_s27 = sadd.s32 1, %s1060_s27   ;;  %s1060_s27 = sphi %s1058_s27, %s300_s27   ;;  %s1056_s26 = sphi %s1207_s26, %s1319_s26   ;;  %s1052_s25 = sphi %s1318_s25, %s319_s25   ;;  %s1048_s23 = sphi %s1317_s23, %s320_s23  }
  0x29   : >> { %v310_v4 = vld [vmem:[%s1052_s25 + $0x28] sm:$0xff]  ;;  %307 = vst [vmem:[%s1048_s23] sm:$0xff] %v306_v2  ;;  %p315_p10 = scmp.ge.s32.totalorder %s314_s28, %s1198_s21  ;;  %p299_p11 = scmp.ge.s32.totalorder %s300_s27, %s1198_s21 }
  0x2a   : >> { %309 = vst [vmem:[%s1048_s23 + $0x8] sm:$0xff] %v308_v3 }
  0x2b   : >> { %311 = vst [vmem:[%s1048_s23 + $0x10] sm:$0xff] %v310_v4  ;;  %s1329_s28 = smov (%p315_p10, %s314_s28), 0  ;;  %302 = sbr.rel (!%p299_p11) target bundleno = 40 (0x28), region = 240 }
  0x2c   : >> { %313 = vst [vmem:[%s1048_s23 + $0x18] sm:$0xff] %v312_v5  ;;  %s759_s29 = sshll.u32 %s1329_s28, 4  ;;  %s1319_s26 = smov %s1329_s28 }
  0x2d   : >> { %s319_s25 = scalar_lea.vmem %s1192_s13, %s759_s29   ;;  %s320_s23 = scalar_lea.vmem %s1195_s20, %s759_s29 [#allocation3]  }
  0x30 PF: > { %s1223_s30 = sand.u32 1, %s1327_s9   ;;  %s790_s5 = sshll.u32 %s1198_s21, 4 }
  0x31   : > { %s1227_s6 = scalar_lea.vmem %s1192_s13, %s790_s5   ;;  %s327_s7 = scalar_lea.vmem %s1195_s20, %s790_s5 [#allocation3]  }
  0x32   : > { %p764_p12 = scmp.le.s32.totalorder %s1223_s30, 0 }
  0x33   : > { %s1062_s8 = smov (!%p764_p12), %s327_s7   ;;  %s1066_s10 = smov (!%p764_p12), %s1227_s6  }
  0x34   : > { %682 = sbr.rel (%p764_p12) target bundleno = 65 (0x41), region = 245  ;;  %s1070_s11 = smov (!%p764_p12), 0  }
  0x35   : > { %s1074_s12 = smov (!%p764_p12), 0  }
  0x39 LB: >> { %v337_v6 = vld [vmem:[%s1068_s10] sm:$0xff]  ;;  %v339_v7 = vld [vmem:[%s1068_s10 + $0x28] sm:$0xff]  ;;  %s341_s9 = sadd.s32 1, %s1072_s11  ;;  %s331_s12 = sadd.s32 1, %s1076_s12   ;;  %s1076_s12 = sphi %s1074_s12, %s331_s12   ;;  %s1072_s11 = sphi %s1070_s11, %s1071_s11   ;;  %s1068_s10 = sphi %s1066_s10, %s346_s10   ;;  %s1064_s8 = sphi %s1062_s8, %s347_s8  }
  0x3a   : >> { %338 = vst [vmem:[%s1064_s8] sm:$0xff] %v337_v6  ;;  %p342_p13 = scmp.ge.s32.totalorder %s341_s9, %s1223_s30  ;;  %p330_p0 = scmp.ge.s32.totalorder %s331_s12, %s1223_s30 }
  0x3b   : >> { %340 = vst [vmem:[%s1064_s8 + $0x10] sm:$0xff] %v339_v7 }
  0x3c   : >> { %s1331_s9 = smov (%p342_p13, %s341_s9), 0  ;;  %333 = sbr.rel (!%p330_p0) target bundleno = 57 (0x39), region = 251 }
  0x3d   : >> { %s765_s13 = sshll.u32 %s1331_s9, 3  ;;  %s1071_s11 = smov %s1331_s9  }
  0x3e   : >> { %s346_s10 = scalar_lea.vmem %s1227_s6, %s765_s13   ;;  %s347_s8 = scalar_lea.vmem %s327_s7, %s765_s13 [#allocation3]  }
  0x41 PF: > { %p767_p1 = scmp.ge.s32.totalorder %s1044_s17, 1  ;;  %p352_p2 = scmp.lt.s32.totalorder %s1044_s17, 4 }
  0x43   : > { %p353_p3 = pnand %p767_p1, %p352_p2 }
  0x44   : > { %s359_s14 = sand.u32 (!%p353_p3), 1, %s1036_s15  }
  0x45   : > { %356 = sbr.rel (%p353_p3) target bundleno = 126 (0x7e), region = 121  ;;  %s768_s20 = sshll.u32 (!%p353_p3), %s359_s14, 4 }
  0x46   : > { %s769_s21 = sshll.u32 (!%p353_p3), %s359_s14, 5  ;;  %s361_s26 = scalar_lea.vmem (!%p353_p3), [#allocation2], %s768_s20 }
  0x47   : > { %s368_s15 = scalar_lea.vmem (!%p353_p3), [#allocation3], %s769_s21  ;;  %s1244_s17 = scalar_lea.vmem (!%p353_p3), [#allocation4], %s769_s21  }
  0x4a   : > { %v956_v8 = vld [vmem:[%s1311_s1] ss:$0 sm:$0xff]  ;;  %v803_v10 = vld [vmem:[%s361_s26 + $0x8] sm:$0xff]   ;;  %v431_v22 = vld [vmem:[%s368_s15 + $0x10] sm:$0xff]  ;;  %vm437_vm0 = vcmask 64512   ;;  %s772_s29 = sshll.u32 (%p1170_p5), %s1151_s18, 1 }
  0x4b   : > { %v796_v9 = vld [vmem:[%s361_s26] sm:$0xff]   ;;  %v801_v13 = vunpack.c.l.bf16 %v803_v10  ;;  %v802_v14 = vunpack.c.h.bf16 %v803_v10  ;;  %v430_v21 = vld [vmem:[%s368_s15 + $0x8] sm:$0xff]  ;;  %v432_v27 = vld [vmem:[%s368_s15 + $0x18] sm:$0xff]  ;;  %s792_s30 = sshll.u32 (%p1170_p5), %s1151_s18, 4  ;;  %s450_s5 = ssub.s32 (%p1170_p5), 5, %s772_s29 }
  0x4c   : > { %v797_v11 = vunpack.c.l.bf16 %v796_v9  ;;  %v798_v12 = vunpack.c.h.bf16 %v796_v9  ;;  %v957_v15 = vld [vmem:[%s1312_s2] ss:$0 sm:$0xff]  ;;  %s1257_s8 = scalar_lea.vmem (%p1170_p5), %s1314_s4, %s792_s30   ;;  %p451_p4 = scmp.lt.s32.totalorder (%p1170_p5), %s450_s5, 2 }
  0x4d   : > { %v419_v18 = vmul.f32 %v956_v8, %v801_v13  ;;  %v420_v19 = vmul.f32 %v956_v8, %v802_v14  ;;  %v429_v20 = vld [vmem:[%s368_s15] sm:$0xff] }
  0x4e   : > { %v417_v16 = vmul.f32 %v956_v8, %v797_v11  ;;  %v418_v17 = vmul.f32 %v956_v8, %v798_v12 }
  0x4f   : > { %v427_v25 = vadd.f32 %v957_v15, %v419_v18  ;;  %v428_v26 = vadd.f32 %v957_v15, %v420_v19 }
  0x50   : > { %v425_v23 = vadd.f32 %v957_v15, %v417_v16  ;;  %v426_v24 = vadd.f32 %v957_v15, %v418_v17 }
  0x51   : > { %v435_v30 = vadd.f32 %v431_v22, %v427_v25  ;;  %v436_v31 = vadd.f32 %v432_v27, %v428_v26 }
  0x52   : > { %v433_v28 = vadd.f32 %v429_v20, %v425_v23  ;;  %v434_v29 = vadd.f32 %v430_v21, %v426_v24  ;;  %448 = sbr.rel (!%p1170_p5) target bundleno = 126 (0x7e), region = 133 }
  0x53   : > { %440 = vst.msk [vmem:[%s1244_s17 + $0x10] sm:$0xff] %vm437_vm0, %v435_v30 }
  0x54   : > { %438 = vst.msk [vmem:[%s1244_s17] sm:$0xff] %vm437_vm0, %v433_v28 }
  0x55   : > { %439 = vst.msk [vmem:[%s1244_s17 + $0x8] sm:$0xff] %vm437_vm0, %v434_v29 }
  0x56   : > { %441 = vst.msk [vmem:[%s1244_s17 + $0x18] sm:$0xff] %vm437_vm0, %v436_v31 }
  0x57   : > { %s1333_s5 = smov (!%p451_p4, %s450_s5), 2 }
  0x58   : > { %s773_s10 = sshll.u32 %s1333_s5, 4 }
  0x59   : > { %p776_p6 = scmp.eq.s32.totalorder %s773_s10, 0 }
  0x5a   : > { %s1263_s24 = sshrl.u32 (!%p776_p6), %s1333_s5, 1 }
  0x5b   : > { %459 = sbr.rel (%p776_p6) target bundleno = 126 (0x7e), region = 137  ;;  %p777_p5 = scmp.le.s32.totalorder (!%p776_p6), %s1263_s24, 0 }
  0x60   : > { %696 = sbr.rel (%p777_p5) target bundleno = 109 (0x6d), region = 256  ;;  %s1320_s18 = smov (!%p777_p5), %s1257_s8 }
  0x61   : > { %s1321_s11 = smov (!%p777_p5), %s1244_s17  ;;  %s1272_s12 = smov (!%p777_p5), 0  }
  0x62   : > { %s1090_s9 = smov (!%p777_p5), 0  }
  0x65 LB: >> { %v530_v32 = vld [vmem:[%s1084_s11] sm:$0xff]  ;;  %v532_v33 = vld [vmem:[%s1084_s11 + $0x8] sm:$0xff]  ;;  %v534_v34 = vld [vmem:[%s1084_s11 + $0x10] sm:$0xff]  ;;  %s538_s13 = sadd.s32 1, %s1088_s12  ;;  %s524_s9 = sadd.s32 1, %s1092_s9   ;;  %s1092_s9 = sphi %s1090_s9, %s524_s9   ;;  %s1088_s12 = sphi %s1272_s12, %s1322_s12   ;;  %s1084_s11 = sphi %s1321_s11, %s543_s11   ;;  %s1080_s18 = sphi %s1320_s18, %s544_s18  }
  0x66   : >> { %531 = vst [vmem:[%s1080_s18] sm:$0xff] %v530_v32  ;;  %v536_v35 = vld [vmem:[%s1084_s11 + $0x18] sm:$0xff]  ;;  %p539_p7 = scmp.ge.s32.totalorder %s538_s13, %s1263_s24  ;;  %p523_p8 = scmp.ge.s32.totalorder %s524_s9, %s1263_s24 }
  0x67   : >> { %533 = vst [vmem:[%s1080_s18 + $0x8] sm:$0xff] %v532_v33 }
  0x68   : >> { %535 = vst [vmem:[%s1080_s18 + $0x28] sm:$0xff] %v534_v34  ;;  %s1335_s13 = smov (%p539_p7, %s538_s13), 0  ;;  %526 = sbr.rel (!%p523_p8) target bundleno = 101 (0x65), region = 262 }
  0x69   : >> { %537 = vst [vmem:[%s1080_s18 + $0x30] sm:$0xff] %v536_v35  ;;  %s778_s14 = sshll.u32 %s1335_s13, 4  ;;  %s1322_s12 = smov %s1335_s13 }
  0x6a   : >> { %s543_s11 = scalar_lea.vmem %s1244_s17, %s778_s14 [#allocation4]   ;;  %s544_s18 = scalar_lea.vmem %s1257_s8, %s778_s14  }
  0x6d PF: > { %s1288_s20 = sand.u32 1, %s1333_s5   ;;  %s793_s21 = sshll.u32 %s1263_s24, 4 }
  0x6e   : > { %s1292_s23 = scalar_lea.vmem %s1244_s17, %s793_s21 [#allocation4]   ;;  %s551_s25 = scalar_lea.vmem %s1257_s8, %s793_s21  }
  0x6f   : > { %p783_p9 = scmp.le.s32.totalorder %s1288_s20, 0 }
  0x70   : > { %s1094_s26 = smov (!%p783_p9), %s551_s25   ;;  %s1098_s27 = smov (!%p783_p9), %s1292_s23  }
  0x71   : > { %710 = sbr.rel (%p783_p9) target bundleno = 126 (0x7e), region = 267  ;;  %s1102_s28 = smov (!%p783_p9), 0  }
  0x72   : > { %s1106_s15 = smov (!%p783_p9), 0  }
  0x76 LB: >> { %v561_v36 = vld [vmem:[%s1100_s27] sm:$0xff]  ;;  %v563_v37 = vld [vmem:[%s1100_s27 + $0x10] sm:$0xff]  ;;  %s565_s17 = sadd.s32 1, %s1104_s28  ;;  %s555_s15 = sadd.s32 1, %s1108_s15   ;;  %s1108_s15 = sphi %s1106_s15, %s555_s15   ;;  %s1104_s28 = sphi %s1102_s28, %s1103_s28   ;;  %s1100_s27 = sphi %s1098_s27, %s570_s27   ;;  %s1096_s26 = sphi %s1094_s26, %s571_s26  }
  0x77   : >> { %562 = vst [vmem:[%s1096_s26] sm:$0xff] %v561_v36  ;;  %p566_p10 = scmp.ge.s32.totalorder %s565_s17, %s1288_s20  ;;  %p554_p11 = scmp.ge.s32.totalorder %s555_s15, %s1288_s20 }
  0x78   : >> { %564 = vst [vmem:[%s1096_s26 + $0x28] sm:$0xff] %v563_v37 }
  0x79   : >> { %s1337_s17 = smov (%p566_p10, %s565_s17), 0  ;;  %557 = sbr.rel (!%p554_p11) target bundleno = 118 (0x76), region = 273 }
  0x7a   : >> { %s784_s29 = sshll.u32 %s1337_s17, 3  ;;  %s1103_s28 = smov %s1337_s17  }
  0x7b   : >> { %s570_s27 = scalar_lea.vmem %s1292_s23, %s784_s29 [#allocation4]   ;;  %s571_s26 = scalar_lea.vmem %s551_s25, %s784_s29  }
  0x7e PF: > { %p11_p12 = scmp.ge.s32.totalorder %s1154_s19, 5   ;;  %s1323_s15 = smov %s1040_s16 }
  0x7f   : > { %s1324_s16 = smov %s1164_s22  ;;  %s1325_s17 = smov %s1154_s19 }
  0x80   :  { %13 = sbr.rel (!%p11_p12) target bundleno = 2 (0x2), region = 284 }

// kernel: postnet_forward.8
= control target key start
LH: loop header
LB: loop body
LE: loop exit
PB: predicated region body
PF: predicated region fallthrough
CT: control target
= control target key end

     0   :  { %15 = vsyncpa [#allocation5], 0  ;;  %s2452_s30 = smov 0   ;;  %s2454_s10 = smov 0   ;;  %s2894_s0 = inlined_call_operand.vmem [shape: bf16[2,48,128], index: 0, kind: input, shape index: {}]   ;;  %s2895_s1 = inlined_call_operand.vmem [shape: bf16[3,2,4,128], index: 1, kind: input, shape index: {}, may-alias: {1,2}]   ;;  %s2896_s2 = inlined_call_operand.vmem [shape: bf16[3,2,4,128], index: 2, kind: input, shape index: {}, may-alias: {1,2}]   ;;  %s2897_s3 = inlined_call_operand.vmem [shape: f32[1,128], index: 3, kind: input, shape index: {}]   ;;  %s2898_s4 = inlined_call_operand.vmem [shape: f32[1,128], index: 4, kind: input, shape index: {}]   ;;  %s2899_s5 = inlined_call_operand.hbm [shape: bf16[5,128,128], index: 5, kind: input, shape index: {}]   ;;  %s2900_s6 = inlined_call_operand.vmem [shape: bf16[2,48,128], index: 6, kind: output, shape index: {0}]   ;;  %s2901_s7 = inlined_call_operand.vmem [shape: bf16[3,2,4,128], index: 7, kind: output, shape index: {1}]   ;;  %s2902_s8 = inlined_call_operand.vmem [shape: f32[3,1,128], index: 8, kind: output, shape index: {2}]   ;;  %s2903_s9 = inlined_call_operand.vmem [shape: f32[3,1,128], index: 9, kind: output, shape index: {3}]  }
   0x1   :  { %s2456_s11 = smov 0  }
   0x2 LB: > { %s2468_s12 = sadd.s32 4294967295, %s2395_s11   ;;  %s2471_s13 = sadd.s32 1, %s2395_s11   ;;  %s2395_s11 = sphi %s2456_s11, %s2916_s11   ;;  %s2391_s10 = sphi %s2454_s10, %s2915_s10   ;;  %s2387_s30 = sphi %s2452_s30, %s2914_s30  }
   0x3   : > { %s25_s14 = ssub.s32 %s2395_s11, %s2471_s13  ;;  %s28_s15 = sadd.s32 1, %s2391_s10 }
   0x4   : > { %p26_p0 = scmp.eq.s32.totalorder %s25_s14, 0  ;;  %p35_p1 = scmp.ne.s32.totalorder %s2391_s10, %s2387_s30 }
   0x5   : > { %p36_p2 = scmp.eq.s32.totalorder %s2395_s11, 0  ;;  %p192_p3 = scmp.eq.s32.totalorder %s2468_s12, 2 }
   0x6   : > { %s2481_s16 = scalar_select %p26_p0, %s2391_s10, %s28_s15  }
   0x7   : > { %p2483_p4 = por %p36_p2, %p35_p1  ;;  %p2487_p5 = por %p192_p3, %p35_p1 }
   0x8   : > { %p1972_p6 = scmp.ge.s32.totalorder %s2395_s11, 1  ;;  %p283_p7 = scmp.lt.s32.totalorder %s2395_s11, 4 }
   0x9   : > { %p1973_p8 = scmp.ne.s32.totalorder %s2468_s12, 0  ;;  %p2288_p9 = scmp.eq.s32.totalorder %s2468_s12, 0 }
   0xa   : > { %p2495_p10 = pnand %p1972_p6, %p283_p7  ;;  %s300_s22 = sshll.u32 %s2899_s5, 4  ;;  %s301_s22 = int_to_ptr.hbm [resolvable:$true] %s300_s22 }
   0xb   : > { %s2397_s23 = smov [#allocation4]   ;;  %s2398_s25 = smov 64  }
   0xc   : > { %p2284_p11 = pneg %p2495_p10  ;;  %s302_s24 = sshll.u32 %s2397_s23, 4  ;;  %s303_s24 = int_to_ptr.vmem [resolvable:$true] %s302_s24 }
   0xd   : > { %s2399_s26 = smov 4   ;;  %p1974_p13 = scmp.ge.s32.totalorder %s2395_s11, 3 }
   0xe   : > { %p2285_p12 = pnand %p2288_p9, %p2284_p11 }
   0xf   : > { %312 = sbr.rel (%p1974_p13) target bundleno = 26 (0x1a), region = 28 }
  0x10   : > { %2287 = dma.hbm_to_vmem [thread:$0]  (!%p2285_p12), %s301_s22, 5120, %s303_s24, [#allocation5], %s2398_s25, %s2398_s25, %s2399_s26  }
  0x14   : > { %315 = sbr.rel (!%p2483_p4) target bundleno = 26 (0x1a), region = 32  ;;  %s317_s27 = sand.u32 (%p2483_p4), 1, %s2391_s10  }
  0x15   : > { %s2184_s28 = sshll.u32 (%p2483_p4), %s2395_s11, 3  ;;  %s1975_s29 = sshll.u32 (%p2483_p4), %s317_s27, 4 }
  0x16   : > { %s322_s20 = scalar_lea.vmem (%p2483_p4), %s2894_s0, %s2184_s28  ;;  %s319_s21 = scalar_lea.vmem (%p2483_p4), [#allocation3], %s1975_s29 }
  0x17   : > { %v339_v0 = vld [vmem:[%s322_s20] sm:$0xff] (%p2483_p4)   ;;  %v343_v1 = vld [vmem:[%s322_s20 + $0x18] sm:$0xff] (%p2483_p4)  }
  0x18   : > { %340 = vst [vmem:[%s319_s21] sm:$0xff] (%p2483_p4), %v339_v0  }
  0x19   : > { %344 = vst [vmem:[%s319_s21 + $0x8] sm:$0xff] %v343_v1  }
  0x1a PF: > { %409 = sbr.rel (%p2495_p10) target bundleno = 455 (0x1c7), region = 81  ;;  %s412_s17 = sand.u32 (!%p2495_p10), 1, %s2387_s30  }
  0x1b   : > { %s2517_s22 = sshll.u32 (!%p2495_p10), %s412_s17, 4 }
  0x1c   : > { %s414_s11 = scalar_lea.vmem (!%p2495_p10), [#allocation3], %s2517_s22 }
  0x1f   : > { %2382 = dma.done.wait (%p2288_p9), [#allocation5], 5120  }
  0x20   : > { %2384 = vsyncadd (%p2288_p9), [#allocation5], 4294962176  ;;  %s1982_s23 = sadd.s32 4294967295, %s2468_s12  ;;  %s490_s19 = sadd.s32 1, %s2468_s12  ;;  %v2234_v2 = vld [vmem:[%s414_s11] sm:$0xff]   ;;  %v2261_v7 = vld [vmem:[%s414_s11 + $0x8] sm:$0xff]  }
  0x21   : > { %p480_p0 = scmp.gt.s32.totalorder %s1982_s23, 0  ;;  %p1983_p1 = scmp.lt.s32.totalorder %s1982_s23, 2  ;;  %v2319_v3 = vld [vmem:[%s2897_s3] ss:$0 sm:$0xff]  ;;  %v2235_v4 = vunpack.c.l.bf16 %v2234_v2  ;;  %v2236_v5 = vunpack.c.h.bf16 %v2234_v2  ;;  %v2239_v8 = vunpack.c.l.bf16 %v2261_v7  ;;  %v2240_v9 = vunpack.c.h.bf16 %v2261_v7 }
  0x22   : > { %p2526_p2 = scmp.lt.s32.totalorder %s490_s19, 2  ;;  %p502_p3 = scmp.lt.s32.totalorder %s2468_s12, 2  ;;  %v2320_v6 = vld [vmem:[%s2898_s4] ss:$0 sm:$0xff]  ;;  %vm550_vm0 = vcmask 1040384   ;;  %vm551_vm1 = vcmask 1044484  }
  0x23   : > { %s2918_s23 = smov (!%p480_p0, %s1982_s23), 0  ;;  %v526_v10 = vmul.f32 %v2319_v3, %v2235_v4  ;;  %v527_v11 = vmul.f32 %v2319_v3, %v2236_v5  ;;  %v528_v12 = vmul.f32 %v2319_v3, %v2239_v8  ;;  %v529_v13 = vmul.f32 %v2319_v3, %v2240_v9  ;;  %vm2569_vm2 = vmor %vm550_vm0, %vm551_vm1  ;;  %p1997_p4 = scmp.ne.s32.totalorder %s2468_s12, 2 }
  0x24   : > { %s2920_s23 = smov (!%p1983_p1, %s2918_s23), 2  ;;  %s2922_s19 = smov (!%p2526_p2, %s490_s19), 2 }
  0x25   : > { %s2187_s24 = sshll.u32 %s2920_s23, 2  ;;  %s2924_s19 = smov (!%p2526_p2, %s2922_s19), 2  ;;  %v534_v14 = vadd.f32 %v2320_v6, %v526_v10  ;;  %v535_v15 = vadd.f32 %v2320_v6, %v527_v11  ;;  %v536_v16 = vadd.f32 %v2320_v6, %v528_v12  ;;  %v537_v17 = vadd.f32 %v2320_v6, %v529_v13 }
  0x26   : > { %s2539_s29 = scalar_lea.vmem %s2895_s1, %s2187_s24  ;;  %s2188_s21 = sshll.u32 %s2924_s19, 2 }
  0x27   : > { %s503_s20 = scalar_select %p502_p3, %s2468_s12, 2  ;;  %2321 = vtanh.f32 %v534_v14 }
  0x28   : > { %s2552_s24 = scalar_lea.vmem %s2896_s2, %s2188_s21  ;;  %2323 = vtanh.f32 %v535_v15  ;;  %s1998_s17 = sshll.u32 (!%p1997_p4), %s2468_s12, 4 }
  0x29   : > { %s2189_s25 = sshll.u32 %s503_s20, 2  ;;  %s2562_s14 = scalar_lea.vmem %s2902_s8, %s503_s20  ;;  %2325 = vtanh.f32 %v536_v16 }
  0x2a   : > { %s2557_s26 = scalar_lea.vmem %s2901_s7, %s2189_s25  ;;  %s2567_s21 = scalar_lea.vmem %s2903_s9, %s503_s20  ;;  %2327 = vtanh.f32 %v537_v17 }
  0x2b   : > { %s2578_s20 = scalar_lea.vmem [#allocation6], %s2517_s22 }
  0x2d   : > { %v2322_v18 = vpop.eup %2321 }
  0x2e   : > { %v2324_v19 = vpop.eup %2323  ;;  %v542_v20 = vpack.c.bf16 %v2322_v18, %v2322_v18 }
  0x2f   : > { %v2326_v21 = vpop.eup %2325  ;;  %v543_v22 = vpack.c.bf16 %v2324_v19, %v2324_v19 }
  0x30   : > { %v2328_v23 = vpop.eup %2327  ;;  %v553_v24 = vrot.slane %v542_v20, 7  ;;  %v544_v25 = vpack.c.bf16 %v2326_v21, %v2326_v21 }
  0x31   : > { %v555_v27 = vrot.slane %v543_v22, 7  ;;  %v545_v28 = vpack.c.bf16 %v2328_v23, %v2328_v23 }
  0x32   : > { %v554_v29 = vrot.slane %v553_v24, 4  ;;  %569 = vst [vmem:[#allocation2] sm:$0xe] %v553_v24  ;;  %v558_v30 = vrot.slane %v544_v25, 7 }
  0x33   : > { %v557_v31 = vrot.slane %v555_v27, 4  ;;  %v560_v32 = vrot.slane %v545_v28, 7 }
  0x34   : > { %v556_v33 = vsel %vm2569_vm2, %v554_v29, %v555_v27  ;;  %v559_v34 = vrot.slane %v558_v30, 4  ;;  %572 = vst [vmem:[#allocation2 + $0xc] sm:$0xe] %v558_v30  ;;  %578 = sbr.rel (%p1997_p4) target bundleno = 76 (0x4c), region = 93 }
  0x35   : > { %570 = vst [vmem:[#allocation2 + $0x4] sm:$0xf] %v556_v33  ;;  %v562_v35 = vrot.slane %v560_v32, 4 }
  0x36   : > { %571 = vst [vmem:[#allocation2 + $0x8] sm:$0x1] %v557_v31  ;;  %v561_v36 = vsel %vm2569_vm2, %v559_v34, %v560_v32 }
  0x37   : > { %573 = vst [vmem:[#allocation2 + $0x10] sm:$0xf] %v561_v36 }
  0x38   : > { %574 = vst [vmem:[#allocation2 + $0x14] sm:$0x1] %v562_v35 }
  0x39   : > { %v580_v37 = vlaneseq  ;;  %v583_v38 = vstv %s1998_s17 }
  0x3b   : > { %v581_v39 = vshrl.u32 %v580_v37, 7 }
  0x3d   : > { %v584_v40 = vadd.s32 %v583_v38, %v581_v39  ;;  %v582_v41 = vadd.s32 8, %v581_v39 }
  0x3f   : > { %vm586_vm3 = vcmp.lt.s32.totalorder %v584_v40, 40  ;;  %v585_v42 = vadd.s32 %v583_v38, %v582_v41 }
  0x40   : > { %v592_v43 = vsel %vm586_vm3, %v2322_v18, 0.0  ;;  %v594_v44 = vsel %vm586_vm3, %v2326_v21, 0.0 }
  0x41   : > { %v596_v45 = vpack.c.bf16 %v592_v43, %v592_v43  ;;  %vm587_vm4 = vcmp.lt.s32.totalorder %v585_v42, 40  ;;  %v598_v46 = vpack.c.bf16 %v594_v44, %v594_v44 }
  0x42   : > { %v593_v47 = vsel %vm587_vm4, %v2324_v19, 0.0  ;;  %v595_v48 = vsel %vm587_vm4, %v2328_v23, 0.0 }
  0x43   : > { %v604_v49 = vrot.slane %v596_v45, 7  ;;  %v597_v50 = vpack.c.bf16 %v593_v47, %v593_v47  ;;  %v609_v51 = vrot.slane %v598_v46, 7  ;;  %v599_v52 = vpack.c.bf16 %v595_v48, %v595_v48 }
  0x45   : > { %620 = vst [vmem:[#allocation2] sm:$0xe] %v604_v49  ;;  %v605_v53 = vrot.slane %v604_v49, 4  ;;  %v606_v54 = vrot.slane %v597_v50, 7  ;;  %v610_v55 = vrot.slane %v609_v51, 4  ;;  %v611_v56 = vrot.slane %v599_v52, 7 }
  0x46   : > { %623 = vst [vmem:[#allocation2 + $0xc] sm:$0xe] %v609_v51 }
  0x47   : > { %v607_v57 = vsel %vm2569_vm2, %v605_v53, %v606_v54  ;;  %v608_v58 = vrot.slane %v606_v54, 4  ;;  %v612_v59 = vsel %vm2569_vm2, %v610_v55, %v611_v56  ;;  %v613_v60 = vrot.slane %v611_v56, 4 }
  0x48   : > { %621 = vst [vmem:[#allocation2 + $0x4] sm:$0xf] %v607_v57 }
  0x49   : > { %622 = vst [vmem:[#allocation2 + $0x8] sm:$0x1] %v608_v58 }
  0x4a   : > { %624 = vst [vmem:[#allocation2 + $0x10] sm:$0xf] %v612_v59 }
  0x4b   : > { %625 = vst [vmem:[#allocation2 + $0x14] sm:$0x1] %v613_v60 }
  0x4c PF: > { %v626_v61 = vld [vmem:[%s2539_s29] sm:$0x2]  ;;  %v2329_v62 = vld [vmem:[%s2897_s3] ss:$0 sm:$0xff]  ;;  %v627_v1 = vld [vmem:[%s2539_s29 + $0x2] sm:$0x2]  ;;  %v656_v2 = vlaneseq }
  0x4d   : > { %v628_v63 = vunpack.c.l.bf16 %v626_v61  ;;  %v2330_v0 = vld [vmem:[%s2898_s4] ss:$0 sm:$0xff]  ;;  %v629_v3 = vunpack.c.l.bf16 %v627_v1  ;;  %s2190_s30 = sshll.u32 %s2468_s12, 4  ;;  %v645_v5 = vld [vmem:[%s2552_s24 + $0x2] sm:$0x1] }
  0x4e   : > { %v644_v4 = vld [vmem:[%s2552_s24] sm:$0x1]  ;;  %s2191_s27 = sadd.s32 16, %s2190_s30  ;;  %v647_v8 = vunpack.c.l.bf16 %v645_v5  ;;  %v2601_v12 = vshrl.u32 %v656_v2, 7 }
  0x4f   : > { %v634_v6 = vmul.f32 %v2329_v62, %v628_v63  ;;  %v646_v7 = vunpack.c.l.bf16 %v644_v4  ;;  %v635_v9 = vmul.f32 %v2329_v62, %v629_v3  ;;  %v658_v15 = vstv %s2191_s27 }
  0x50   : > { %v649_v13 = vmul.f32 %v2329_v62, %v647_v8  ;;  %v659_v18 = vadd.s32 %v658_v15, %v2601_v12 }
  0x51   : > { %v640_v10 = vadd.f32 %v2330_v0, %v634_v6  ;;  %v648_v11 = vmul.f32 %v2329_v62, %v646_v7  ;;  %v641_v14 = vadd.f32 %v2330_v0, %v635_v9 }
  0x52   : > { %v651_v17 = vadd.f32 %v2330_v0, %v649_v13  ;;  %vm660_vm5 = vcmp.lt.s32.totalorder %v659_v18, 40 }
  0x53   : > { %2331 = vtanh.f32 %v640_v10  ;;  %v650_v16 = vadd.f32 %v2330_v0, %v648_v11 }
  0x54   : > { %2333 = vtanh.f32 %v641_v14 }
  0x55   : > { %2335 = vtanh.f32 %v650_v16 }
  0x56   : > { %2337 = vtanh.f32 %v651_v17 }
  0x59   : > { %v2332_v19 = vpop.eup %2331 }
  0x5a   : > { %v2334_v20 = vpop.eup %2333  ;;  %v665_v21 = vpack.c.bf16 %v2332_v19, %v2332_v19 }
  0x5b   : > { %v2336_v22 = vpop.eup %2335  ;;  %v666_v23 = vpack.c.bf16 %v2334_v20, %v2334_v20 }
  0x5c   : > { %v2338_v24 = vpop.eup %2337  ;;  %v2000_v25 = vrot.slane %v665_v21, 9  ;;  %v663_v27 = vsel %vm660_vm5, %v2336_v22, 0.0 }
  0x5d   : > { %v2001_v28 = vrot.slane %v666_v23, 9  ;;  %v677_v29 = vpack.c.bf16 %v663_v27, %v663_v27  ;;  %v664_v30 = vsel %vm660_vm5, %v2338_v24, 0.0 }
  0x5e   : > { %675 = vst [vmem:[#allocation2] sm:$0x1] %v2000_v25  ;;  %v678_v31 = vpack.c.bf16 %v664_v30, %v664_v30  ;;  %690 = sbr.rel (%p1973_p8) target bundleno = 102 (0x66), region = 97 }
  0x5f   : > { %676 = vst [vmem:[#allocation2 + $0xc] sm:$0x1] %v2001_v28  ;;  %v681_v32 = vrot.slane %v677_v29, 7 }
  0x60   : > { %v682_v33 = vrot.slane %v678_v31, 7 }
  0x61   : > { %685 = vst [vmem:[#allocation2 + $0x8] sm:$0x2] %v681_v32 }
  0x62   : > { %686 = vst [vmem:[#allocation2 + $0x14] sm:$0x2] %v682_v33 }
  0x63   : > { %v2400_v34 = vmov 0  }
  0x64   : > { %691 = vst [vmem:[#allocation2] sm:$0x1] %v2400_v34 }
  0x65   : > { %692 = vst [vmem:[#allocation2 + $0xc] sm:$0x1] %v2400_v34 }
  0x66 PF: > { %695 = sbr.rel (%p1997_p4) target bundleno = 110 (0x6e), region = 101 }
  0x6b   : > { %v2401_v35 = vmov 0  }
  0x6c   : > { %696 = vst [vmem:[#allocation2 + $0x8] sm:$0x2] %v2401_v35 }
  0x6d   : > { %697 = vst [vmem:[#allocation2 + $0x14] sm:$0x2] %v2401_v35 }
  0x6e PF: > { %v2199_v36 = vld [vmem:[#allocation4 + $0x38] sm:$0xff]  ;;  %v2198_v38 = vld [vmem:[#allocation4 + $0x30] sm:$0xff]  ;;  %v2197_v41 = vld [vmem:[#allocation4 + $0x28] sm:$0xff]  ;;  %vm732_vm6 = vcmask 1041408   ;;  %vm736_vm7 = vcmask 1043458   ;;  %vm995_vm8 = vcmask 1042432  }
  0x6f   : > { %v2215_v37 = vld [vmem:[#allocation4 + $0xb8] sm:$0xff]  ;;  %2264 = vmatpush.bf16.msra.mxu1 %v2199_v36  ;;  %839 = vmatpush.bf16.msra.mxu0 %v2199_v36  ;;  %v2214_v39 = vld [vmem:[#allocation4 + $0xb0] sm:$0xff]  ;;  %v698_v42 = vld [vmem:[#allocation2] sm:$0xf]  ;;  %vm996_vm9 = vcmask 1046532   ;;  %vm1161_vm11 = vcmask 1045508  }
  0x70   : > { %1128 = vmatpush.bf16.msra.mxu2 %v2215_v37  ;;  %v2223_v40 = vld [vmem:[#allocation4 + $0xf8] sm:$0xff]  ;;  %v2213_v43 = vld [vmem:[#allocation4 + $0xa8] sm:$0xff]  ;;  %v2222_v44 = vld [vmem:[#allocation4 + $0xf0] sm:$0xff]  ;;  %v726_v46 = vrot.slane %v698_v42, 2  ;;  %p2176_p6 = scmp.ge.s32.totalorder %s2468_s12, 2 }
  0x71   : > { %1293 = vmatpush.bf16.msra.mxu3 %v2223_v40  ;;  %v699_v45 = vld [vmem:[#allocation2 + $0x4] sm:$0xf]  ;;  %v702_v48 = vld [vmem:[#allocation2 + $0x10] sm:$0xf]  ;;  %v2196_v49 = vld [vmem:[#allocation4 + $0x20] sm:$0xff] }
  0x72   : > { %v727_v47 = vrot.slane %v699_v45, 2  ;;  %v2609_v50 = vsel %vm732_vm6, %v698_v42, %v726_v46  ;;  %v737_v51 = vsel %vm736_vm7, %v698_v42, %v726_v46  ;;  %v2212_v52 = vld [vmem:[#allocation4 + $0xa0] sm:$0xff]  ;;  %v2221_v53 = vld [vmem:[#allocation4 + $0xe8] sm:$0xff]  ;;  %v730_v57 = vrot.slane %v702_v48, 2  ;;  %v2195_v59 = vld [vmem:[#allocation4 + $0x18] sm:$0xff] }
  0x73   : > { %2265 = vmatpush.bf16.msra.mxu1 %v2198_v38  ;;  %840 = vmatpush.bf16.msra.mxu0 %v2198_v38  ;;  %v2612_v54 = vrot.slane %v737_v51, 2  ;;  %764 = vst [vmem:[#allocation1] ss:$4 sm:$0xff] %v2609_v50  ;;  %v2211_v61 = vld [vmem:[#allocation4 + $0x98] sm:$0xff]  ;;  %v2220_v62 = vld [vmem:[#allocation4 + $0xe0] sm:$0xff]  ;;  %v2194_v1 = vld [vmem:[#allocation4 + $0x10] sm:$0xff] }
  0x74   : > { %1129 = vmatpush.bf16.msra.mxu2 %v2214_v39  ;;  %v2615_v55 = vsel %vm732_vm6, %v699_v45, %v727_v47  ;;  %v743_v56 = vsel %vm736_vm7, %v699_v45, %v727_v47  ;;  %v703_v60 = vld [vmem:[#allocation2 + $0x14] sm:$0x3]  ;;  %v758_v63 = vsel %vm736_vm7, %v702_v48, %v730_v57  ;;  %v701_v2 = vld [vmem:[#allocation2 + $0xc] sm:$0xf]  ;;  %v700_v6 = vld [vmem:[#allocation2 + $0x8] sm:$0x3]  ;;  %v2642_v17 = vsel %vm732_vm6, %v702_v48, %v730_v57 }
  0x75   : > { %1294 = vmatpush.bf16.msra.mxu3 %v2222_v44  ;;  %v2618_v58 = vrot.slane %v743_v56, 2  ;;  %767 = vst [vmem:[#allocation1 + $0x1] ss:$4 sm:$0xff] %v2612_v54  ;;  %v731_v0 = vrot.slane %v703_v60, 2  ;;  %v2210_v3 = vld [vmem:[#allocation4 + $0x90] sm:$0xff]  ;;  %v2625_v4 = vrot.slane %v758_v63, 2  ;;  %vm2700_vm10 = vmor %vm995_vm8, %vm996_vm9 }
  0x76   : > { %769 = vst [vmem:[#allocation1 + $0x2] ss:$4 sm:$0xff] %v2615_v55  ;;  %v729_v5 = vrot.slane %v701_v2, 2  ;;  %v728_v8 = vrot.slane %v700_v6, 2  ;;  %v2193_v10 = vld [vmem:[#allocation4 + $0x8] sm:$0xff]  ;;  %v2192_v18 = vld [vmem:[#allocation4] sm:$0xff]  ;;  %vm2713_vm12 = vmor %vm732_vm6, %vm1161_vm11 }
  0x77   : > { %2266 = vmatpush.bf16.msra.mxu1 %v2197_v41  ;;  %841 = vmatpush.bf16.msra.mxu0 %v2197_v41  ;;  %772 = vst [vmem:[#allocation1 + $0x3] ss:$4 sm:$0xff] %v2618_v58  ;;  %v2628_v7 = vsel %vm732_vm6, %v703_v60, %v731_v0  ;;  %v2209_v13 = vld [vmem:[#allocation4 + $0x88] sm:$0xff]  ;;  %v2207_v19 = vld [vmem:[#allocation4 + $0x78] sm:$0xff]  ;;  %v2208_v20 = vld [vmem:[#allocation4 + $0x80] sm:$0xff] }
  0x78   : > { %1130 = vmatpush.bf16.msra.mxu2 %v2213_v43  ;;  %v752_v9 = vsel %vm736_vm7, %v701_v2, %v729_v5  ;;  %v2633_v14 = vsel %vm732_vm6, %v700_v6, %v728_v8  ;;  %v2636_v15 = vsel %vm732_vm6, %v701_v2, %v729_v5  ;;  %781 = vst [vmem:[#allocation1 + $0x23] ss:$4 sm:$0xff] %v2642_v17  ;;  %v2206_v21 = vld [vmem:[#allocation4 + $0x70] sm:$0xff]  ;;  %v2231_v23 = vld [vmem:[#allocation4 + $0x138] sm:$0xff]  ;;  %v2205_v25 = vld [vmem:[#allocation4 + $0x68] sm:$0xff] }
  0x79   : > { %1295 = vmatpush.bf16.msra.mxu3 %v2221_v53  ;;  %v2638_v16 = vrot.slane %v752_v9, 2  ;;  %774 = vst [vmem:[#allocation1 + $0x20] ss:$4 sm:$0xff] %v2633_v14  ;;  %v2219_v24 = vld [vmem:[#allocation4 + $0xd8] sm:$0xff]  ;;  %v2218_v27 = vld [vmem:[#allocation4 + $0xd0] sm:$0xff]  ;;  %v2217_v30 = vld [vmem:[#allocation4 + $0xc8] sm:$0xff] }
  0x7a   : > { %776 = vst [vmem:[#allocation1 + $0x21] ss:$4 sm:$0xff] %v2636_v15  ;;  %v2230_v28 = vld [vmem:[#allocation4 + $0x130] sm:$0xff]  ;;  %v2204_v31 = vld [vmem:[#allocation4 + $0x60] sm:$0xff]  ;;  %v2229_v32 = vld [vmem:[#allocation4 + $0x128] sm:$0xff] }
  0x7b   : > { %2267 = vmatpush.bf16.msra.mxu1 %v2196_v49  ;;  %842 = vmatpush.bf16.msra.mxu0 %v2196_v49  ;;  %779 = vst [vmem:[#allocation1 + $0x22] ss:$4 sm:$0xff] %v2638_v16  ;;  %v2216_v34 = vld [vmem:[#allocation4 + $0xc0] sm:$0xff]  ;;  %v2203_v35 = vld [vmem:[#allocation4 + $0x58] sm:$0xff]  ;;  %v2202_v38 = vld [vmem:[#allocation4 + $0x50] sm:$0xff] }
  0x7c   : > { %1131 = vmatpush.bf16.msra.mxu2 %v2212_v52  ;;  %v2228_v36 = vld [vmem:[#allocation4 + $0x120] sm:$0xff]  ;;  %v2201_v40 = vld [vmem:[#allocation4 + $0x48] sm:$0xff]  ;;  %v2227_v41 = vld [vmem:[#allocation4 + $0x118] sm:$0xff] }
  0x7d   : > { %1296 = vmatpush.bf16.msra.mxu3 %v2220_v62  ;;  %v2226_v42 = vld [vmem:[#allocation4 + $0x110] sm:$0xff]  ;;  %v2200_v43 = vld [vmem:[#allocation4 + $0x40] sm:$0xff]  ;;  %v2225_v45 = vld [vmem:[#allocation4 + $0x108] sm:$0xff] }
  0x7e   : > { %v782_v11 = vld.sshfl [vmem:[#allocation1] sm:$0xff pattern:$0x73625140] }
  0x7f   : > { %2268 = vmatpush.bf16.msra.mxu1 %v2195_v59  ;;  %843 = vmatpush.bf16.msra.mxu0 %v2195_v59  ;;  %785 = vst [vmem:[#allocation1] ss:$4 sm:$0xff] %v2625_v4  ;;  %v2224_v46 = vld [vmem:[#allocation4 + $0x100] sm:$0xff] }
  0x80   : > { %1132 = vmatpush.bf16.msra.mxu2 %v2211_v61  ;;  %786 = vst [vmem:[#allocation1 + $0x1] ss:$4 sm:$0xff] %v2628_v7 }
  0x81   : > { %1297 = vmatpush.bf16.msra.mxu3 %v2219_v24 }
  0x82   : > { %v783_v29 = vld.sshfl [vmem:[#allocation1 + $0x20] sm:$0xff pattern:$0x73625140] }
  0x83   : > { %2269 = vmatpush.bf16.msra.mxu1 %v2194_v1  ;;  %844 = vmatpush.bf16.msra.mxu0 %v2194_v1  ;;  %899 = vst [vmem:[#allocation1 + $0x20] ss:$4 sm:$0xff] %v2633_v14 }
  0x84   : > { %1133 = vmatpush.bf16.msra.mxu2 %v2210_v3  ;;  %901 = vst [vmem:[#allocation1 + $0x21] ss:$4 sm:$0xff] %v2636_v15 }
  0x85   : > { %1298 = vmatpush.bf16.msra.mxu3 %v2218_v27  ;;  %903 = vst [vmem:[#allocation1 + $0x22] ss:$4 sm:$0xff] %v2638_v16 }
  0x86   : > { %905 = vst [vmem:[#allocation1 + $0x23] ss:$4 sm:$0xff] %v2642_v17 }
  0x87   : > { %2270 = vmatpush.bf16.msra.mxu1 %v2193_v10  ;;  %845 = vmatpush.bf16.msra.mxu0 %v2193_v10  ;;  %v787_v22 = vld.sshfl [vmem:[#allocation1] sm:$0xff pattern:$0x73625140] }
  0x88   : > { %1134 = vmatpush.bf16.msra.mxu2 %v2209_v13  ;;  %891 = vst [vmem:[#allocation1] ss:$4 sm:$0xff] %v2609_v50 }
  0x89   : > { %893 = vst [vmem:[#allocation1 + $0x1] ss:$4 sm:$0xff] %v2612_v54  ;;  %1299 = vmatpush.bf16.msra.mxu3 %v2217_v30 }
  0x8a   : > { %895 = vst [vmem:[#allocation1 + $0x2] ss:$4 sm:$0xff] %v2615_v55 }
  0x8b   : > { %2271 = vmatpush.bf16.msra.mxu1 %v2192_v18  ;;  %846 = vmatpush.bf16.msra.mxu0 %v2192_v18  ;;  %897 = vst [vmem:[#allocation1 + $0x3] ss:$4 sm:$0xff] %v2618_v58 }
  0x8c   : > { %1135 = vmatpush.bf16.msra.mxu2 %v2208_v20 }
  0x8d   : > { %1300 = vmatpush.bf16.msra.mxu3 %v2216_v34  ;;  %v907_v37 = vld.sshfl [vmem:[#allocation1 + $0x20] sm:$0xff pattern:$0x73625140] }
  0x8e   : > { %857 = vmatmul.bf16.vlgmr.msra.gmra.mxu1 %v787_v22  ;;  %847 = vmatmul.bf16.vlgmr.msra.gmra.mxu0 %v782_v11  ;;  %1065 = vst [vmem:[#allocation1 + $0x20] ss:$4 sm:$0xff] %v2633_v14 }
  0x8f   : > { %962 = vmatpush.bf16.msrb.mxu1 %v2207_v19  ;;  %1459 = vmatpush.bf16.msrb.mxu0 %v2231_v23  ;;  %1067 = vst [vmem:[#allocation1 + $0x21] ss:$4 sm:$0xff] %v2636_v15 }
  0x90   : > { %2272 = vmatpush.bf16.msrb.mxu2 %v2231_v23  ;;  %1069 = vst [vmem:[#allocation1 + $0x22] ss:$4 sm:$0xff] %v2638_v16 }
  0x91   : > { %1071 = vst [vmem:[#allocation1 + $0x23] ss:$4 sm:$0xff] %v2642_v17 }
  0x92   : > { %v906_v33 = vld.sshfl [vmem:[#allocation1] sm:$0xff pattern:$0x73625140] }
  0x93   : > { %963 = vmatpush.bf16.msrb.mxu1 %v2206_v21  ;;  %1460 = vmatpush.bf16.msrb.mxu0 %v2230_v28  ;;  %908 = vst [vmem:[#allocation1] ss:$4 sm:$0xff] %v2625_v4 }
  0x94   : > { %2273 = vmatpush.bf16.msrb.mxu2 %v2230_v28  ;;  %909 = vst [vmem:[#allocation1 + $0x1] ss:$4 sm:$0xff] %v2628_v7 }
  0x97   : > { %964 = vmatpush.bf16.msrb.mxu1 %v2205_v25  ;;  %1461 = vmatpush.bf16.msrb.mxu0 %v2229_v32 }
  0x98   : > { %2274 = vmatpush.bf16.msrb.mxu2 %v2229_v32  ;;  %v1073_v44 = vld.sshfl [vmem:[#allocation1 + $0x20] sm:$0xff pattern:$0x73625140] }
  0x99   : > { %1230 = vst [vmem:[#allocation1 + $0x20] ss:$4 sm:$0xff] %v2633_v14 }
  0x9a   : > { %1232 = vst [vmem:[#allocation1 + $0x21] ss:$4 sm:$0xff] %v2636_v15 }
  0x9b   : > { %965 = vmatpush.bf16.msrb.mxu1 %v2204_v31  ;;  %1462 = vmatpush.bf16.msrb.mxu0 %v2228_v36  ;;  %v910_v39 = vld.sshfl [vmem:[#allocation1] sm:$0xff pattern:$0x73625140]  ;;  %1234 = vst [vmem:[#allocation1 + $0x22] ss:$4 sm:$0xff] %v2638_v16 }
  0x9c   : > { %2275 = vmatpush.bf16.msrb.mxu2 %v2228_v36  ;;  %1057 = vst [vmem:[#allocation1] ss:$4 sm:$0xff] %v2609_v50 }
  0x9d   : > { %1059 = vst [vmem:[#allocation1 + $0x1] ss:$4 sm:$0xff] %v2612_v54 }
  0x9e   : > { %852 = vmatmul.bf16.gmra.mxu0 %v783_v29  ;;  %1061 = vst [vmem:[#allocation1 + $0x2] ss:$4 sm:$0xff] %v2615_v55 }
  0x9f   : > { %966 = vmatpush.bf16.msrb.mxu1 %v2203_v35  ;;  %1463 = vmatpush.bf16.msrb.mxu0 %v2227_v41  ;;  %1063 = vst [vmem:[#allocation1 + $0x3] ss:$4 sm:$0xff] %v2618_v58 }
  0xa0   : > { %2276 = vmatpush.bf16.msrb.mxu2 %v2227_v41  ;;  %1236 = vst [vmem:[#allocation1 + $0x23] ss:$4 sm:$0xff] %v2642_v17 }
  0xa3   : > { %967 = vmatpush.bf16.msrb.mxu1 %v2202_v38  ;;  %1464 = vmatpush.bf16.msrb.mxu0 %v2226_v42 }
  0xa4   : > { %2277 = vmatpush.bf16.msrb.mxu2 %v2226_v42 }
  0xa6   : > { %v1072_v47 = vld.sshfl [vmem:[#allocation1] sm:$0xff pattern:$0x73625140] }
  0xa7   : > { %968 = vmatpush.bf16.msrb.mxu1 %v2201_v40  ;;  %1465 = vmatpush.bf16.msrb.mxu0 %v2225_v45  ;;  %1074 = vst [vmem:[#allocation1] ss:$4 sm:$0xff] %v2625_v4  ;;  %v1238_v48 = vld.sshfl [vmem:[#allocation1 + $0x20] sm:$0xff pattern:$0x73625140] }
  0xa8   : > { %2278 = vmatpush.bf16.msrb.mxu2 %v2225_v45  ;;  %1075 = vst [vmem:[#allocation1 + $0x1] ss:$4 sm:$0xff] %v2628_v7 }
  0xa9   : > { %1136 = vmatmul.bf16.vlgmr.msra.gmra.mxu2 %v1072_v47  ;;  %1396 = vst [vmem:[#allocation1 + $0x20] ss:$4 sm:$0xff] %v2633_v14 }
  0xaa   : > { %1398 = vst [vmem:[#allocation1 + $0x21] ss:$4 sm:$0xff] %v2636_v15 }
  0xab   : > { %969 = vmatpush.bf16.msrb.mxu1 %v2200_v43  ;;  %1466 = vmatpush.bf16.msrb.mxu0 %v2224_v46  ;;  %1400 = vst [vmem:[#allocation1 + $0x22] ss:$4 sm:$0xff] %v2638_v16 }
  0xac   : > { %2279 = vmatpush.bf16.msrb.mxu2 %v2224_v46  ;;  %1402 = vst [vmem:[#allocation1 + $0x23] ss:$4 sm:$0xff] %v2642_v17 }
  0xae   : > { %970 = vmatmul.bf16.vlgmr.msrb.gmra.mxu1 %v906_v33 }
  0xaf   : > { %v1076_v49 = vld.sshfl [vmem:[#allocation1] sm:$0xff pattern:$0x73625140] }
  0xb0   : > { %1222 = vst [vmem:[#allocation1] ss:$4 sm:$0xff] %v2609_v50 }
  0xb1   : > { %1224 = vst [vmem:[#allocation1 + $0x1] ss:$4 sm:$0xff] %v2612_v54 }
  0xb2   : > { %1226 = vst [vmem:[#allocation1 + $0x2] ss:$4 sm:$0xff] %v2615_v55 }
  0xb3   : > { %1228 = vst [vmem:[#allocation1 + $0x3] ss:$4 sm:$0xff] %v2618_v58  ;;  %v1404_v57 = vld.sshfl [vmem:[#allocation1 + $0x20] sm:$0xff pattern:$0x73625140] }
  0xb9   : > { %1141 = vmatmul.bf16.gmra.mxu2 %v1073_v44 }
  0xba   : > { %v1237_v51 = vld.sshfl [vmem:[#allocation1] sm:$0xff pattern:$0x73625140] }
  0xbb   : > { %1239 = vst [vmem:[#allocation1] ss:$4 sm:$0xff] %v2625_v4  ;;  %1301 = vmatmul.bf16.vlgmr.msra.gmra.mxu3 %v1237_v51 }
  0xbc   : > { %1240 = vst [vmem:[#allocation1 + $0x1] ss:$4 sm:$0xff] %v2628_v7 }
  0xbe   : > { %975 = vmatmul.bf16.gmra.mxu1 %v907_v37 }
  0xc3   : > { %v1241_v52 = vld.sshfl [vmem:[#allocation1] sm:$0xff pattern:$0x73625140] }
  0xc4   : > { %1388 = vst [vmem:[#allocation1] ss:$4 sm:$0xff] %v2609_v50 }
  0xc5   : > { %1390 = vst [vmem:[#allocation1 + $0x1] ss:$4 sm:$0xff] %v2612_v54 }
  0xc6   : > { %1392 = vst [vmem:[#allocation1 + $0x2] ss:$4 sm:$0xff] %v2615_v55 }
  0xc7   : > { %1394 = vst [vmem:[#allocation1 + $0x3] ss:$4 sm:$0xff] %v2618_v58 }
  0xc9   : > { %1146 = vmatmul.bf16.gmra.mxu2 %v1076_v49 }
  0xcb   : > { %1306 = vmatmul.bf16.gmra.mxu3 %v1238_v48 }
  0xce   : > { %980 = vmatmul.bf16.gmra.mxu1 %v910_v39  ;;  %v1403_v53 = vld.sshfl [vmem:[#allocation1] sm:$0xff pattern:$0x73625140] }
  0xcf   : > { %1405 = vst [vmem:[#allocation1] ss:$4 sm:$0xff] %v2625_v4  ;;  %1467 = vmatmul.bf16.vlgmr.msrb.gmra.mxu0 %v1403_v53 }
  0xd0   : > { %1406 = vst [vmem:[#allocation1 + $0x1] ss:$4 sm:$0xff] %v2628_v7 }
  0xd7   : > { %v1407_v56 = vld.sshfl [vmem:[#allocation1] sm:$0xff pattern:$0x73625140] }
  0xd9   : > { %1477 = vmatmul.bf16.vlgmr.msrb.gmra.mxu2 %v1407_v56 }
  0xdb   : > { %1311 = vmatmul.bf16.gmra.mxu3 %v1241_v52 }
  0xdf   : > { %1472 = vmatmul.bf16.gmra.mxu0 %v1404_v57 }
 0x10b   : > { %v2688_v50 = vpop.f32.mrf.mxu1  ;;  %v848_v59 = vpop.f32.mrf.mxu0 }
 0x10c   : > { %v866_v28 = vrot.slane %v848_v59, 4 }
 0x113   : > { %v860_v54 = vpop.f32.mrf.mxu1  ;;  %v2690_v58 = vpop.f32.mrf.mxu0 }
 0x11b   : > { %v2694_v0 = vpop.f32.mrf.mxu0 }
 0x123   : > { %v2710_v14 = vpop.f32.mrf.mxu0 }
 0x12b   : > { %v971_v55 = vpop.f32.mrf.mxu1 }
 0x12c   : > { %v1137_v60 = vpop.f32.mrf.mxu2  ;;  %v990_v3 = vrot.slane %v971_v55, 4  ;;  %v2068_v5 = vrot.slane %v971_v55, 9 }
 0x12d   : > { %v1156_v8 = vrot.slane %v1137_v60, 4  ;;  %v2104_v23 = vrot.slane %v1137_v60, 10 }
 0x12e   : > { %v1000_v6 = vrot.slane %v990_v3, 5 }
 0x12f   : > { %v1165_v17 = vrot.slane %v1156_v8, 6 }
 0x130   : > { %v1001_v13 = vsel %vm2700_vm10, %v2068_v5, %v1000_v6  ;;  %v1002_v21 = vrot.slane %v1000_v6, 4 }
 0x131   : > { %v1032_v22 = vadd.f32 %v1001_v13, %v848_v59  ;;  %v1166_v32 = vsel %vm2713_vm12, %v2104_v23, %v1165_v17  ;;  %v1167_v39 = vrot.slane %v1165_v17, 4 }
 0x133   : > { %v973_v61 = vpop.f32.mrf.mxu1  ;;  %v1197_v37 = vadd.f32 %v1166_v32, %v1032_v22 }
 0x134   : > { %v1139_v62 = vpop.f32.mrf.mxu2  ;;  %v991_v15 = vrot.slane %v973_v61, 4  ;;  %v1003_v16 = vrot.slane %v973_v61, 5  ;;  %v867_v61 = vrot.slane %v2690_v58, 4 }
 0x135   : > { %v1157_v29 = vrot.slane %v1139_v62, 4  ;;  %v1168_v30 = vrot.slane %v1139_v62, 6 }
 0x136   : > { %v1005_v25 = vrot.slane %v1003_v16, 4  ;;  %v1006_v27 = vrot.slane %v991_v15, 5  ;;  %v1004_v31 = vsel %vm2700_vm10, %v1002_v21, %v1003_v16 }
 0x137   : > { %v1033_v41 = vadd.f32 %v1004_v31, %v866_v28  ;;  %v1170_v44 = vrot.slane %v1168_v30, 4  ;;  %v1171_v45 = vrot.slane %v1157_v29, 6  ;;  %v1169_v55 = vsel %vm2713_vm12, %v1167_v39, %v1168_v30 }
 0x138   : > { %v1007_v40 = vsel %vm2700_vm10, %v1005_v25, %v1006_v27  ;;  %v1008_v56 = vrot.slane %v1006_v27, 4 }
 0x139   : > { %v1034_v57 = vadd.f32 %v1007_v40, %v2690_v58  ;;  %v1198_v3 = vadd.f32 %v1169_v55, %v1033_v41  ;;  %v1173_v16 = vrot.slane %v1171_v45, 4 }
 0x13b   : > { %v2692_v63 = vpop.f32.mrf.mxu1 }
 0x13c   : > { %v2696_v1 = vpop.f32.mrf.mxu2  ;;  %v1009_v43 = vrot.slane %v2692_v63, 5  ;;  %v2070_v27 = vrot.slane %v2692_v63, 13 }
 0x13d   : > { %v1174_v5 = vrot.slane %v2696_v1, 6 }
 0x13e   : > { %v1302_v4 = vpop.f32.mrf.mxu3  ;;  %v1010_v62 = vsel %vm2700_vm10, %v1008_v56, %v1009_v43  ;;  %v869_v43 = vrot.slane %v2710_v14, 4 }
 0x13f   : > { %v1321_v9 = vrot.slane %v1302_v4, 4  ;;  %v2140_v24 = vrot.slane %v1302_v4, 11  ;;  %v1172_v4 = vsel %vm2713_vm12, %v1170_v44, %v1171_v45  ;;  %v1175_v30 = vsel %vm2713_vm12, %v1173_v16, %v1174_v5 }
 0x140   : > { %v1199_v13 = vadd.f32 %v1172_v4, %v1034_v57 }
 0x141   : > { %v1331_v18 = vrot.slane %v1321_v9, 7 }
 0x143   : > { %v2698_v2 = vpop.f32.mrf.mxu1  ;;  %v1332_v33 = vsel %vm2569_vm2, %v2140_v24, %v1331_v18  ;;  %v1333_v48 = vrot.slane %v1331_v18, 4 }
 0x144   : > { %v2704_v10 = vpop.f32.mrf.mxu2  ;;  %v1363_v46 = vadd.f32 %v1332_v33, %v1197_v37  ;;  %v993_v53 = vrot.slane %v2698_v2, 4  ;;  %v1013_v60 = vrot.slane %v2698_v2, 5 }
 0x145   : > { %v1159_v21 = vrot.slane %v2704_v10, 4  ;;  %v1178_v39 = vrot.slane %v2704_v10, 6 }
 0x146   : > { %v1304_v19 = vpop.f32.mrf.mxu3  ;;  %v1016_v8 = vrot.slane %v993_v53, 5  ;;  %v1015_v18 = vrot.slane %v1013_v60, 4 }
 0x147   : > { %v1322_v34 = vrot.slane %v1304_v19, 4  ;;  %v1334_v35 = vrot.slane %v1304_v19, 7  ;;  %v1035_v19 = vadd.f32 %v1010_v62, %v867_v61  ;;  %v1181_v40 = vrot.slane %v1159_v21, 6 }
 0x148   : > { %v1018_v28 = vrot.slane %v1016_v8, 4  ;;  %v1017_v37 = vsel %vm2700_vm10, %v1015_v18, %v1016_v8  ;;  %v1180_v57 = vrot.slane %v1178_v39, 4 }
 0x149   : > { %v1336_v49 = vrot.slane %v1334_v35, 4  ;;  %v1337_v51 = vrot.slane %v1322_v34, 7  ;;  %v1335_v59 = vsel %vm2569_vm2, %v1333_v48, %v1334_v35  ;;  %v1014_v35 = vsel %vm2700_vm10, %v2070_v27, %v1013_v60 }
 0x14a   : > { %v1364_v15 = vadd.f32 %v1335_v59, %v1198_v3  ;;  %v1037_v10 = vadd.f32 %v1017_v37, %v2710_v14  ;;  %v1183_v55 = vrot.slane %v1181_v40, 4 }
 0x14b   : > { %v2706_v11 = vpop.f32.mrf.mxu1  ;;  %v1338_v6 = vsel %vm2569_vm2, %v1336_v49, %v1337_v51  ;;  %v1339_v25 = vrot.slane %v1337_v51, 4  ;;  %v2106_v49 = vrot.slane %v2696_v1, 14 }
 0x14c   : > { %v2723_v36 = vpop.f32.mrf.mxu2  ;;  %v1468_v42 = vpop.f32.mrf.mxu0  ;;  %v1019_v2 = vrot.slane %v2706_v11, 5  ;;  %v1365_v22 = vadd.f32 %v1338_v6, %v1199_v13  ;;  %v2071_v34 = vrot.slane %v2706_v11, 9  ;;  %v868_v11 = vrot.slane %v2694_v0, 4 }
 0x14d   : > { %v1486_v47 = vrot.slane %v1468_v42, 4  ;;  %v1184_v41 = vrot.slane %v2723_v36, 6  ;;  %v1179_v3 = vsel %vm2713_vm12, %v2106_v49, %v1178_v39  ;;  %v2107_v14 = vrot.slane %v2723_v36, 10 }
 0x14e   : > { %v2728_v52 = vpop.f32.mrf.mxu3  ;;  %v1021_v33 = vrot.slane %v1019_v2, 4  ;;  %v1020_v42 = vsel %vm2700_vm10, %v1018_v28, %v1019_v2  ;;  %v1036_v56 = vadd.f32 %v1014_v35, %v868_v11  ;;  %v1182_v2 = vsel %vm2713_vm12, %v1180_v57, %v1181_v40 }
 0x14f   : > { %v2732_v54 = vadd.f32 %v1486_v47, %v1363_v46  ;;  %v1340_v58 = vrot.slane %v2728_v52, 7  ;;  %v1038_v53 = vadd.f32 %v1020_v42, %v869_v43  ;;  %v1186_v59 = vrot.slane %v1184_v41, 4 }
 0x150   : > { %v1023_v47 = vsel %vm2700_vm10, %v1021_v33, %v2071_v34  ;;  %v2142_v60 = vrot.slane %v2728_v52, 15  ;;  %v1185_v1 = vsel %vm2713_vm12, %v1183_v55, %v1184_v41  ;;  %v1201_v8 = vadd.f32 %v1179_v3, %v1036_v56 }
 0x151   : > { %v1341_v63 = vsel %vm2569_vm2, %v1339_v25, %v1340_v58  ;;  %v1039_v62 = vadd.f32 %v1023_v47, %v2688_v50  ;;  %v1203_v6 = vadd.f32 %v1185_v1, %v1038_v53  ;;  %v1188_v52 = vsel %vm2713_vm12, %v1186_v59, %v2107_v14 }
 0x152   : > { %v1202_v18 = vadd.f32 %v1182_v2, %v1037_v10 }
 0x153   : > { %v983_v38 = vpop.f32.mrf.mxu1  ;;  %v1204_v16 = vadd.f32 %v1188_v52, %v1039_v62 }
 0x154   : > { %v1149_v9 = vpop.f32.mrf.mxu2  ;;  %v1470_v17 = vpop.f32.mrf.mxu0  ;;  %v1200_v38 = vadd.f32 %v1175_v30, %v1035_v19 }
 0x155   : > { %v1487_v23 = vrot.slane %v1470_v17, 4  ;;  %v2750_v24 = vadd.f32 %v1470_v17, %v1364_v15 }
 0x156   : > { %v1309_v29 = vpop.f32.mrf.mxu3  ;;  %v1366_v46 = vadd.f32 %v1341_v63, %v1200_v38 }
 0x157   : > { %v2755_v31 = vadd.f32 %v1487_v23, %v1365_v22  ;;  %v1324_v32 = vrot.slane %v1309_v29, 4  ;;  %v1344_v44 = vrot.slane %v1309_v29, 7 }
 0x159   : > { %v1347_v45 = vrot.slane %v1324_v32, 7  ;;  %v1346_v61 = vrot.slane %v1344_v44, 4  ;;  %v1345_v9 = vsel %vm2569_vm2, %v2142_v60, %v1344_v44 }
 0x15a   : > { %v1367_v19 = vadd.f32 %v1345_v9, %v1201_v8 }
 0x15b   : > { %v1349_v4 = vrot.slane %v1347_v45, 4  ;;  %v1348_v36 = vsel %vm2569_vm2, %v1346_v61, %v1347_v45 }
 0x15c   : > { %v1478_v48 = vpop.f32.mrf.mxu2  ;;  %v1473_v51 = vpop.f32.mrf.mxu0  ;;  %v1368_v28 = vadd.f32 %v1348_v36, %v1202_v18 }
 0x15d   : > { %v2774_v0 = vadd.f32 %v1473_v51, %v1366_v46  ;;  %v1489_v23 = vrot.slane %v1478_v48, 4 }
 0x15e   : > { %v1312_v7 = vpop.f32.mrf.mxu3 }
 0x15f   : > { %v1350_v5 = vrot.slane %v1312_v7, 7  ;;  %v2143_v15 = vrot.slane %v1312_v7, 11 }
 0x161   : > { %v1351_v50 = vsel %vm2569_vm2, %v1349_v4, %v1350_v5  ;;  %v1352_v13 = vrot.slane %v1350_v5, 4 }
 0x162   : > { %v1369_v58 = vadd.f32 %v1351_v50, %v1203_v6 }
 0x163   : > { %v1354_v17 = vsel %vm2569_vm2, %v1352_v13, %v2143_v15  ;;  %1505 = sbr.rel (%p2176_p6) target bundleno = 410 (0x19a), region = 105 }
 0x164   : > { %v1480_v21 = vpop.f32.mrf.mxu2  ;;  %v1370_v22 = vadd.f32 %v1354_v17, %v1204_v16  ;;  %v2795_v25 = vadd.f32 %v1478_v48, %v1369_v58  ;;  %v1475_v27 = vpop.f32.mrf.mxu0 }
 0x165   : > { %v1488_v29 = vrot.slane %v1475_v27, 4  ;;  %v2797_v20 = vadd.f32 %v1475_v27, %v1367_v19 }
 0x166   : > { %v2799_v30 = vadd.f32 %v1489_v23, %v1370_v22  ;;  %v1314_v32 = vpop.f32.mrf.mxu3 }
 0x167   : > { %v2801_v33 = vadd.f32 %v1488_v29, %v1368_v28 }
 0x168   : > { %1514 = vst [vmem:[#allocation1] ss:$2 sm:$0xff] %v2732_v54  ;;  %v1586_v39 = vmul.f32 %v2732_v54, %v2732_v54  ;;  %v1587_v40 = vmul.f32 %v2750_v24, %v2750_v24  ;;  %v1588_v42 = vmul.f32 %v2755_v31, %v2755_v31  ;;  %v1589_v11 = vmul.f32 %v2774_v0, %v2774_v0 }
 0x169   : > { %1516 = vst [vmem:[#allocation1 + $0x1] ss:$2 sm:$0xff] %v2750_v24  ;;  %v1590_v44 = vmul.f32 %v2797_v20, %v2797_v20  ;;  %v1591_v46 = vmul.f32 %v2801_v33, %v2801_v33  ;;  %v1545_v47 = vpack.c.bf16 %v2732_v54, %v2732_v54  ;;  %v1592_v49 = vmul.f32 %v2795_v25, %v2795_v25 }
 0x16a   : > { %1518 = vst [vmem:[#allocation1 + $0x10] ss:$2 sm:$0xff] %v2755_v31  ;;  %v1593_v51 = vmul.f32 %v2799_v30, %v2799_v30  ;;  %v1546_v53 = vpack.c.bf16 %v2797_v20, %v2797_v20  ;;  %v1549_v57 = vpack.c.bf16 %v2774_v0, %v2774_v0  ;;  %v1550_v59 = vpack.c.bf16 %v2799_v30, %v2799_v30 }
 0x16b   : > { %1520 = vst [vmem:[#allocation1 + $0x11] ss:$2 sm:$0xff] %v2774_v0 }
 0x16c   : > { %1524 = vst [vmem:[#allocation1 + $0x20] ss:$2 sm:$0xff] %v2797_v20 }
 0x16d   : > { %1526 = vst [vmem:[#allocation1 + $0x21] ss:$2 sm:$0xff] %v2801_v33 }
 0x16e   : > { %1528 = vst [vmem:[#allocation1 + $0x30] ss:$2 sm:$0xff] %v2795_v25 }
 0x16f   : > { %1530 = vst [vmem:[#allocation1 + $0x31] ss:$2 sm:$0xff] %v2799_v30 }
 0x170   : > { %v1521_v26 = vld.sshfl [vmem:[#allocation1] sm:$0xff pattern:$0x75316420]  ;;  %1547 = vst [vmem:[%s2557_s26] sm:$0x1] %v1545_v47 }
 0x171   : > { %1553 = vst [vmem:[#allocation1] ss:$2 sm:$0xff] %v2732_v54 }
 0x172   : > { %1555 = vst [vmem:[#allocation1 + $0x1] ss:$2 sm:$0xff] %v2750_v24  ;;  %v1522_v34 = vld.sshfl [vmem:[#allocation1 + $0x10] sm:$0xff pattern:$0x75316420] }
 0x173   : > { %1557 = vst [vmem:[#allocation1 + $0x10] ss:$2 sm:$0xff] %v2755_v31  ;;  %v2244_v35 = vpack.c.bf16 %v1522_v34, %v1521_v26 }
 0x174   : > { %1559 = vst [vmem:[#allocation1 + $0x11] ss:$2 sm:$0xff] %v2774_v0  ;;  %v1531_v37 = vld.sshfl [vmem:[#allocation1 + $0x20] sm:$0xff pattern:$0x75316420] }
 0x175   : > { %2245 = vst [vmem:[%s2578_s20] sm:$0xff] %v2244_v35  }
 0x176   : > { %1563 = vst [vmem:[#allocation1 + $0x20] ss:$2 sm:$0xff] %v2797_v20  ;;  %v1532_v38 = vld.sshfl [vmem:[#allocation1 + $0x30] sm:$0xff pattern:$0x75316420] }
 0x177   : > { %1565 = vst [vmem:[#allocation1 + $0x21] ss:$2 sm:$0xff] %v2801_v33  ;;  %v2249_v63 = vpack.c.bf16 %v1532_v38, %v1531_v37 }
 0x178   : > { %1567 = vst [vmem:[#allocation1 + $0x30] ss:$2 sm:$0xff] %v2795_v25 }
 0x179   : > { %2262 = vst [vmem:[%s2578_s20 + $0x8] sm:$0xff] %v2249_v63   ;;  %v1560_v41 = vld.sshfl [vmem:[#allocation1] sm:$0xff pattern:$0x75316420] }
 0x17a   : > { %1569 = vst [vmem:[#allocation1 + $0x31] ss:$2 sm:$0xff] %v2799_v30 }
 0x17b   : > { %1602 = vst [vmem:[#allocation1] ss:$2 sm:$0xff] %v1586_v39  ;;  %v1561_v43 = vld.sshfl [vmem:[#allocation1 + $0x10] sm:$0xff pattern:$0x75316420] }
 0x17c   : > { %1604 = vst [vmem:[#allocation1 + $0x1] ss:$2 sm:$0xff] %v1587_v40  ;;  %v1576_v45 = vadd.f32 %v1561_v43, %v1560_v41 }
 0x17d   : > { %1606 = vst [vmem:[#allocation1 + $0x10] ss:$2 sm:$0xff] %v1588_v42 }
 0x17e   : > { %1608 = vst [vmem:[#allocation1 + $0x11] ss:$2 sm:$0xff] %v1589_v11  ;;  %v1570_v48 = vld.sshfl [vmem:[#allocation1 + $0x20] sm:$0xff pattern:$0x75316420] }
 0x17f   : > { %v1577_v10 = vadd.f32 %v1576_v45, %v1570_v48  ;;  %1612 = vst [vmem:[#allocation1 + $0x20] ss:$2 sm:$0xff] %v1590_v44 }
 0x180   : > { %1614 = vst [vmem:[#allocation1 + $0x21] ss:$2 sm:$0xff] %v1591_v46 }
 0x181   : > { %v1571_v56 = vld.sshfl [vmem:[#allocation1 + $0x30] sm:$0xff pattern:$0x75316420]  ;;  %1548 = vst [vmem:[%s2557_s26 + $0x2] sm:$0x1] %v1546_v53 }
 0x182   : > { %v1578_v55 = vadd.f32 %v1577_v10, %v1571_v56  ;;  %1616 = vst [vmem:[#allocation1 + $0x30] ss:$2 sm:$0xff] %v1592_v49 }
 0x183   : > { %1618 = vst [vmem:[#allocation1 + $0x31] ss:$2 sm:$0xff] %v1593_v51  ;;  %v1609_v60 = vld.sshfl [vmem:[#allocation1] sm:$0xff pattern:$0x75316420] }
 0x184   : > { %v1579_v61 = vrot.slane %v1578_v55, 4  ;;  %1551 = vst [vmem:[%s2557_s26] sm:$0x2] %v1549_v57 }
 0x185   : > { %v1610_v62 = vld.sshfl [vmem:[#allocation1 + $0x10] sm:$0xff pattern:$0x75316420]  ;;  %1552 = vst [vmem:[%s2557_s26 + $0x2] sm:$0x2] %v1550_v59 }
 0x186   : > { %v1580_v7 = vadd.f32 %v1579_v61, %v1578_v55  ;;  %v1625_v3 = vadd.f32 %v1610_v62, %v1609_v60 }
 0x187   : > { %v1619_v1 = vld.sshfl [vmem:[#allocation1 + $0x20] sm:$0xff pattern:$0x75316420] }
 0x188   : > { %v1581_v14 = vrot.slane %v1580_v7, 2  ;;  %v1626_v4 = vadd.f32 %v1625_v3, %v1619_v1 }
 0x18a   : > { %v1582_v5 = vadd.f32 %v1581_v14, %v1580_v7  ;;  %v1620_v6 = vld.sshfl [vmem:[#allocation1 + $0x30] sm:$0xff pattern:$0x75316420] }
 0x18b   : > { %v1627_v8 = vadd.f32 %v1626_v4, %v1620_v6 }
 0x18c   : > { %v1583_v9 = vrot.slane %v1582_v5, 1 }
 0x18d   : > { %v1628_v52 = vrot.slane %v1627_v8, 4 }
 0x18e   : > { %v1584_v50 = vadd.f32 %v1583_v9, %v1582_v5 }
 0x18f   : > { %v1629_v13 = vadd.f32 %v1628_v52, %v1627_v8 }
 0x190   : > { %1585 = vst [vmem:[%s2562_s14] sm:$0x1] %v1584_v50 }
 0x191   : > { %v1630_v15 = vrot.slane %v1629_v13, 2 }
 0x193   : > { %v1631_v2 = vadd.f32 %v1630_v15, %v1629_v13 }
 0x195   : > { %v1632_v36 = vrot.slane %v1631_v2, 1 }
 0x197   : > { %v1633_v16 = vadd.f32 %v1632_v36, %v1631_v2 }
 0x199   : > { %1634 = vst [vmem:[%s2567_s21] sm:$0x1] %v1633_v16 }
 0x19a PF: > { %1637 = sbr.rel (%p1997_p4) target bundleno = 450 (0x1c2), region = 109 }
 0x19f   : > { %1657 = vst [vmem:[#allocation1] ss:$2 sm:$0xff] %v2732_v54  ;;  %v1639_v58 = vadd.s32 8, %v2601_v12  ;;  %v1640_v17 = vstv %s2190_s30 }
 0x1a0   : > { %1659 = vst [vmem:[#allocation1 + $0x1] ss:$2 sm:$0xff] %v2750_v24  ;;  %v1641_v18 = vadd.s32 %v1640_v17, %v2601_v12 }
 0x1a1   : > { %1661 = vst [vmem:[#allocation1 + $0x10] ss:$2 sm:$0xff] %v2755_v31  ;;  %v1642_v19 = vadd.s32 %v1640_v17, %v1639_v58 }
 0x1a2   : > { %1663 = vst [vmem:[#allocation1 + $0x11] ss:$2 sm:$0xff] %v2774_v0  ;;  %vm1643_vm13 = vcmp.lt.s32.totalorder %v1641_v18, 40 }
 0x1a3   : > { %1671 = vst [vmem:[#allocation1 + $0x30] ss:$2 sm:$0xff] %v2795_v25  ;;  %vm1644_vm14 = vcmp.lt.s32.totalorder %v1642_v19, 40 }
 0x1a4   : > { %1673 = vst [vmem:[#allocation1 + $0x31] ss:$2 sm:$0xff] %v2799_v30 }
 0x1a5   : > { %1667 = vst [vmem:[#allocation1 + $0x20] ss:$2 sm:$0xff] %v2797_v20 }
 0x1a6   : > { %1669 = vst [vmem:[#allocation1 + $0x21] ss:$2 sm:$0xff] %v2801_v33 }
 0x1a7   : > { %v1664_v54 = vld.sshfl [vmem:[#allocation1] sm:$0xff pattern:$0x75316420] }
 0x1a8   : > { %v1680_v24 = vsel %vm1643_vm13, %v1664_v54, 0.0 }
 0x1a9   : > { %v1665_v31 = vld.sshfl [vmem:[#allocation1 + $0x10] sm:$0xff pattern:$0x75316420]  ;;  %v1716_v12 = vmul.f32 %v1680_v24, %v1680_v24  ;;  %v1684_v21 = vpack.c.bf16 %v1680_v24, %v1680_v24 }
 0x1aa   : > { %v1681_v0 = vsel %vm1644_vm14, %v1665_v31, 0.0 }
 0x1ab   : > { %v1675_v22 = vld.sshfl [vmem:[#allocation1 + $0x30] sm:$0xff pattern:$0x75316420]  ;;  %v2254_v23 = vpack.c.bf16 %v1681_v0, %v1680_v24  ;;  %v1706_v25 = vadd.f32 %v1681_v0, %v1680_v24  ;;  %v1717_v27 = vmul.f32 %v1681_v0, %v1681_v0  ;;  %1692 = vst [vmem:[%s2557_s26] sm:$0x1] %v1684_v21  ;;  %v1685_v28 = vpack.c.bf16 %v1681_v0, %v1681_v0 }
 0x1ac   : > { %v1683_v29 = vsel %vm1644_vm14, %v1675_v22, 0.0 }
 0x1ad   : > { %2255 = vst [vmem:[%s2578_s20] sm:$0xff] %v2254_v23   ;;  %v1687_v20 = vpack.c.bf16 %v1683_v29, %v1683_v29  ;;  %v1674_v30 = vld.sshfl [vmem:[#allocation1 + $0x20] sm:$0xff pattern:$0x75316420]  ;;  %v1720_v32 = vadd.f32 %v1717_v27, %v1716_v12  ;;  %v1719_v26 = vmul.f32 %v1683_v29, %v1683_v29 }
 0x1ae   : > { %1695 = vst.sshfl [vmem:[#allocation1] sm:$0xff pattern:$0x75643120] %v1685_v28  ;;  %v1682_v33 = vsel %vm1643_vm13, %v1674_v30, 0.0 }
 0x1af   : > { %1699 = vst.sshfl [vmem:[#allocation1 + $0x10] sm:$0xff pattern:$0x75643120] %v1687_v20  ;;  %v2259_v34 = vpack.c.bf16 %v1683_v29, %v1682_v33  ;;  %v1718_v35 = vmul.f32 %v1682_v33, %v1682_v33  ;;  %v1686_v37 = vpack.c.bf16 %v1682_v33, %v1682_v33  ;;  %v1707_v38 = vadd.f32 %v1706_v25, %v1682_v33 }
 0x1b1   : > { %2263 = vst [vmem:[%s2578_s20 + $0x8] sm:$0xff] %v2259_v34   ;;  %v1708_v63 = vadd.f32 %v1707_v38, %v1683_v29  ;;  %v1721_v39 = vadd.f32 %v1720_v32, %v1718_v35 }
 0x1b2   : > { %1693 = vst [vmem:[%s2557_s26 + $0x2] sm:$0x1] %v1686_v37 }
 0x1b3   : > { %v1709_v40 = vrot.slane %v1708_v63, 4  ;;  %v1722_v41 = vadd.f32 %v1721_v39, %v1719_v26 }
 0x1b5   : > { %v1697_v42 = vld [vmem:[#allocation1 + $0x1] ss:$2 sm:$0xff]  ;;  %v1710_v11 = vadd.f32 %v1709_v40, %v1708_v63  ;;  %v1723_v43 = vrot.slane %v1722_v41, 4 }
 0x1b6   : > { %1704 = vst [vmem:[%s2557_s26] sm:$0x2] %v1697_v42  ;;  %v1701_v44 = vld [vmem:[#allocation1 + $0x11] ss:$2 sm:$0xff] }
 0x1b7   : > { %1705 = vst [vmem:[%s2557_s26 + $0x2] sm:$0x2] %v1701_v44  ;;  %v1711_v45 = vrot.slane %v1710_v11, 2  ;;  %v1724_v46 = vadd.f32 %v1723_v43, %v1722_v41 }
 0x1b9   : > { %v1712_v47 = vadd.f32 %v1711_v45, %v1710_v11  ;;  %v1725_v48 = vrot.slane %v1724_v46, 2 }
 0x1bb   : > { %v1713_v49 = vrot.slane %v1712_v47, 1  ;;  %v1726_v10 = vadd.f32 %v1725_v48, %v1724_v46 }
 0x1bd   : > { %v1714_v51 = vadd.f32 %v1713_v49, %v1712_v47  ;;  %v1727_v53 = vrot.slane %v1726_v10, 1 }
 0x1bf   : > { %1715 = vst [vmem:[%s2562_s14] sm:$0x1] %v1714_v51  ;;  %v1728_v56 = vadd.f32 %v1727_v53, %v1726_v10 }
 0x1c1   : > { %1729 = vst [vmem:[%s2567_s21] sm:$0x1] %v1728_v56 }
 0x1c2 PF: > { %1747 = sbr.rel (!%p2487_p5) target bundleno = 455 (0x1c7), region = 113  ;;  %s2232_s29 = sshll.u32 (%p2487_p5), %s2468_s12, 3  ;;  %v1767_v57 = vld [vmem:[%s2578_s20] sm:$0xff] (%p2487_p5)   ;;  %v1771_v55 = vld [vmem:[%s2578_s20 + $0x8] sm:$0xff] (%p2487_p5)  }
 0x1c3   : > { %s1750_s28 = scalar_lea.vmem (%p2487_p5), %s2900_s6, %s2232_s29 }
 0x1c4   : > { %1768 = vst [vmem:[%s1750_s28] sm:$0xff] (%p2487_p5), %v1767_v57  }
 0x1c5   : > { %1772 = vst [vmem:[%s1750_s28 + $0x18] sm:$0xff] (%p2487_p5), %v1771_v55  }
 0x1c7 PF: > { %p18_p7 = scmp.ge.s32.totalorder %s2471_s13, 5   ;;  %s2914_s30 = smov %s2391_s10 }
 0x1c8   : > { %s2915_s10 = smov %s2481_s16  ;;  %s2916_s11 = smov %s2471_s13 }
 0x1c9   :  { %20 = sbr.rel (!%p18_p7) target bundleno = 2 (0x2), region = 297 }
 0x1ce   :  { %1845 = vsyncpa [#allocation5], 1 }
 0x1cf   :  { %1847 = vsyncpa [#allocation5 + $0x1], 1 }

// kernel: postnet_forward.12
= control target key start
LH: loop header
LB: loop body
LE: loop exit
PB: predicated region body
PF: predicated region fallthrough
CT: control target
= control target key end

     0   :  { %s3093_s0 = inlined_call_operand.vmem [shape: bf16[2,48,128], index: 0, kind: input, shape index: {}]   ;;  %s3094_s1 = inlined_call_operand.vmem [shape: bf16[3,2,4,128], index: 1, kind: input, shape index: {}, may-alias: {1,2}]   ;;  %s3095_s2 = inlined_call_operand.vmem [shape: bf16[3,2,4,128], index: 2, kind: input, shape index: {}, may-alias: {1,2}]   ;;  %s3096_s3 = inlined_call_operand.vmem [shape: f32[1,128], index: 3, kind: input, shape index: {}]   ;;  %s3097_s4 = inlined_call_operand.vmem [shape: f32[1,128], index: 4, kind: input, shape index: {}]   ;;  %s3098_s5 = inlined_call_operand.vmem [shape: bf16[5,128,128], index: 5, kind: input, shape index: {}]   ;;  %s3099_s6 = inlined_call_operand.vmem [shape: bf16[2,48,128], index: 6, kind: output, shape index: {0}]   ;;  %s3100_s7 = inlined_call_operand.hbm [shape: bf16[3,2,4,128], index: 7, kind: output, shape index: {1}]   ;;  %s3101_s8 = inlined_call_operand.vmem [shape: f32[3,1,128], index: 8, kind: output, shape index: {2}]   ;;  %s3102_s9 = inlined_call_operand.vmem [shape: f32[3,1,128], index: 9, kind: output, shape index: {3}]  }
   0x1   :  { %3105 = sst [smem:[#allocation9_spill]] %s3093_s0 }
   0x2   :  { %3106 = sst [smem:[#allocation10_spill]] %s3094_s1 }
   0x3   :  { %15 = vsyncpa [#allocation6], 0 }
   0x4   :  { %17 = vsyncpa [#allocation6 + $0x1], 0  ;;  %s2516_s30 = smov 0   ;;  %s2518_s10 = smov 0  }
   0x5   :  { %s2520_s11 = smov 0   ;;  %s2522_s12 = smov 0  }
   0x6 LB: > { %s2537_s13 = sadd.s32 4294967295, %s2460_s12   ;;  %s1960_s14 = sadd.s32 4294967294, %s2460_s12   ;;  %s2460_s12 = sphi %s2522_s12, %s3126_s12   ;;  %s2456_s11 = sphi %s2520_s11, %s3125_s11   ;;  %s2452_s10 = sphi %s2518_s10, %s3124_s10   ;;  %s2448_s30 = sphi %s2516_s30, %s3123_s30  }
   0x7   : > { %s2541_s15 = sadd.s32 1, %s2460_s12   ;;  %s30_s16 = sadd.s32 1, %s2456_s11 }
   0x8   : > { %s27_s17 = ssub.s32 %s2460_s12, %s2541_s15  ;;  %p37_p0 = scmp.ne.s32.totalorder %s2456_s11, %s2452_s10 }
   0x9   : > { %p28_p1 = scmp.eq.s32.totalorder %s27_s17, 0  ;;  %p38_p2 = scmp.eq.s32.totalorder %s2460_s12, 0 }
   0xa   : > { %p194_p3 = scmp.eq.s32.totalorder %s2537_s13, 2  ;;  %p225_p4 = scmp.ne.s32.totalorder %s2452_s10, %s2448_s30 }
   0xb   : > { %s2553_s18 = scalar_select %p28_p1, %s2456_s11, %s30_s16  }
   0xc   : > { %p39_p5 = por %p38_p2, %p37_p0  ;;  %p2555_p6 = por %p194_p3, %p37_p0 }
   0xd   : > { %3107 = sst [smem:[#allocation8_spill]] %s2553_s18  ;;  %p226_p7 = scmp.eq.s32.totalorder %s1960_s14, 2 }
   0xe   : > { %p1964_p9 = scmp.ge.s32.totalorder %s2460_s12, 3 }
   0xf   : > { %p2559_p8 = por %p226_p7, %p225_p4 }
  0x10   : > { %303 = sbr.rel (%p1964_p9) target bundleno = 33 (0x21), region = 28 }
  0x15   : > { %306 = sbr.rel (!%p39_p5) target bundleno = 33 (0x21), region = 32  ;;  %s308_s21 = sand.u32 (%p39_p5), 1, %s2456_s11  }
  0x16   : > { %s2239_s22 = sshll.u32 (%p39_p5), %s2460_s12, 3  ;;  %s1965_s23 = sshll.u32 (%p39_p5), %s308_s21, 4 }
  0x17   : > { %s3110_s0 = sld [smem:[#allocation9_spill]] (%p39_p5)  ;;  %s310_s27 = scalar_lea.vmem (%p39_p5), [#allocation3], %s1965_s23 }
  0x1d   : > { %s313_s26 = scalar_lea.vmem %s3110_s0, %s2239_s22 }
  0x1e   : > { %v330_v0 = vld [vmem:[%s313_s26] sm:$0xff]   ;;  %v334_v1 = vld [vmem:[%s313_s26 + $0x18] sm:$0xff]  }
  0x1f   : > { %331 = vst [vmem:[%s310_s27] sm:$0xff] %v330_v0  }
  0x20   : > { %335 = vst [vmem:[%s310_s27 + $0x8] sm:$0xff] %v334_v1  }
  0x21 PF: > { %p1968_p10 = scmp.ge.s32.totalorder %s2460_s12, 1  ;;  %p396_p11 = scmp.lt.s32.totalorder %s2460_s12, 4 }
  0x23   : > { %p397_p12 = pnand %p1968_p10, %p396_p11 }
  0x24   : > { %s2572_s28 = sand.u32 (!%p397_p12), 1, %s2452_s10   ;;  %s1972_s29 = sadd.s32 (!%p397_p12), 4294967295, %s2537_s13 }
  0x25   : > { %400 = sbr.rel (%p397_p12) target bundleno = 482 (0x1e2), region = 81  ;;  %s3103_s14 = sshll.u32 (!%p397_p12), %s2572_s28, 4 }
  0x26   : > { %p466_p13 = scmp.gt.s32.totalorder (!%p397_p12), %s1972_s29, 0  ;;  %s405_s22 = scalar_lea.vmem (!%p397_p12), [#allocation3], %s3103_s14 }
  0x27   : > { %p1973_p0 = scmp.lt.s32.totalorder (!%p397_p12), %s1972_s29, 2  ;;  %s476_s23 = sadd.s32 (!%p397_p12), 1, %s2537_s13 }
  0x28   : > { %p2586_p1 = scmp.lt.s32.totalorder (!%p397_p12), %s476_s23, 2  ;;  %p488_p2 = scmp.lt.s32.totalorder (!%p397_p12), %s2537_s13, 2 }
  0x29   : > { %s3112_s1 = sld [smem:[#allocation10_spill]] (!%p397_p12)  ;;  %s3115_s18 = sshll.u32 (!%p397_p12), %s2572_s28, 4 }
  0x2a   : > { %v2378_v2 = vld [vmem:[%s3096_s3] ss:$0 sm:$0xff]  ;;  %v2316_v4 = vld [vmem:[%s405_s22 + $0x8] sm:$0xff]   ;;  %s467_s26 = scalar_select %p466_p13, %s1972_s29, 0  ;;  %vm531_vm0 = vcmask 1040384   ;;  %vm532_vm1 = vcmask 1044484  }
  0x2b   : > { %v2289_v3 = vld [vmem:[%s405_s22] sm:$0xff]   ;;  %v2294_v8 = vunpack.c.l.bf16 %v2316_v4  ;;  %v2295_v9 = vunpack.c.h.bf16 %v2316_v4  ;;  %s3130_s23 = smov (!%p2586_p1, %s476_s23), 2  ;;  %vm2619_vm2 = vmor %vm531_vm0, %vm532_vm1  ;;  %s2629_s14 = scalar_lea.vmem [#allocation4], %s3115_s18 }
  0x2c   : > { %v2290_v5 = vunpack.c.l.bf16 %v2289_v3  ;;  %v2291_v6 = vunpack.c.h.bf16 %v2289_v3  ;;  %v2379_v7 = vld [vmem:[%s3097_s4] ss:$0 sm:$0xff]  ;;  %s3128_s26 = smov (!%p1973_p0, %s467_s26), 2  ;;  %s3132_s23 = smov (!%p2586_p1, %s3130_s23), 2 }
  0x2d   : > { %v509_v12 = vmul.f32 %v2378_v2, %v2294_v8  ;;  %v510_v13 = vmul.f32 %v2378_v2, %v2295_v9  ;;  %s2242_s17 = sshll.u32 %s3128_s26, 2  ;;  %s2243_s29 = sshll.u32 %s3132_s23, 2 }
  0x2e   : > { %v507_v10 = vmul.f32 %v2378_v2, %v2290_v5  ;;  %v508_v11 = vmul.f32 %v2378_v2, %v2291_v6  ;;  %s489_s25 = scalar_select %p488_p2, %s2537_s13, 2 }
  0x2f   : > { %v517_v16 = vadd.f32 %v2379_v7, %v509_v12  ;;  %v518_v17 = vadd.f32 %v2379_v7, %v510_v13  ;;  %s2597_s24 = scalar_lea.vmem %s3112_s1, %s2242_s17  ;;  %s2607_s0 = scalar_lea.vmem %s3095_s2, %s2243_s29 }
  0x30   : > { %v515_v14 = vadd.f32 %v2379_v7, %v507_v10  ;;  %v516_v15 = vadd.f32 %v2379_v7, %v508_v11  ;;  %s2612_s21 = scalar_lea.vmem %s3101_s8, %s489_s25  ;;  %s2617_s27 = scalar_lea.vmem %s3102_s9, %s489_s25 }
  0x31   : > { %s3116_s16 = sshll.u32 %s2572_s28, 2  ;;  %p1985_p3 = scmp.ne.s32.totalorder %s2537_s13, 2 }
  0x32   : > { %2380 = vtanh.f32 %v515_v14  ;;  %s2633_s23 = scalar_lea.vmem [#allocation5], %s3116_s16  ;;  %s1986_s25 = sshll.u32 (!%p1985_p3), %s2537_s13, 4 }
  0x33   : > { %2382 = vtanh.f32 %v516_v15 }
  0x34   : > { %2384 = vtanh.f32 %v517_v16 }
  0x35   : > { %2386 = vtanh.f32 %v518_v17 }
  0x38   : > { %v2381_v18 = vpop.eup %2380 }
  0x39   : > { %v2383_v19 = vpop.eup %2382  ;;  %v523_v20 = vpack.c.bf16 %v2381_v18, %v2381_v18 }
  0x3a   : > { %v2385_v21 = vpop.eup %2384  ;;  %v524_v22 = vpack.c.bf16 %v2383_v19, %v2383_v19 }
  0x3b   : > { %v2387_v23 = vpop.eup %2386  ;;  %v534_v24 = vrot.slane %v523_v20, 7  ;;  %v525_v25 = vpack.c.bf16 %v2385_v21, %v2385_v21 }
  0x3c   : > { %v536_v27 = vrot.slane %v524_v22, 7  ;;  %v526_v28 = vpack.c.bf16 %v2387_v23, %v2387_v23 }
  0x3d   : > { %v535_v29 = vrot.slane %v534_v24, 4  ;;  %550 = vst [vmem:[#allocation2] sm:$0xe] %v534_v24  ;;  %v539_v30 = vrot.slane %v525_v25, 7 }
  0x3e   : > { %v538_v31 = vrot.slane %v536_v27, 4  ;;  %v541_v32 = vrot.slane %v526_v28, 7 }
  0x3f   : > { %v537_v33 = vsel %vm2619_vm2, %v535_v29, %v536_v27  ;;  %v540_v34 = vrot.slane %v539_v30, 4  ;;  %553 = vst [vmem:[#allocation2 + $0xc] sm:$0xe] %v539_v30  ;;  %559 = sbr.rel (%p1985_p3) target bundleno = 87 (0x57), region = 89 }
  0x40   : > { %551 = vst [vmem:[#allocation2 + $0x4] sm:$0xf] %v537_v33  ;;  %v543_v35 = vrot.slane %v541_v32, 4 }
  0x41   : > { %552 = vst [vmem:[#allocation2 + $0x8] sm:$0x1] %v538_v31  ;;  %v542_v36 = vsel %vm2619_vm2, %v540_v34, %v541_v32 }
  0x42   : > { %554 = vst [vmem:[#allocation2 + $0x10] sm:$0xf] %v542_v36 }
  0x43   : > { %555 = vst [vmem:[#allocation2 + $0x14] sm:$0x1] %v543_v35 }
  0x44   : > { %v561_v37 = vlaneseq  ;;  %v564_v38 = vstv %s1986_s25 }
  0x46   : > { %v562_v39 = vshrl.u32 %v561_v37, 7 }
  0x48   : > { %v565_v40 = vadd.s32 %v564_v38, %v562_v39  ;;  %v563_v41 = vadd.s32 8, %v562_v39 }
  0x4a   : > { %vm567_vm3 = vcmp.lt.s32.totalorder %v565_v40, 40  ;;  %v566_v42 = vadd.s32 %v564_v38, %v563_v41 }
  0x4b   : > { %v573_v43 = vsel %vm567_vm3, %v2381_v18, 0.0  ;;  %v575_v44 = vsel %vm567_vm3, %v2385_v21, 0.0 }
  0x4c   : > { %v577_v45 = vpack.c.bf16 %v573_v43, %v573_v43  ;;  %vm568_vm4 = vcmp.lt.s32.totalorder %v566_v42, 40  ;;  %v579_v46 = vpack.c.bf16 %v575_v44, %v575_v44 }
  0x4d   : > { %v574_v47 = vsel %vm568_vm4, %v2383_v19, 0.0  ;;  %v576_v48 = vsel %vm568_vm4, %v2387_v23, 0.0 }
  0x4e   : > { %v585_v49 = vrot.slane %v577_v45, 7  ;;  %v578_v50 = vpack.c.bf16 %v574_v47, %v574_v47  ;;  %v590_v51 = vrot.slane %v579_v46, 7  ;;  %v580_v52 = vpack.c.bf16 %v576_v48, %v576_v48 }
  0x50   : > { %601 = vst [vmem:[#allocation2] sm:$0xe] %v585_v49  ;;  %v586_v53 = vrot.slane %v585_v49, 4  ;;  %v587_v54 = vrot.slane %v578_v50, 7  ;;  %v591_v55 = vrot.slane %v590_v51, 4  ;;  %v592_v56 = vrot.slane %v580_v52, 7 }
  0x51   : > { %604 = vst [vmem:[#allocation2 + $0xc] sm:$0xe] %v590_v51 }
  0x52   : > { %v588_v57 = vsel %vm2619_vm2, %v586_v53, %v587_v54  ;;  %v589_v58 = vrot.slane %v587_v54, 4  ;;  %v593_v59 = vsel %vm2619_vm2, %v591_v55, %v592_v56  ;;  %v594_v60 = vrot.slane %v592_v56, 4 }
  0x53   : > { %602 = vst [vmem:[#allocation2 + $0x4] sm:$0xf] %v588_v57 }
  0x54   : > { %603 = vst [vmem:[#allocation2 + $0x8] sm:$0x1] %v589_v58 }
  0x55   : > { %605 = vst [vmem:[#allocation2 + $0x10] sm:$0xf] %v593_v59 }
  0x56   : > { %606 = vst [vmem:[#allocation2 + $0x14] sm:$0x1] %v594_v60 }
  0x57 PF: > { %v607_v61 = vld [vmem:[%s2597_s24] sm:$0x2]  ;;  %v2388_v62 = vld [vmem:[%s3096_s3] ss:$0 sm:$0xff]  ;;  %v608_v1 = vld [vmem:[%s2597_s24 + $0x2] sm:$0x2]  ;;  %v637_v2 = vlaneseq }
  0x58   : > { %v609_v63 = vunpack.c.l.bf16 %v607_v61  ;;  %v2389_v0 = vld [vmem:[%s3097_s4] ss:$0 sm:$0xff]  ;;  %v610_v3 = vunpack.c.l.bf16 %v608_v1  ;;  %s3104_s18 = sshll.u32 %s2537_s13, 4  ;;  %v626_v5 = vld [vmem:[%s2607_s0 + $0x2] sm:$0x1]  ;;  %p1990_p4 = scmp.ne.s32.totalorder %s2537_s13, 0 }
  0x59   : > { %v625_v4 = vld [vmem:[%s2607_s0] sm:$0x1]  ;;  %s2245_s16 = sadd.s32 16, %s3104_s18  ;;  %v628_v8 = vunpack.c.l.bf16 %v626_v5  ;;  %v2656_v12 = vshrl.u32 %v637_v2, 7 }
  0x5a   : > { %v615_v6 = vmul.f32 %v2388_v62, %v609_v63  ;;  %v627_v7 = vunpack.c.l.bf16 %v625_v4  ;;  %v616_v9 = vmul.f32 %v2388_v62, %v610_v3  ;;  %v639_v15 = vstv %s2245_s16 }
  0x5b   : > { %v630_v13 = vmul.f32 %v2388_v62, %v628_v8  ;;  %v640_v18 = vadd.s32 %v639_v15, %v2656_v12 }
  0x5c   : > { %v621_v10 = vadd.f32 %v2389_v0, %v615_v6  ;;  %v629_v11 = vmul.f32 %v2388_v62, %v627_v7  ;;  %v622_v14 = vadd.f32 %v2389_v0, %v616_v9 }
  0x5d   : > { %v632_v17 = vadd.f32 %v2389_v0, %v630_v13  ;;  %vm641_vm5 = vcmp.lt.s32.totalorder %v640_v18, 40 }
  0x5e   : > { %2390 = vtanh.f32 %v621_v10  ;;  %v631_v16 = vadd.f32 %v2389_v0, %v629_v11 }
  0x5f   : > { %2392 = vtanh.f32 %v622_v14 }
  0x60   : > { %2394 = vtanh.f32 %v631_v16 }
  0x61   : > { %2396 = vtanh.f32 %v632_v17 }
  0x64   : > { %v2391_v19 = vpop.eup %2390 }
  0x65   : > { %v2393_v20 = vpop.eup %2392  ;;  %v646_v21 = vpack.c.bf16 %v2391_v19, %v2391_v19 }
  0x66   : > { %v2395_v22 = vpop.eup %2394  ;;  %v647_v23 = vpack.c.bf16 %v2393_v20, %v2393_v20 }
  0x67   : > { %v2397_v24 = vpop.eup %2396  ;;  %v1988_v25 = vrot.slane %v646_v21, 9  ;;  %v644_v27 = vsel %vm641_vm5, %v2395_v22, 0.0 }
  0x68   : > { %v1989_v28 = vrot.slane %v647_v23, 9  ;;  %v658_v29 = vpack.c.bf16 %v644_v27, %v644_v27  ;;  %v645_v30 = vsel %vm641_vm5, %v2397_v24, 0.0 }
  0x69   : > { %656 = vst [vmem:[#allocation2] sm:$0x1] %v1988_v25  ;;  %v659_v31 = vpack.c.bf16 %v645_v30, %v645_v30  ;;  %671 = sbr.rel (%p1990_p4) target bundleno = 113 (0x71), region = 93 }
  0x6a   : > { %657 = vst [vmem:[#allocation2 + $0xc] sm:$0x1] %v1989_v28  ;;  %v662_v32 = vrot.slane %v658_v29, 7 }
  0x6b   : > { %v663_v33 = vrot.slane %v659_v31, 7 }
  0x6c   : > { %666 = vst [vmem:[#allocation2 + $0x8] sm:$0x2] %v662_v32 }
  0x6d   : > { %667 = vst [vmem:[#allocation2 + $0x14] sm:$0x2] %v663_v33 }
  0x6e   : > { %v2462_v34 = vmov 0  }
  0x6f   : > { %672 = vst [vmem:[#allocation2] sm:$0x1] %v2462_v34 }
  0x70   : > { %673 = vst [vmem:[#allocation2 + $0xc] sm:$0x1] %v2462_v34 }
  0x71 PF: > { %676 = sbr.rel (%p1985_p3) target bundleno = 121 (0x79), region = 97 }
  0x76   : > { %v2463_v35 = vmov 0  }
  0x77   : > { %677 = vst [vmem:[#allocation2 + $0x8] sm:$0x2] %v2463_v35 }
  0x78   : > { %678 = vst [vmem:[#allocation2 + $0x14] sm:$0x2] %v2463_v35 }
  0x79 PF: > { %v2253_v36 = vld [vmem:[%s3098_s5 + $0x38] sm:$0xff]  ;;  %v2252_v38 = vld [vmem:[%s3098_s5 + $0x30] sm:$0xff]  ;;  %v2251_v41 = vld [vmem:[%s3098_s5 + $0x28] sm:$0xff]  ;;  %vm713_vm6 = vcmask 1041408   ;;  %vm717_vm7 = vcmask 1043458   ;;  %vm976_vm8 = vcmask 1042432  }
  0x7a   : > { %v2269_v37 = vld [vmem:[%s3098_s5 + $0xb8] sm:$0xff]  ;;  %2319 = vmatpush.bf16.msra.mxu1 %v2253_v36  ;;  %820 = vmatpush.bf16.msra.mxu0 %v2253_v36  ;;  %v2268_v39 = vld [vmem:[%s3098_s5 + $0xb0] sm:$0xff]  ;;  %v679_v42 = vld [vmem:[#allocation2] sm:$0xf]  ;;  %vm977_vm9 = vcmask 1046532   ;;  %vm1142_vm11 = vcmask 1045508  }
  0x7b   : > { %1109 = vmatpush.bf16.msra.mxu2 %v2269_v37  ;;  %v2277_v40 = vld [vmem:[%s3098_s5 + $0xf8] sm:$0xff]  ;;  %v2267_v43 = vld [vmem:[%s3098_s5 + $0xa8] sm:$0xff]  ;;  %v2276_v44 = vld [vmem:[%s3098_s5 + $0xf0] sm:$0xff]  ;;  %v707_v46 = vrot.slane %v679_v42, 2  ;;  %p2228_p5 = scmp.ge.s32.totalorder %s2537_s13, 2 }
  0x7c   : > { %1274 = vmatpush.bf16.msra.mxu3 %v2277_v40  ;;  %v680_v45 = vld [vmem:[#allocation2 + $0x4] sm:$0xf]  ;;  %v683_v48 = vld [vmem:[#allocation2 + $0x10] sm:$0xf]  ;;  %v2250_v49 = vld [vmem:[%s3098_s5 + $0x20] sm:$0xff] }
  0x7d   : > { %v708_v47 = vrot.slane %v680_v45, 2  ;;  %v2690_v50 = vsel %vm713_vm6, %v679_v42, %v707_v46  ;;  %v718_v51 = vsel %vm717_vm7, %v679_v42, %v707_v46  ;;  %v2266_v52 = vld [vmem:[%s3098_s5 + $0xa0] sm:$0xff]  ;;  %v2275_v53 = vld [vmem:[%s3098_s5 + $0xe8] sm:$0xff]  ;;  %v711_v57 = vrot.slane %v683_v48, 2  ;;  %v2249_v59 = vld [vmem:[%s3098_s5 + $0x18] sm:$0xff] }
  0x7e   : > { %2320 = vmatpush.bf16.msra.mxu1 %v2252_v38  ;;  %821 = vmatpush.bf16.msra.mxu0 %v2252_v38  ;;  %v2699_v54 = vrot.slane %v718_v51, 2  ;;  %745 = vst [vmem:[#allocation1] ss:$4 sm:$0xff] %v2690_v50  ;;  %v2265_v61 = vld [vmem:[%s3098_s5 + $0x98] sm:$0xff]  ;;  %v2274_v62 = vld [vmem:[%s3098_s5 + $0xe0] sm:$0xff]  ;;  %v2248_v1 = vld [vmem:[%s3098_s5 + $0x10] sm:$0xff] }
  0x7f   : > { %1110 = vmatpush.bf16.msra.mxu2 %v2268_v39  ;;  %v2702_v55 = vsel %vm713_vm6, %v680_v45, %v708_v47  ;;  %v724_v56 = vsel %vm717_vm7, %v680_v45, %v708_v47  ;;  %v684_v60 = vld [vmem:[#allocation2 + $0x14] sm:$0x3]  ;;  %v739_v63 = vsel %vm717_vm7, %v683_v48, %v711_v57  ;;  %v682_v2 = vld [vmem:[#allocation2 + $0xc] sm:$0xf]  ;;  %v681_v6 = vld [vmem:[#allocation2 + $0x8] sm:$0x3]  ;;  %v2750_v17 = vsel %vm713_vm6, %v683_v48, %v711_v57 }
  0x80   : > { %1275 = vmatpush.bf16.msra.mxu3 %v2276_v44  ;;  %v2705_v58 = vrot.slane %v724_v56, 2  ;;  %748 = vst [vmem:[#allocation1 + $0x1] ss:$4 sm:$0xff] %v2699_v54  ;;  %v712_v0 = vrot.slane %v684_v60, 2  ;;  %v2264_v3 = vld [vmem:[%s3098_s5 + $0x90] sm:$0xff]  ;;  %v2727_v4 = vrot.slane %v739_v63, 2  ;;  %vm2874_vm10 = vmor %vm976_vm8, %vm977_vm9 }
  0x81   : > { %750 = vst [vmem:[#allocation1 + $0x2] ss:$4 sm:$0xff] %v2702_v55  ;;  %v710_v5 = vrot.slane %v682_v2, 2  ;;  %v709_v8 = vrot.slane %v681_v6, 2  ;;  %v2247_v10 = vld [vmem:[%s3098_s5 + $0x8] sm:$0xff]  ;;  %v2246_v18 = vld [vmem:[%s3098_s5] sm:$0xff]  ;;  %vm2887_vm12 = vmor %vm713_vm6, %vm1142_vm11 }
  0x82   : > { %2321 = vmatpush.bf16.msra.mxu1 %v2251_v41  ;;  %822 = vmatpush.bf16.msra.mxu0 %v2251_v41  ;;  %753 = vst [vmem:[#allocation1 + $0x3] ss:$4 sm:$0xff] %v2705_v58  ;;  %v2730_v7 = vsel %vm713_vm6, %v684_v60, %v712_v0  ;;  %v2263_v13 = vld [vmem:[%s3098_s5 + $0x88] sm:$0xff]  ;;  %v2261_v19 = vld [vmem:[%s3098_s5 + $0x78] sm:$0xff]  ;;  %v2262_v20 = vld [vmem:[%s3098_s5 + $0x80] sm:$0xff] }
  0x83   : > { %1111 = vmatpush.bf16.msra.mxu2 %v2267_v43  ;;  %v733_v9 = vsel %vm717_vm7, %v682_v2, %v710_v5  ;;  %v2741_v14 = vsel %vm713_vm6, %v681_v6, %v709_v8  ;;  %v2744_v15 = vsel %vm713_vm6, %v682_v2, %v710_v5  ;;  %762 = vst [vmem:[#allocation1 + $0x23] ss:$4 sm:$0xff] %v2750_v17  ;;  %v2260_v21 = vld [vmem:[%s3098_s5 + $0x70] sm:$0xff]  ;;  %v2285_v23 = vld [vmem:[%s3098_s5 + $0x138] sm:$0xff]  ;;  %v2259_v25 = vld [vmem:[%s3098_s5 + $0x68] sm:$0xff] }
  0x84   : > { %1276 = vmatpush.bf16.msra.mxu3 %v2275_v53  ;;  %v2746_v16 = vrot.slane %v733_v9, 2  ;;  %755 = vst [vmem:[#allocation1 + $0x20] ss:$4 sm:$0xff] %v2741_v14  ;;  %v2273_v24 = vld [vmem:[%s3098_s5 + $0xd8] sm:$0xff]  ;;  %v2272_v27 = vld [vmem:[%s3098_s5 + $0xd0] sm:$0xff]  ;;  %v2271_v30 = vld [vmem:[%s3098_s5 + $0xc8] sm:$0xff] }
  0x85   : > { %757 = vst [vmem:[#allocation1 + $0x21] ss:$4 sm:$0xff] %v2744_v15  ;;  %v2284_v28 = vld [vmem:[%s3098_s5 + $0x130] sm:$0xff]  ;;  %v2258_v31 = vld [vmem:[%s3098_s5 + $0x60] sm:$0xff]  ;;  %v2283_v32 = vld [vmem:[%s3098_s5 + $0x128] sm:$0xff] }
  0x86   : > { %2322 = vmatpush.bf16.msra.mxu1 %v2250_v49  ;;  %823 = vmatpush.bf16.msra.mxu0 %v2250_v49  ;;  %760 = vst [vmem:[#allocation1 + $0x22] ss:$4 sm:$0xff] %v2746_v16  ;;  %v2270_v34 = vld [vmem:[%s3098_s5 + $0xc0] sm:$0xff]  ;;  %v2257_v35 = vld [vmem:[%s3098_s5 + $0x58] sm:$0xff]  ;;  %v2256_v38 = vld [vmem:[%s3098_s5 + $0x50] sm:$0xff] }
  0x87   : > { %1112 = vmatpush.bf16.msra.mxu2 %v2266_v52  ;;  %v2282_v36 = vld [vmem:[%s3098_s5 + $0x120] sm:$0xff]  ;;  %v2255_v40 = vld [vmem:[%s3098_s5 + $0x48] sm:$0xff]  ;;  %v2281_v41 = vld [vmem:[%s3098_s5 + $0x118] sm:$0xff] }
  0x88   : > { %1277 = vmatpush.bf16.msra.mxu3 %v2274_v62  ;;  %v2280_v42 = vld [vmem:[%s3098_s5 + $0x110] sm:$0xff]  ;;  %v2254_v43 = vld [vmem:[%s3098_s5 + $0x40] sm:$0xff]  ;;  %v2279_v45 = vld [vmem:[%s3098_s5 + $0x108] sm:$0xff] }
  0x89   : > { %v763_v11 = vld.sshfl [vmem:[#allocation1] sm:$0xff pattern:$0x73625140] }
  0x8a   : > { %2323 = vmatpush.bf16.msra.mxu1 %v2249_v59  ;;  %824 = vmatpush.bf16.msra.mxu0 %v2249_v59  ;;  %766 = vst [vmem:[#allocation1] ss:$4 sm:$0xff] %v2727_v4  ;;  %v2278_v46 = vld [vmem:[%s3098_s5 + $0x100] sm:$0xff] }
  0x8b   : > { %1113 = vmatpush.bf16.msra.mxu2 %v2265_v61  ;;  %767 = vst [vmem:[#allocation1 + $0x1] ss:$4 sm:$0xff] %v2730_v7 }
  0x8c   : > { %1278 = vmatpush.bf16.msra.mxu3 %v2273_v24 }
  0x8d   : > { %v764_v29 = vld.sshfl [vmem:[#allocation1 + $0x20] sm:$0xff pattern:$0x73625140] }
  0x8e   : > { %2324 = vmatpush.bf16.msra.mxu1 %v2248_v1  ;;  %825 = vmatpush.bf16.msra.mxu0 %v2248_v1  ;;  %880 = vst [vmem:[#allocation1 + $0x20] ss:$4 sm:$0xff] %v2741_v14 }
  0x8f   : > { %1114 = vmatpush.bf16.msra.mxu2 %v2264_v3  ;;  %882 = vst [vmem:[#allocation1 + $0x21] ss:$4 sm:$0xff] %v2744_v15 }
  0x90   : > { %1279 = vmatpush.bf16.msra.mxu3 %v2272_v27  ;;  %884 = vst [vmem:[#allocation1 + $0x22] ss:$4 sm:$0xff] %v2746_v16 }
  0x91   : > { %886 = vst [vmem:[#allocation1 + $0x23] ss:$4 sm:$0xff] %v2750_v17 }
  0x92   : > { %2325 = vmatpush.bf16.msra.mxu1 %v2247_v10  ;;  %826 = vmatpush.bf16.msra.mxu0 %v2247_v10  ;;  %v768_v22 = vld.sshfl [vmem:[#allocation1] sm:$0xff pattern:$0x73625140] }
  0x93   : > { %1115 = vmatpush.bf16.msra.mxu2 %v2263_v13  ;;  %872 = vst [vmem:[#allocation1] ss:$4 sm:$0xff] %v2690_v50 }
  0x94   : > { %874 = vst [vmem:[#allocation1 + $0x1] ss:$4 sm:$0xff] %v2699_v54  ;;  %1280 = vmatpush.bf16.msra.mxu3 %v2271_v30 }
  0x95   : > { %876 = vst [vmem:[#allocation1 + $0x2] ss:$4 sm:$0xff] %v2702_v55 }
  0x96   : > { %2326 = vmatpush.bf16.msra.mxu1 %v2246_v18  ;;  %827 = vmatpush.bf16.msra.mxu0 %v2246_v18  ;;  %878 = vst [vmem:[#allocation1 + $0x3] ss:$4 sm:$0xff] %v2705_v58 }
  0x97   : > { %1116 = vmatpush.bf16.msra.mxu2 %v2262_v20 }
  0x98   : > { %1281 = vmatpush.bf16.msra.mxu3 %v2270_v34  ;;  %v888_v37 = vld.sshfl [vmem:[#allocation1 + $0x20] sm:$0xff pattern:$0x73625140] }
  0x99   : > { %838 = vmatmul.bf16.vlgmr.msra.gmra.mxu1 %v768_v22  ;;  %828 = vmatmul.bf16.vlgmr.msra.gmra.mxu0 %v763_v11  ;;  %1046 = vst [vmem:[#allocation1 + $0x20] ss:$4 sm:$0xff] %v2741_v14 }
  0x9a   : > { %943 = vmatpush.bf16.msrb.mxu1 %v2261_v19  ;;  %1440 = vmatpush.bf16.msrb.mxu0 %v2285_v23  ;;  %1048 = vst [vmem:[#allocation1 + $0x21] ss:$4 sm:$0xff] %v2744_v15 }
  0x9b   : > { %2327 = vmatpush.bf16.msrb.mxu2 %v2285_v23  ;;  %1050 = vst [vmem:[#allocation1 + $0x22] ss:$4 sm:$0xff] %v2746_v16 }
  0x9c   : > { %1052 = vst [vmem:[#allocation1 + $0x23] ss:$4 sm:$0xff] %v2750_v17 }
  0x9d   : > { %v887_v33 = vld.sshfl [vmem:[#allocation1] sm:$0xff pattern:$0x73625140] }
  0x9e   : > { %944 = vmatpush.bf16.msrb.mxu1 %v2260_v21  ;;  %1441 = vmatpush.bf16.msrb.mxu0 %v2284_v28  ;;  %889 = vst [vmem:[#allocation1] ss:$4 sm:$0xff] %v2727_v4 }
  0x9f   : > { %2328 = vmatpush.bf16.msrb.mxu2 %v2284_v28  ;;  %890 = vst [vmem:[#allocation1 + $0x1] ss:$4 sm:$0xff] %v2730_v7 }
  0xa2   : > { %945 = vmatpush.bf16.msrb.mxu1 %v2259_v25  ;;  %1442 = vmatpush.bf16.msrb.mxu0 %v2283_v32 }
  0xa3   : > { %2329 = vmatpush.bf16.msrb.mxu2 %v2283_v32  ;;  %v1054_v44 = vld.sshfl [vmem:[#allocation1 + $0x20] sm:$0xff pattern:$0x73625140] }
  0xa4   : > { %1211 = vst [vmem:[#allocation1 + $0x20] ss:$4 sm:$0xff] %v2741_v14 }
  0xa5   : > { %1213 = vst [vmem:[#allocation1 + $0x21] ss:$4 sm:$0xff] %v2744_v15 }
  0xa6   : > { %946 = vmatpush.bf16.msrb.mxu1 %v2258_v31  ;;  %1443 = vmatpush.bf16.msrb.mxu0 %v2282_v36  ;;  %v891_v39 = vld.sshfl [vmem:[#allocation1] sm:$0xff pattern:$0x73625140]  ;;  %1215 = vst [vmem:[#allocation1 + $0x22] ss:$4 sm:$0xff] %v2746_v16 }
  0xa7   : > { %2330 = vmatpush.bf16.msrb.mxu2 %v2282_v36  ;;  %1038 = vst [vmem:[#allocation1] ss:$4 sm:$0xff] %v2690_v50 }
  0xa8   : > { %1040 = vst [vmem:[#allocation1 + $0x1] ss:$4 sm:$0xff] %v2699_v54 }
  0xa9   : > { %833 = vmatmul.bf16.gmra.mxu0 %v764_v29  ;;  %1042 = vst [vmem:[#allocation1 + $0x2] ss:$4 sm:$0xff] %v2702_v55 }
  0xaa   : > { %947 = vmatpush.bf16.msrb.mxu1 %v2257_v35  ;;  %1444 = vmatpush.bf16.msrb.mxu0 %v2281_v41  ;;  %1044 = vst [vmem:[#allocation1 + $0x3] ss:$4 sm:$0xff] %v2705_v58 }
  0xab   : > { %2331 = vmatpush.bf16.msrb.mxu2 %v2281_v41  ;;  %1217 = vst [vmem:[#allocation1 + $0x23] ss:$4 sm:$0xff] %v2750_v17 }
  0xae   : > { %948 = vmatpush.bf16.msrb.mxu1 %v2256_v38  ;;  %1445 = vmatpush.bf16.msrb.mxu0 %v2280_v42 }
  0xaf   : > { %2332 = vmatpush.bf16.msrb.mxu2 %v2280_v42 }
  0xb1   : > { %v1053_v47 = vld.sshfl [vmem:[#allocation1] sm:$0xff pattern:$0x73625140] }
  0xb2   : > { %949 = vmatpush.bf16.msrb.mxu1 %v2255_v40  ;;  %1446 = vmatpush.bf16.msrb.mxu0 %v2279_v45  ;;  %1055 = vst [vmem:[#allocation1] ss:$4 sm:$0xff] %v2727_v4  ;;  %v1219_v48 = vld.sshfl [vmem:[#allocation1 + $0x20] sm:$0xff pattern:$0x73625140] }
  0xb3   : > { %2333 = vmatpush.bf16.msrb.mxu2 %v2279_v45  ;;  %1056 = vst [vmem:[#allocation1 + $0x1] ss:$4 sm:$0xff] %v2730_v7 }
  0xb4   : > { %1117 = vmatmul.bf16.vlgmr.msra.gmra.mxu2 %v1053_v47  ;;  %1377 = vst [vmem:[#allocation1 + $0x20] ss:$4 sm:$0xff] %v2741_v14 }
  0xb5   : > { %1379 = vst [vmem:[#allocation1 + $0x21] ss:$4 sm:$0xff] %v2744_v15 }
  0xb6   : > { %950 = vmatpush.bf16.msrb.mxu1 %v2254_v43  ;;  %1447 = vmatpush.bf16.msrb.mxu0 %v2278_v46  ;;  %1381 = vst [vmem:[#allocation1 + $0x22] ss:$4 sm:$0xff] %v2746_v16 }
  0xb7   : > { %2334 = vmatpush.bf16.msrb.mxu2 %v2278_v46  ;;  %1383 = vst [vmem:[#allocation1 + $0x23] ss:$4 sm:$0xff] %v2750_v17 }
  0xb9   : > { %951 = vmatmul.bf16.vlgmr.msrb.gmra.mxu1 %v887_v33 }
  0xba   : > { %v1057_v49 = vld.sshfl [vmem:[#allocation1] sm:$0xff pattern:$0x73625140] }
  0xbb   : > { %1203 = vst [vmem:[#allocation1] ss:$4 sm:$0xff] %v2690_v50 }
  0xbc   : > { %1205 = vst [vmem:[#allocation1 + $0x1] ss:$4 sm:$0xff] %v2699_v54 }
  0xbd   : > { %1207 = vst [vmem:[#allocation1 + $0x2] ss:$4 sm:$0xff] %v2702_v55 }
  0xbe   : > { %1209 = vst [vmem:[#allocation1 + $0x3] ss:$4 sm:$0xff] %v2705_v58  ;;  %v1385_v57 = vld.sshfl [vmem:[#allocation1 + $0x20] sm:$0xff pattern:$0x73625140] }
  0xc4   : > { %1122 = vmatmul.bf16.gmra.mxu2 %v1054_v44 }
  0xc5   : > { %v1218_v51 = vld.sshfl [vmem:[#allocation1] sm:$0xff pattern:$0x73625140] }
  0xc6   : > { %1220 = vst [vmem:[#allocation1] ss:$4 sm:$0xff] %v2727_v4  ;;  %1282 = vmatmul.bf16.vlgmr.msra.gmra.mxu3 %v1218_v51 }
  0xc7   : > { %1221 = vst [vmem:[#allocation1 + $0x1] ss:$4 sm:$0xff] %v2730_v7 }
  0xc9   : > { %956 = vmatmul.bf16.gmra.mxu1 %v888_v37 }
  0xce   : > { %v1222_v52 = vld.sshfl [vmem:[#allocation1] sm:$0xff pattern:$0x73625140] }
  0xcf   : > { %1369 = vst [vmem:[#allocation1] ss:$4 sm:$0xff] %v2690_v50 }
  0xd0   : > { %1371 = vst [vmem:[#allocation1 + $0x1] ss:$4 sm:$0xff] %v2699_v54 }
  0xd1   : > { %1373 = vst [vmem:[#allocation1 + $0x2] ss:$4 sm:$0xff] %v2702_v55 }
  0xd2   : > { %1375 = vst [vmem:[#allocation1 + $0x3] ss:$4 sm:$0xff] %v2705_v58 }
  0xd4   : > { %1127 = vmatmul.bf16.gmra.mxu2 %v1057_v49 }
  0xd6   : > { %1287 = vmatmul.bf16.gmra.mxu3 %v1219_v48 }
  0xd9   : > { %961 = vmatmul.bf16.gmra.mxu1 %v891_v39  ;;  %v1384_v53 = vld.sshfl [vmem:[#allocation1] sm:$0xff pattern:$0x73625140] }
  0xda   : > { %1386 = vst [vmem:[#allocation1] ss:$4 sm:$0xff] %v2727_v4  ;;  %1448 = vmatmul.bf16.vlgmr.msrb.gmra.mxu0 %v1384_v53 }
  0xdb   : > { %1387 = vst [vmem:[#allocation1 + $0x1] ss:$4 sm:$0xff] %v2730_v7 }
  0xe2   : > { %v1388_v56 = vld.sshfl [vmem:[#allocation1] sm:$0xff pattern:$0x73625140] }
  0xe4   : > { %1458 = vmatmul.bf16.vlgmr.msrb.gmra.mxu2 %v1388_v56 }
  0xe6   : > { %1292 = vmatmul.bf16.gmra.mxu3 %v1222_v52 }
  0xea   : > { %1453 = vmatmul.bf16.gmra.mxu0 %v1385_v57 }
 0x116   : > { %v2862_v50 = vpop.f32.mrf.mxu1  ;;  %v829_v59 = vpop.f32.mrf.mxu0 }
 0x117   : > { %v847_v28 = vrot.slane %v829_v59, 4 }
 0x11e   : > { %v841_v54 = vpop.f32.mrf.mxu1  ;;  %v2864_v58 = vpop.f32.mrf.mxu0 }
 0x126   : > { %v2868_v0 = vpop.f32.mrf.mxu0 }
 0x12e   : > { %v2884_v14 = vpop.f32.mrf.mxu0 }
 0x136   : > { %v952_v55 = vpop.f32.mrf.mxu1 }
 0x137   : > { %v1118_v60 = vpop.f32.mrf.mxu2  ;;  %v971_v3 = vrot.slane %v952_v55, 4  ;;  %v2072_v5 = vrot.slane %v952_v55, 9 }
 0x138   : > { %v1137_v8 = vrot.slane %v1118_v60, 4  ;;  %v2124_v23 = vrot.slane %v1118_v60, 10 }
 0x139   : > { %v981_v6 = vrot.slane %v971_v3, 5 }
 0x13a   : > { %v1146_v17 = vrot.slane %v1137_v8, 6 }
 0x13b   : > { %v982_v13 = vsel %vm2874_vm10, %v2072_v5, %v981_v6  ;;  %v983_v21 = vrot.slane %v981_v6, 4 }
 0x13c   : > { %v1013_v22 = vadd.f32 %v982_v13, %v829_v59  ;;  %v1147_v32 = vsel %vm2887_vm12, %v2124_v23, %v1146_v17  ;;  %v1148_v39 = vrot.slane %v1146_v17, 4 }
 0x13e   : > { %v954_v61 = vpop.f32.mrf.mxu1  ;;  %v1178_v37 = vadd.f32 %v1147_v32, %v1013_v22 }
 0x13f   : > { %v1120_v62 = vpop.f32.mrf.mxu2  ;;  %v972_v15 = vrot.slane %v954_v61, 4  ;;  %v984_v16 = vrot.slane %v954_v61, 5  ;;  %v848_v61 = vrot.slane %v2864_v58, 4 }
 0x140   : > { %v1138_v29 = vrot.slane %v1120_v62, 4  ;;  %v1149_v30 = vrot.slane %v1120_v62, 6 }
 0x141   : > { %v986_v25 = vrot.slane %v984_v16, 4  ;;  %v987_v27 = vrot.slane %v972_v15, 5  ;;  %v985_v31 = vsel %vm2874_vm10, %v983_v21, %v984_v16 }
 0x142   : > { %v1014_v41 = vadd.f32 %v985_v31, %v847_v28  ;;  %v1151_v44 = vrot.slane %v1149_v30, 4  ;;  %v1152_v45 = vrot.slane %v1138_v29, 6  ;;  %v1150_v55 = vsel %vm2887_vm12, %v1148_v39, %v1149_v30 }
 0x143   : > { %v988_v40 = vsel %vm2874_vm10, %v986_v25, %v987_v27  ;;  %v989_v56 = vrot.slane %v987_v27, 4 }
 0x144   : > { %v1015_v57 = vadd.f32 %v988_v40, %v2864_v58  ;;  %v1179_v3 = vadd.f32 %v1150_v55, %v1014_v41  ;;  %v1154_v16 = vrot.slane %v1152_v45, 4 }
 0x146   : > { %v2866_v63 = vpop.f32.mrf.mxu1 }
 0x147   : > { %v2870_v1 = vpop.f32.mrf.mxu2  ;;  %v990_v43 = vrot.slane %v2866_v63, 5  ;;  %v2074_v27 = vrot.slane %v2866_v63, 13 }
 0x148   : > { %v1155_v5 = vrot.slane %v2870_v1, 6 }
 0x149   : > { %v1283_v4 = vpop.f32.mrf.mxu3  ;;  %v991_v62 = vsel %vm2874_vm10, %v989_v56, %v990_v43  ;;  %v850_v43 = vrot.slane %v2884_v14, 4 }
 0x14a   : > { %v1302_v9 = vrot.slane %v1283_v4, 4  ;;  %v2176_v24 = vrot.slane %v1283_v4, 11  ;;  %v1153_v4 = vsel %vm2887_vm12, %v1151_v44, %v1152_v45  ;;  %v1156_v30 = vsel %vm2887_vm12, %v1154_v16, %v1155_v5 }
 0x14b   : > { %v1180_v13 = vadd.f32 %v1153_v4, %v1015_v57 }
 0x14c   : > { %v1312_v18 = vrot.slane %v1302_v9, 7 }
 0x14e   : > { %v2872_v2 = vpop.f32.mrf.mxu1  ;;  %v1313_v33 = vsel %vm2619_vm2, %v2176_v24, %v1312_v18  ;;  %v1314_v48 = vrot.slane %v1312_v18, 4 }
 0x14f   : > { %v2878_v10 = vpop.f32.mrf.mxu2  ;;  %v1344_v46 = vadd.f32 %v1313_v33, %v1178_v37  ;;  %v974_v53 = vrot.slane %v2872_v2, 4  ;;  %v994_v60 = vrot.slane %v2872_v2, 5 }
 0x150   : > { %v1140_v21 = vrot.slane %v2878_v10, 4  ;;  %v1159_v39 = vrot.slane %v2878_v10, 6 }
 0x151   : > { %v1285_v19 = vpop.f32.mrf.mxu3  ;;  %v997_v8 = vrot.slane %v974_v53, 5  ;;  %v996_v18 = vrot.slane %v994_v60, 4 }
 0x152   : > { %v1303_v34 = vrot.slane %v1285_v19, 4  ;;  %v1315_v35 = vrot.slane %v1285_v19, 7  ;;  %v1016_v19 = vadd.f32 %v991_v62, %v848_v61  ;;  %v1162_v40 = vrot.slane %v1140_v21, 6 }
 0x153   : > { %v999_v28 = vrot.slane %v997_v8, 4  ;;  %v998_v37 = vsel %vm2874_vm10, %v996_v18, %v997_v8  ;;  %v1161_v57 = vrot.slane %v1159_v39, 4 }
 0x154   : > { %v1317_v49 = vrot.slane %v1315_v35, 4  ;;  %v1318_v51 = vrot.slane %v1303_v34, 7  ;;  %v1316_v59 = vsel %vm2619_vm2, %v1314_v48, %v1315_v35  ;;  %v995_v35 = vsel %vm2874_vm10, %v2074_v27, %v994_v60 }
 0x155   : > { %v1345_v15 = vadd.f32 %v1316_v59, %v1179_v3  ;;  %v1018_v10 = vadd.f32 %v998_v37, %v2884_v14  ;;  %v1164_v55 = vrot.slane %v1162_v40, 4 }
 0x156   : > { %v2880_v11 = vpop.f32.mrf.mxu1  ;;  %v1319_v6 = vsel %vm2619_vm2, %v1317_v49, %v1318_v51  ;;  %v1320_v25 = vrot.slane %v1318_v51, 4  ;;  %v2126_v49 = vrot.slane %v2870_v1, 14 }
 0x157   : > { %v2897_v36 = vpop.f32.mrf.mxu2  ;;  %v1449_v42 = vpop.f32.mrf.mxu0  ;;  %v1000_v2 = vrot.slane %v2880_v11, 5  ;;  %v1346_v22 = vadd.f32 %v1319_v6, %v1180_v13  ;;  %v2075_v34 = vrot.slane %v2880_v11, 9  ;;  %v849_v11 = vrot.slane %v2868_v0, 4 }
 0x158   : > { %v1467_v47 = vrot.slane %v1449_v42, 4  ;;  %v1165_v41 = vrot.slane %v2897_v36, 6  ;;  %v1160_v3 = vsel %vm2887_vm12, %v2126_v49, %v1159_v39  ;;  %v2127_v14 = vrot.slane %v2897_v36, 10 }
 0x159   : > { %v2902_v52 = vpop.f32.mrf.mxu3  ;;  %v1002_v33 = vrot.slane %v1000_v2, 4  ;;  %v1001_v42 = vsel %vm2874_vm10, %v999_v28, %v1000_v2  ;;  %v1017_v56 = vadd.f32 %v995_v35, %v849_v11  ;;  %v1163_v2 = vsel %vm2887_vm12, %v1161_v57, %v1162_v40 }
 0x15a   : > { %v2906_v54 = vadd.f32 %v1467_v47, %v1344_v46  ;;  %v1321_v58 = vrot.slane %v2902_v52, 7  ;;  %v1019_v53 = vadd.f32 %v1001_v42, %v850_v43  ;;  %v1167_v59 = vrot.slane %v1165_v41, 4 }
 0x15b   : > { %v1004_v47 = vsel %vm2874_vm10, %v1002_v33, %v2075_v34  ;;  %v2178_v60 = vrot.slane %v2902_v52, 15  ;;  %v1166_v1 = vsel %vm2887_vm12, %v1164_v55, %v1165_v41  ;;  %v1182_v8 = vadd.f32 %v1160_v3, %v1017_v56 }
 0x15c   : > { %v1322_v63 = vsel %vm2619_vm2, %v1320_v25, %v1321_v58  ;;  %v1020_v62 = vadd.f32 %v1004_v47, %v2862_v50  ;;  %v1184_v6 = vadd.f32 %v1166_v1, %v1019_v53  ;;  %v1169_v52 = vsel %vm2887_vm12, %v1167_v59, %v2127_v14 }
 0x15d   : > { %v1183_v18 = vadd.f32 %v1163_v2, %v1018_v10 }
 0x15e   : > { %v964_v38 = vpop.f32.mrf.mxu1  ;;  %v1185_v16 = vadd.f32 %v1169_v52, %v1020_v62 }
 0x15f   : > { %v1130_v9 = vpop.f32.mrf.mxu2  ;;  %v1451_v17 = vpop.f32.mrf.mxu0  ;;  %v1181_v38 = vadd.f32 %v1156_v30, %v1016_v19 }
 0x160   : > { %v1468_v23 = vrot.slane %v1451_v17, 4  ;;  %v2924_v24 = vadd.f32 %v1451_v17, %v1345_v15 }
 0x161   : > { %v1290_v29 = vpop.f32.mrf.mxu3  ;;  %v1347_v46 = vadd.f32 %v1322_v63, %v1181_v38 }
 0x162   : > { %v2929_v31 = vadd.f32 %v1468_v23, %v1346_v22  ;;  %v1305_v32 = vrot.slane %v1290_v29, 4  ;;  %v1325_v44 = vrot.slane %v1290_v29, 7 }
 0x164   : > { %v1328_v45 = vrot.slane %v1305_v32, 7  ;;  %v1327_v61 = vrot.slane %v1325_v44, 4  ;;  %v1326_v9 = vsel %vm2619_vm2, %v2178_v60, %v1325_v44 }
 0x165   : > { %v1348_v19 = vadd.f32 %v1326_v9, %v1182_v8 }
 0x166   : > { %v1330_v4 = vrot.slane %v1328_v45, 4  ;;  %v1329_v36 = vsel %vm2619_vm2, %v1327_v61, %v1328_v45 }
 0x167   : > { %v1459_v48 = vpop.f32.mrf.mxu2  ;;  %v1454_v51 = vpop.f32.mrf.mxu0  ;;  %v1349_v28 = vadd.f32 %v1329_v36, %v1183_v18 }
 0x168   : > { %v2948_v0 = vadd.f32 %v1454_v51, %v1347_v46  ;;  %v1470_v23 = vrot.slane %v1459_v48, 4 }
 0x169   : > { %v1293_v7 = vpop.f32.mrf.mxu3 }
 0x16a   : > { %v1331_v5 = vrot.slane %v1293_v7, 7  ;;  %v2179_v15 = vrot.slane %v1293_v7, 11 }
 0x16c   : > { %v1332_v50 = vsel %vm2619_vm2, %v1330_v4, %v1331_v5  ;;  %v1333_v13 = vrot.slane %v1331_v5, 4 }
 0x16d   : > { %v1350_v58 = vadd.f32 %v1332_v50, %v1184_v6 }
 0x16e   : > { %v1335_v17 = vsel %vm2619_vm2, %v1333_v13, %v2179_v15  ;;  %1486 = sbr.rel (%p2228_p5) target bundleno = 421 (0x1a5), region = 101 }
 0x16f   : > { %v1461_v21 = vpop.f32.mrf.mxu2  ;;  %v1351_v22 = vadd.f32 %v1335_v17, %v1185_v16  ;;  %v2969_v25 = vadd.f32 %v1459_v48, %v1350_v58  ;;  %v1456_v27 = vpop.f32.mrf.mxu0 }
 0x170   : > { %v1469_v29 = vrot.slane %v1456_v27, 4  ;;  %v2971_v20 = vadd.f32 %v1456_v27, %v1348_v19 }
 0x171   : > { %v2973_v30 = vadd.f32 %v1470_v23, %v1351_v22  ;;  %v1295_v32 = vpop.f32.mrf.mxu3 }
 0x172   : > { %v2975_v33 = vadd.f32 %v1469_v29, %v1349_v28 }
 0x173   : > { %1495 = vst [vmem:[#allocation1] ss:$2 sm:$0xff] %v2906_v54  ;;  %v1567_v39 = vmul.f32 %v2906_v54, %v2906_v54  ;;  %v1568_v40 = vmul.f32 %v2924_v24, %v2924_v24  ;;  %v1569_v42 = vmul.f32 %v2929_v31, %v2929_v31  ;;  %v1570_v11 = vmul.f32 %v2948_v0, %v2948_v0 }
 0x174   : > { %1497 = vst [vmem:[#allocation1 + $0x1] ss:$2 sm:$0xff] %v2924_v24  ;;  %v1571_v44 = vmul.f32 %v2971_v20, %v2971_v20  ;;  %v1572_v46 = vmul.f32 %v2975_v33, %v2975_v33  ;;  %v1526_v47 = vpack.c.bf16 %v2906_v54, %v2906_v54  ;;  %v1573_v49 = vmul.f32 %v2969_v25, %v2969_v25 }
 0x175   : > { %1499 = vst [vmem:[#allocation1 + $0x10] ss:$2 sm:$0xff] %v2929_v31  ;;  %v1574_v51 = vmul.f32 %v2973_v30, %v2973_v30  ;;  %v1527_v53 = vpack.c.bf16 %v2971_v20, %v2971_v20  ;;  %v1530_v57 = vpack.c.bf16 %v2948_v0, %v2948_v0  ;;  %v1531_v59 = vpack.c.bf16 %v2973_v30, %v2973_v30 }
 0x176   : > { %1501 = vst [vmem:[#allocation1 + $0x11] ss:$2 sm:$0xff] %v2948_v0 }
 0x177   : > { %1505 = vst [vmem:[#allocation1 + $0x20] ss:$2 sm:$0xff] %v2971_v20 }
 0x178   : > { %1507 = vst [vmem:[#allocation1 + $0x21] ss:$2 sm:$0xff] %v2975_v33 }
 0x179   : > { %1509 = vst [vmem:[#allocation1 + $0x30] ss:$2 sm:$0xff] %v2969_v25 }
 0x17a   : > { %1511 = vst [vmem:[#allocation1 + $0x31] ss:$2 sm:$0xff] %v2973_v30 }
 0x17b   : > { %v1502_v26 = vld.sshfl [vmem:[#allocation1] sm:$0xff pattern:$0x75316420]  ;;  %1528 = vst [vmem:[%s2633_s23] sm:$0x1] %v1526_v47 }
 0x17c   : > { %1534 = vst [vmem:[#allocation1] ss:$2 sm:$0xff] %v2906_v54 }
 0x17d   : > { %1536 = vst [vmem:[#allocation1 + $0x1] ss:$2 sm:$0xff] %v2924_v24  ;;  %v1503_v34 = vld.sshfl [vmem:[#allocation1 + $0x10] sm:$0xff pattern:$0x75316420] }
 0x17e   : > { %1538 = vst [vmem:[#allocation1 + $0x10] ss:$2 sm:$0xff] %v2929_v31  ;;  %v2299_v35 = vpack.c.bf16 %v1503_v34, %v1502_v26 }
 0x17f   : > { %1540 = vst [vmem:[#allocation1 + $0x11] ss:$2 sm:$0xff] %v2948_v0  ;;  %v1512_v37 = vld.sshfl [vmem:[#allocation1 + $0x20] sm:$0xff pattern:$0x75316420] }
 0x180   : > { %2300 = vst [vmem:[%s2629_s14] sm:$0xff] %v2299_v35  }
 0x181   : > { %1544 = vst [vmem:[#allocation1 + $0x20] ss:$2 sm:$0xff] %v2971_v20  ;;  %v1513_v38 = vld.sshfl [vmem:[#allocation1 + $0x30] sm:$0xff pattern:$0x75316420] }
 0x182   : > { %1546 = vst [vmem:[#allocation1 + $0x21] ss:$2 sm:$0xff] %v2975_v33  ;;  %v2304_v63 = vpack.c.bf16 %v1513_v38, %v1512_v37 }
 0x183   : > { %1548 = vst [vmem:[#allocation1 + $0x30] ss:$2 sm:$0xff] %v2969_v25 }
 0x184   : > { %2317 = vst [vmem:[%s2629_s14 + $0x8] sm:$0xff] %v2304_v63   ;;  %v1541_v41 = vld.sshfl [vmem:[#allocation1] sm:$0xff pattern:$0x75316420] }
 0x185   : > { %1550 = vst [vmem:[#allocation1 + $0x31] ss:$2 sm:$0xff] %v2973_v30 }
 0x186   : > { %1583 = vst [vmem:[#allocation1] ss:$2 sm:$0xff] %v1567_v39  ;;  %v1542_v43 = vld.sshfl [vmem:[#allocation1 + $0x10] sm:$0xff pattern:$0x75316420] }
 0x187   : > { %1585 = vst [vmem:[#allocation1 + $0x1] ss:$2 sm:$0xff] %v1568_v40  ;;  %v1557_v45 = vadd.f32 %v1542_v43, %v1541_v41 }
 0x188   : > { %1587 = vst [vmem:[#allocation1 + $0x10] ss:$2 sm:$0xff] %v1569_v42 }
 0x189   : > { %1589 = vst [vmem:[#allocation1 + $0x11] ss:$2 sm:$0xff] %v1570_v11  ;;  %v1551_v48 = vld.sshfl [vmem:[#allocation1 + $0x20] sm:$0xff pattern:$0x75316420] }
 0x18a   : > { %v1558_v10 = vadd.f32 %v1557_v45, %v1551_v48  ;;  %1593 = vst [vmem:[#allocation1 + $0x20] ss:$2 sm:$0xff] %v1571_v44 }
 0x18b   : > { %1595 = vst [vmem:[#allocation1 + $0x21] ss:$2 sm:$0xff] %v1572_v46 }
 0x18c   : > { %v1552_v56 = vld.sshfl [vmem:[#allocation1 + $0x30] sm:$0xff pattern:$0x75316420]  ;;  %1529 = vst [vmem:[%s2633_s23 + $0x2] sm:$0x1] %v1527_v53 }
 0x18d   : > { %v1559_v55 = vadd.f32 %v1558_v10, %v1552_v56  ;;  %1597 = vst [vmem:[#allocation1 + $0x30] ss:$2 sm:$0xff] %v1573_v49 }
 0x18e   : > { %1599 = vst [vmem:[#allocation1 + $0x31] ss:$2 sm:$0xff] %v1574_v51  ;;  %v1590_v60 = vld.sshfl [vmem:[#allocation1] sm:$0xff pattern:$0x75316420] }
 0x18f   : > { %v1560_v61 = vrot.slane %v1559_v55, 4  ;;  %1532 = vst [vmem:[%s2633_s23] sm:$0x2] %v1530_v57 }
 0x190   : > { %v1591_v62 = vld.sshfl [vmem:[#allocation1 + $0x10] sm:$0xff pattern:$0x75316420]  ;;  %1533 = vst [vmem:[%s2633_s23 + $0x2] sm:$0x2] %v1531_v59 }
 0x191   : > { %v1561_v7 = vadd.f32 %v1560_v61, %v1559_v55  ;;  %v1606_v3 = vadd.f32 %v1591_v62, %v1590_v60 }
 0x192   : > { %v1600_v1 = vld.sshfl [vmem:[#allocation1 + $0x20] sm:$0xff pattern:$0x75316420] }
 0x193   : > { %v1562_v14 = vrot.slane %v1561_v7, 2  ;;  %v1607_v4 = vadd.f32 %v1606_v3, %v1600_v1 }
 0x195   : > { %v1563_v5 = vadd.f32 %v1562_v14, %v1561_v7  ;;  %v1601_v6 = vld.sshfl [vmem:[#allocation1 + $0x30] sm:$0xff pattern:$0x75316420] }
 0x196   : > { %v1608_v8 = vadd.f32 %v1607_v4, %v1601_v6 }
 0x197   : > { %v1564_v9 = vrot.slane %v1563_v5, 1 }
 0x198   : > { %v1609_v52 = vrot.slane %v1608_v8, 4 }
 0x199   : > { %v1565_v50 = vadd.f32 %v1564_v9, %v1563_v5 }
 0x19a   : > { %v1610_v13 = vadd.f32 %v1609_v52, %v1608_v8 }
 0x19b   : > { %1566 = vst [vmem:[%s2612_s21] sm:$0x1] %v1565_v50 }
 0x19c   : > { %v1611_v15 = vrot.slane %v1610_v13, 2 }
 0x19e   : > { %v1612_v2 = vadd.f32 %v1611_v15, %v1610_v13 }
 0x1a0   : > { %v1613_v36 = vrot.slane %v1612_v2, 1 }
 0x1a2   : > { %v1614_v16 = vadd.f32 %v1613_v36, %v1612_v2 }
 0x1a4   : > { %1615 = vst [vmem:[%s2617_s27] sm:$0x1] %v1614_v16 }
 0x1a5 PF: > { %1618 = sbr.rel (%p1985_p3) target bundleno = 461 (0x1cd), region = 105  ;;  %s3121_s0 = sshll.u32 (!%p1985_p3), %s2537_s13, 4 }
 0x1aa   : > { %1638 = vst [vmem:[#allocation1] ss:$2 sm:$0xff] %v2906_v54  ;;  %v1620_v58 = vadd.s32 8, %v2656_v12  ;;  %v1621_v17 = vstv %s3121_s0 }
 0x1ab   : > { %1640 = vst [vmem:[#allocation1 + $0x1] ss:$2 sm:$0xff] %v2924_v24  ;;  %v1622_v18 = vadd.s32 %v1621_v17, %v2656_v12 }
 0x1ac   : > { %1642 = vst [vmem:[#allocation1 + $0x10] ss:$2 sm:$0xff] %v2929_v31  ;;  %v1623_v19 = vadd.s32 %v1621_v17, %v1620_v58 }
 0x1ad   : > { %1644 = vst [vmem:[#allocation1 + $0x11] ss:$2 sm:$0xff] %v2948_v0  ;;  %vm1624_vm13 = vcmp.lt.s32.totalorder %v1622_v18, 40 }
 0x1ae   : > { %1652 = vst [vmem:[#allocation1 + $0x30] ss:$2 sm:$0xff] %v2969_v25  ;;  %vm1625_vm14 = vcmp.lt.s32.totalorder %v1623_v19, 40 }
 0x1af   : > { %1654 = vst [vmem:[#allocation1 + $0x31] ss:$2 sm:$0xff] %v2973_v30 }
 0x1b0   : > { %1648 = vst [vmem:[#allocation1 + $0x20] ss:$2 sm:$0xff] %v2971_v20 }
 0x1b1   : > { %1650 = vst [vmem:[#allocation1 + $0x21] ss:$2 sm:$0xff] %v2975_v33 }
 0x1b2   : > { %v1645_v54 = vld.sshfl [vmem:[#allocation1] sm:$0xff pattern:$0x75316420] }
 0x1b3   : > { %v1661_v24 = vsel %vm1624_vm13, %v1645_v54, 0.0 }
 0x1b4   : > { %v1646_v31 = vld.sshfl [vmem:[#allocation1 + $0x10] sm:$0xff pattern:$0x75316420]  ;;  %v1697_v12 = vmul.f32 %v1661_v24, %v1661_v24  ;;  %v1665_v21 = vpack.c.bf16 %v1661_v24, %v1661_v24 }
 0x1b5   : > { %v1662_v0 = vsel %vm1625_vm14, %v1646_v31, 0.0 }
 0x1b6   : > { %v1656_v22 = vld.sshfl [vmem:[#allocation1 + $0x30] sm:$0xff pattern:$0x75316420]  ;;  %v2309_v23 = vpack.c.bf16 %v1662_v0, %v1661_v24  ;;  %v1687_v25 = vadd.f32 %v1662_v0, %v1661_v24  ;;  %v1698_v27 = vmul.f32 %v1662_v0, %v1662_v0  ;;  %1673 = vst [vmem:[%s2633_s23] sm:$0x1] %v1665_v21  ;;  %v1666_v28 = vpack.c.bf16 %v1662_v0, %v1662_v0 }
 0x1b7   : > { %v1664_v29 = vsel %vm1625_vm14, %v1656_v22, 0.0 }
 0x1b8   : > { %2310 = vst [vmem:[%s2629_s14] sm:$0xff] %v2309_v23   ;;  %v1668_v20 = vpack.c.bf16 %v1664_v29, %v1664_v29  ;;  %v1655_v30 = vld.sshfl [vmem:[#allocation1 + $0x20] sm:$0xff pattern:$0x75316420]  ;;  %v1701_v32 = vadd.f32 %v1698_v27, %v1697_v12  ;;  %v1700_v26 = vmul.f32 %v1664_v29, %v1664_v29 }
 0x1b9   : > { %1676 = vst.sshfl [vmem:[#allocation1] sm:$0xff pattern:$0x75643120] %v1666_v28  ;;  %v1663_v33 = vsel %vm1624_vm13, %v1655_v30, 0.0 }
 0x1ba   : > { %1680 = vst.sshfl [vmem:[#allocation1 + $0x10] sm:$0xff pattern:$0x75643120] %v1668_v20  ;;  %v2314_v34 = vpack.c.bf16 %v1664_v29, %v1663_v33  ;;  %v1699_v35 = vmul.f32 %v1663_v33, %v1663_v33  ;;  %v1667_v37 = vpack.c.bf16 %v1663_v33, %v1663_v33  ;;  %v1688_v38 = vadd.f32 %v1687_v25, %v1663_v33 }
 0x1bc   : > { %2318 = vst [vmem:[%s2629_s14 + $0x8] sm:$0xff] %v2314_v34   ;;  %v1689_v63 = vadd.f32 %v1688_v38, %v1664_v29  ;;  %v1702_v39 = vadd.f32 %v1701_v32, %v1699_v35 }
 0x1bd   : > { %1674 = vst [vmem:[%s2633_s23 + $0x2] sm:$0x1] %v1667_v37 }
 0x1be   : > { %v1690_v40 = vrot.slane %v1689_v63, 4  ;;  %v1703_v41 = vadd.f32 %v1702_v39, %v1700_v26 }
 0x1c0   : > { %v1678_v42 = vld [vmem:[#allocation1 + $0x1] ss:$2 sm:$0xff]  ;;  %v1691_v11 = vadd.f32 %v1690_v40, %v1689_v63  ;;  %v1704_v43 = vrot.slane %v1703_v41, 4 }
 0x1c1   : > { %1685 = vst [vmem:[%s2633_s23] sm:$0x2] %v1678_v42  ;;  %v1682_v44 = vld [vmem:[#allocation1 + $0x11] ss:$2 sm:$0xff] }
 0x1c2   : > { %1686 = vst [vmem:[%s2633_s23 + $0x2] sm:$0x2] %v1682_v44  ;;  %v1692_v45 = vrot.slane %v1691_v11, 2  ;;  %v1705_v46 = vadd.f32 %v1704_v43, %v1703_v41 }
 0x1c4   : > { %v1693_v47 = vadd.f32 %v1692_v45, %v1691_v11  ;;  %v1706_v48 = vrot.slane %v1705_v46, 2 }
 0x1c6   : > { %v1694_v49 = vrot.slane %v1693_v47, 1  ;;  %v1707_v10 = vadd.f32 %v1706_v48, %v1705_v46 }
 0x1c8   : > { %v1695_v51 = vadd.f32 %v1694_v49, %v1693_v47  ;;  %v1708_v53 = vrot.slane %v1707_v10, 1 }
 0x1ca   : > { %1696 = vst [vmem:[%s2612_s21] sm:$0x1] %v1695_v51  ;;  %v1709_v56 = vadd.f32 %v1708_v53, %v1707_v10 }
 0x1cc   : > { %1710 = vst [vmem:[%s2617_s27] sm:$0x1] %v1709_v56 }
 0x1cd PF: > { %s1716_s24 = scalar_lea.sflag [#allocation6], %s2572_s28  ;;  %1728 = sbr.rel (!%p2555_p6) target bundleno = 466 (0x1d2), region = 109  ;;  %v1748_v57 = vld [vmem:[%s2629_s14] sm:$0xff] (%p2555_p6)   ;;  %v1752_v55 = vld [vmem:[%s2629_s14 + $0x8] sm:$0xff] (%p2555_p6)  }
 0x1ce   : > { %s2286_s25 = sshll.u32 (%p2555_p6), %s2537_s13, 3 }
 0x1cf   : > { %s1731_s17 = scalar_lea.vmem (%p2555_p6), %s3099_s6, %s2286_s25 }
 0x1d0   : > { %1749 = vst [vmem:[%s1731_s17] sm:$0xff] (%p2555_p6), %v1748_v57  }
 0x1d1   : > { %1753 = vst [vmem:[%s1731_s17 + $0x18] sm:$0xff] (%p2555_p6), %v1752_v55  }
 0x1d2 PF: > { %s2287_s21 = sshll.u32 %s2537_s13, 2  ;;  %s1793_s27 = sshll.u32 %s2633_s23, 4  ;;  %s1794_s27 = int_to_ptr.vmem [resolvable:$true] %s1793_s27 }
 0x1d3   : > { %s1792_s22 = scalar_lea.hbm %s3100_s7, %s2287_s21  ;;  %s2418_s26 = scalar_lea.hbm %s3100_s7, 12 }
 0x1d4   : > { %s1795_s16 = sshll.u32 %s1792_s22, 4  ;;  %s1796_s16 = int_to_ptr.hbm [resolvable:$true] %s1795_s16 }
 0x1d5   : > { %s2412_s14 = sshra.s32 %s1796_s16, 4  ;;  %s2413_s14 = int_to_ptr.hbm [resolvable:$true] %s2412_s14 }
 0x1d6   : > { %s2414_s0 = scalar_lea.hbm %s2413_s14, 4  ;;  %p2419_p11 = scmp.lt.s32.totalorder %s2413_s14, %s3100_s7 }
 0x1d7   : > { %p2415_p7 = scmp.ne.s32.totalorder %s2413_s14, %s2414_s0  ;;  %p2420_p12 = scmp.lt.s32.totalorder %s2418_s26, %s2414_s0 }
 0x1d9   : > { %p2416_p9 = pnand %p2415_p7, %p2555_p6  ;;  %p2421_p13 = por %p2420_p12, %p2419_p11 }
 0x1db   : > { %p2417_p10 = pneg %p2416_p9 }
 0x1dd   : > { %p2422_p0 = pnand %p2421_p13, %p2417_p10 }
 0x1df   : > { %2425 = shalt.err (!%p2422_p0)
}
 0x1e0   : > { %s2464_s17 = smov 32   ;;  %s2465_s21 = smov 2  }
 0x1e1   : > { %2335 = dma.vmem_to_hbm [thread:$0]  (%p2555_p6), %s1794_s27, 64, %s1796_s16, %s1716_s24, %s2464_s17, %s2464_s17, %s2465_s21  }
 0x1e2 PF: > { %p2341_p1 = scmp.ge.s32.totalorder %s2460_s12, 2  ;;  %s1823_s1 = sand.u32 1, %s2448_s30  }
 0x1e3   : > { %s1824_s18 = scalar_lea.sflag [#allocation6], %s1823_s1 }
 0x1e4   : > { %p2338_p2 = pnand %p2341_p1, %p2559_p8 }
 0x1e6   : > { %p2339_p3 = pneg %p2338_p2 }
 0x1e8   : > { %2443 = dma.done.wait (%p2339_p3), %s1824_s18, 64  }
 0x1e9   : > { %2445 = vsyncadd (%p2339_p3), %s1824_s18, 4294967232  ;;  %s3122_s22 = sld [smem:[#allocation8_spill]]  ;;  %p20_p4 = scmp.ge.s32.totalorder %s2541_s15, 5  }
 0x1ea   : > { %s3123_s30 = smov %s2452_s10  ;;  %s3124_s10 = smov %s2456_s11 }
 0x1eb   : > { %s3126_s12 = smov %s2541_s15  ;;  %22 = sbr.rel (!%p20_p4) target bundleno = 6 (0x6), region = 297 }
 0x1ef   : > { %s3125_s11 = smov %s3122_s22 }
 0x1f0   :  { %1842 = vsyncpa [#allocation6], 1 }
 0x1f1   :  { %1844 = vsyncpa [#allocation6 + $0x1], 1 }

// kernel: postnet_forward.7
= control target key start
LH: loop header
LB: loop body
LE: loop exit
PB: predicated region body
PF: predicated region fallthrough
CT: control target
= control target key end

     0   :  { %15 = vsyncpa [#allocation5], 0  ;;  %s2317_s3 = smov 0   ;;  %s2319_s30 = smov 0   ;;  %s2730_s0 = inlined_call_operand.vmem [shape: bf16[2,48,128], index: 0, kind: input, shape index: {}]   ;;  %s2731_s1 = inlined_call_operand.vmem [shape: bf16[3,2,4,128], index: 1, kind: input, shape index: {}, may-alias: {1,2}]   ;;  %s2732_s2 = inlined_call_operand.vmem [shape: bf16[3,2,4,128], index: 2, kind: input, shape index: {}, may-alias: {1,2}]   ;;  %s2733_s3 = inlined_call_operand.vmem [shape: f32[1,128], index: 3, kind: input, shape index: {}]   ;;  %s2734_s4 = inlined_call_operand.vmem [shape: f32[1,128], index: 4, kind: input, shape index: {}]   ;;  %s2735_s5 = inlined_call_operand.hbm [shape: bf16[5,128,128], index: 5, kind: input, shape index: {}]   ;;  %s2736_s6 = inlined_call_operand.vmem [shape: bf16[2,48,128], index: 6, kind: output, shape index: {0}]   ;;  %s2737_s7 = inlined_call_operand.vmem [shape: bf16[3,2,4,128], index: 7, kind: output, shape index: {1}]   ;;  %s2738_s8 = inlined_call_operand.vmem [shape: f32[3,1,128], index: 8, kind: output, shape index: {2}]   ;;  %s2739_s9 = inlined_call_operand.vmem [shape: f32[3,1,128], index: 9, kind: output, shape index: {3}]  }
   0x1   :  { %s2321_s4 = smov 0  }
   0x2 LB: > { %s2333_s10 = sadd.s32 4294967295, %s2260_s4   ;;  %s2336_s11 = sadd.s32 1, %s2260_s4   ;;  %s2260_s4 = sphi %s2321_s4, %s2752_s4   ;;  %s2256_s30 = sphi %s2319_s30, %s2751_s30   ;;  %s2252_s3 = sphi %s2317_s3, %s2750_s3  }
   0x3   : > { %s25_s12 = ssub.s32 %s2260_s4, %s2336_s11  ;;  %s28_s13 = sadd.s32 1, %s2256_s30 }
   0x4   : > { %p26_p0 = scmp.eq.s32.totalorder %s25_s12, 0  ;;  %p35_p1 = scmp.ne.s32.totalorder %s2256_s30, %s2252_s3 }
   0x5   : > { %p36_p2 = scmp.eq.s32.totalorder %s2260_s4, 0  ;;  %p192_p3 = scmp.eq.s32.totalorder %s2333_s10, 2 }
   0x6   : > { %s2346_s14 = scalar_select %p26_p0, %s2256_s30, %s28_s13  }
   0x7   : > { %p2348_p4 = por %p36_p2, %p35_p1  ;;  %p2352_p5 = por %p192_p3, %p35_p1 }
   0x8   : > { %p1871_p6 = scmp.ge.s32.totalorder %s2260_s4, 1  ;;  %p283_p7 = scmp.lt.s32.totalorder %s2260_s4, 4 }
   0x9   : > { %p1872_p8 = scmp.ne.s32.totalorder %s2333_s10, 0  ;;  %p2173_p9 = scmp.eq.s32.totalorder %s2333_s10, 0 }
   0xa   : > { %p2360_p10 = pnand %p1871_p6, %p283_p7  ;;  %s300_s20 = sshll.u32 %s2735_s5, 4  ;;  %s301_s20 = int_to_ptr.hbm [resolvable:$true] %s300_s20 }
   0xb   : > { %s2262_s21 = smov [#allocation4]   ;;  %s2263_s23 = smov 64  }
   0xc   : > { %p2169_p11 = pneg %p2360_p10  ;;  %s302_s22 = sshll.u32 %s2262_s21, 4  ;;  %s303_s22 = int_to_ptr.vmem [resolvable:$true] %s302_s22 }
   0xd   : > { %s2264_s24 = smov 4   ;;  %p1873_p13 = scmp.ge.s32.totalorder %s2260_s4, 3 }
   0xe   : > { %p2170_p12 = pnand %p2173_p9, %p2169_p11 }
   0xf   : > { %312 = sbr.rel (%p1873_p13) target bundleno = 26 (0x1a), region = 28 }
  0x10   : > { %2172 = dma.hbm_to_vmem [thread:$0]  (!%p2170_p12), %s301_s20, 5120, %s303_s22, [#allocation5], %s2263_s23, %s2263_s23, %s2264_s24  }
  0x14   : > { %315 = sbr.rel (!%p2348_p4) target bundleno = 26 (0x1a), region = 32  ;;  %s317_s25 = sand.u32 (%p2348_p4), 1, %s2256_s30  }
  0x15   : > { %s2080_s26 = sshll.u32 (%p2348_p4), %s2260_s4, 3  ;;  %s1874_s27 = sshll.u32 (%p2348_p4), %s317_s25, 4 }
  0x16   : > { %s322_s12 = scalar_lea.vmem (%p2348_p4), %s2730_s0, %s2080_s26  ;;  %s319_s13 = scalar_lea.vmem (%p2348_p4), [#allocation3], %s1874_s27 }
  0x17   : > { %v339_v0 = vld [vmem:[%s322_s12] sm:$0xff] (%p2348_p4)   ;;  %v343_v1 = vld [vmem:[%s322_s12 + $0x18] sm:$0xff] (%p2348_p4)  }
  0x18   : > { %340 = vst [vmem:[%s319_s13] sm:$0xff] (%p2348_p4), %v339_v0  }
  0x19   : > { %344 = vst [vmem:[%s319_s13 + $0x8] sm:$0xff] %v343_v1  }
  0x1a PF: > { %409 = sbr.rel (%p2360_p10) target bundleno = 418 (0x1a2), region = 81  ;;  %s412_s15 = sand.u32 (!%p2360_p10), 1, %s2252_s3  }
  0x1b   : > { %s2382_s18 = sshll.u32 (!%p2360_p10), %s412_s15, 4 }
  0x1c   : > { %s2385_s4 = scalar_lea.vmem (!%p2360_p10), [#allocation3], %s2382_s18 }
  0x1f   : > { %2247 = dma.done.wait (%p2173_p9), [#allocation5], 5120  }
  0x20   : > { %2249 = vsyncadd (%p2173_p9), [#allocation5], 4294962176  ;;  %s1881_s17 = sadd.s32 4294967295, %s2333_s10  ;;  %s490_s19 = sadd.s32 1, %s2333_s10  ;;  %vm522_vm0 = vcmask 1040384   ;;  %vm523_vm1 = vcmask 1044484  }
  0x21   : > { %p480_p0 = scmp.gt.s32.totalorder %s1881_s17, 0  ;;  %p1882_p1 = scmp.lt.s32.totalorder %s1881_s17, 2  ;;  %v514_v2 = vld [vmem:[%s2385_s4] sm:$0xf]  ;;  %v515_v3 = vld [vmem:[%s2385_s4 + $0x4] sm:$0xf]  ;;  %vm2409_vm2 = vmor %vm522_vm0, %vm523_vm1 }
  0x22   : > { %p2393_p2 = scmp.lt.s32.totalorder %s490_s19, 2  ;;  %p502_p3 = scmp.lt.s32.totalorder %s2333_s10, 2  ;;  %v525_v4 = vrot.slane %v514_v2, 7  ;;  %v527_v5 = vrot.slane %v515_v3, 7  ;;  %v516_v6 = vld [vmem:[%s2385_s4 + $0x8] sm:$0xf] }
  0x23   : > { %s2754_s17 = smov (!%p480_p0, %s1881_s17), 0  ;;  %v530_v9 = vrot.slane %v516_v6, 7  ;;  %v517_v14 = vld [vmem:[%s2385_s4 + $0xc] sm:$0xf]  ;;  %s2440_s22 = scalar_lea.vmem [#allocation6], %s2382_s18 }
  0x24   : > { %s2756_s19 = smov (!%p2393_p2, %s490_s19), 2  ;;  %s2758_s17 = smov (!%p1882_p1, %s2754_s17), 2  ;;  %v526_v11 = vrot.slane %v525_v4, 4  ;;  %v529_v12 = vrot.slane %v527_v5, 4  ;;  %541 = vst [vmem:[#allocation2] sm:$0xe] %v525_v4 }
  0x25   : > { %s2760_s19 = smov (!%p2393_p2, %s2756_s19), 2  ;;  %s2083_s20 = sshll.u32 %s2758_s17, 2  ;;  %v531_v13 = vrot.slane %v530_v9, 4  ;;  %v532_v16 = vrot.slane %v517_v14, 7  ;;  %544 = vst [vmem:[#allocation2 + $0xc] sm:$0xe] %v530_v9 }
  0x26   : > { %s486_s23 = scalar_lea.vmem %s2731_s1, %s2083_s20  ;;  %s2084_s24 = sshll.u32 %s2760_s19, 2  ;;  %v528_v15 = vsel %vm2409_vm2, %v526_v11, %v527_v5  ;;  %543 = vst [vmem:[#allocation2 + $0x8] sm:$0x1] %v529_v12 }
  0x27   : > { %v547_v7 = vld [vmem:[%s486_s23] sm:$0x2]  ;;  %v548_v8 = vld [vmem:[%s486_s23 + $0x2] sm:$0x2]  ;;  %s503_s25 = scalar_select %p502_p3, %s2333_s10, 2  ;;  %v533_v18 = vsel %vm2409_vm2, %v531_v13, %v532_v16  ;;  %v534_v19 = vrot.slane %v532_v16, 4 }
  0x28   : > { %552 = vst [vmem:[#allocation1] ss:$2 sm:$0xff] %v547_v7  ;;  %s497_s28 = scalar_lea.vmem %s2732_s2, %s2084_s24 }
  0x29   : > { %557 = vst [vmem:[#allocation1 + $0x10] ss:$2 sm:$0xff] %v548_v8  ;;  %s2085_s29 = sshll.u32 %s503_s25, 2  ;;  %s2423_s15 = scalar_lea.vmem %s2738_s8, %s503_s25  ;;  %v549_v17 = vld [vmem:[%s497_s28] sm:$0x1] }
  0x2a   : > { %s2430_s3 = scalar_lea.vmem %s2737_s7, %s2085_s29  ;;  %s2435_s4 = scalar_lea.vmem %s2739_s9, %s503_s25  ;;  %542 = vst [vmem:[#allocation2 + $0x4] sm:$0xf] %v528_v15  ;;  %v550_v20 = vld [vmem:[%s497_s28 + $0x2] sm:$0x1] }
  0x2b   : > { %545 = vst [vmem:[#allocation2 + $0x10] sm:$0xf] %v533_v18 }
  0x2c   : > { %546 = vst [vmem:[#allocation2 + $0x14] sm:$0x1] %v534_v19 }
  0x2f   : > { %v553_v21 = vld.sshfl [vmem:[#allocation1] sm:$0xff pattern:$0x75643120] }
  0x30   : > { %569 = vst [vmem:[#allocation1] ss:$2 sm:$0xff] %v549_v17  ;;  %v558_v22 = vld.sshfl [vmem:[#allocation1 + $0x10] sm:$0xff pattern:$0x75643120]  ;;  %v1896_v23 = vrot.slane %v553_v21, 9 }
  0x31   : > { %574 = vst [vmem:[#allocation1 + $0x10] ss:$2 sm:$0xff] %v550_v20  ;;  %v1897_v24 = vrot.slane %v558_v22, 9 }
  0x32   : > { %566 = vst [vmem:[#allocation2] sm:$0x1] %v1896_v23 }
  0x33   : > { %567 = vst [vmem:[#allocation2 + $0xc] sm:$0x1] %v1897_v24 }
  0x37   : > { %v570_v25 = vld.sshfl [vmem:[#allocation1] sm:$0xff pattern:$0x75643120]  ;;  %586 = sbr.rel (%p1872_p8) target bundleno = 63 (0x3f), region = 93 }
  0x38   : > { %v577_v26 = vrot.slane %v570_v25, 7  ;;  %v575_v27 = vld.sshfl [vmem:[#allocation1 + $0x10] sm:$0xff pattern:$0x75643120] }
  0x39   : > { %v578_v28 = vrot.slane %v575_v27, 7 }
  0x3a   : > { %581 = vst [vmem:[#allocation2 + $0x8] sm:$0x2] %v577_v26 }
  0x3b   : > { %582 = vst [vmem:[#allocation2 + $0x14] sm:$0x2] %v578_v28 }
  0x3c   : > { %v2265_v29 = vmov 0  }
  0x3d   : > { %587 = vst [vmem:[#allocation2] sm:$0x1] %v2265_v29 }
  0x3e   : > { %588 = vst [vmem:[#allocation2 + $0xc] sm:$0x1] %v2265_v29 }
  0x3f PF: > { %p1899_p4 = scmp.ne.s32.totalorder %s2333_s10, 2 }
  0x41   : > { %592 = sbr.rel (%p1899_p4) target bundleno = 73 (0x49), region = 97 }
  0x46   : > { %v2266_v30 = vmov 0  }
  0x47   : > { %593 = vst [vmem:[#allocation2 + $0x8] sm:$0x2] %v2266_v30 }
  0x48   : > { %594 = vst [vmem:[#allocation2 + $0x14] sm:$0x2] %v2266_v30 }
  0x49 PF: > { %v2093_v31 = vld [vmem:[#allocation4 + $0x38] sm:$0xff]  ;;  %v2092_v33 = vld [vmem:[#allocation4 + $0x30] sm:$0xff]  ;;  %v2091_v36 = vld [vmem:[#allocation4 + $0x28] sm:$0xff]  ;;  %vm629_vm3 = vcmask 1041408   ;;  %vm633_vm4 = vcmask 1043458   ;;  %vm892_vm5 = vcmask 1042432  }
  0x4a   : > { %v2109_v32 = vld [vmem:[#allocation4 + $0xb8] sm:$0xff]  ;;  %2149 = vmatpush.bf16.msra.mxu1 %v2093_v31  ;;  %736 = vmatpush.bf16.msra.mxu0 %v2093_v31  ;;  %v2108_v34 = vld [vmem:[#allocation4 + $0xb0] sm:$0xff]  ;;  %v595_v37 = vld [vmem:[#allocation2] sm:$0xf]  ;;  %vm893_vm6 = vcmask 1046532   ;;  %vm1058_vm8 = vcmask 1045508  }
  0x4b   : > { %1025 = vmatpush.bf16.msra.mxu2 %v2109_v32  ;;  %v2117_v35 = vld [vmem:[#allocation4 + $0xf8] sm:$0xff]  ;;  %v2107_v38 = vld [vmem:[#allocation4 + $0xa8] sm:$0xff]  ;;  %v2116_v39 = vld [vmem:[#allocation4 + $0xf0] sm:$0xff]  ;;  %v623_v41 = vrot.slane %v595_v37, 2  ;;  %p2072_p6 = scmp.ge.s32.totalorder %s2333_s10, 2 }
  0x4c   : > { %1190 = vmatpush.bf16.msra.mxu3 %v2117_v35  ;;  %v596_v40 = vld [vmem:[#allocation2 + $0x4] sm:$0xf]  ;;  %v599_v43 = vld [vmem:[#allocation2 + $0x10] sm:$0xf]  ;;  %v2090_v44 = vld [vmem:[#allocation4 + $0x20] sm:$0xff] }
  0x4d   : > { %v624_v42 = vrot.slane %v596_v40, 2  ;;  %v2448_v45 = vsel %vm629_vm3, %v595_v37, %v623_v41  ;;  %v634_v46 = vsel %vm633_vm4, %v595_v37, %v623_v41  ;;  %v2106_v47 = vld [vmem:[#allocation4 + $0xa0] sm:$0xff]  ;;  %v2115_v48 = vld [vmem:[#allocation4 + $0xe8] sm:$0xff]  ;;  %v627_v52 = vrot.slane %v599_v43, 2  ;;  %v2089_v54 = vld [vmem:[#allocation4 + $0x18] sm:$0xff] }
  0x4e   : > { %2150 = vmatpush.bf16.msra.mxu1 %v2092_v33  ;;  %737 = vmatpush.bf16.msra.mxu0 %v2092_v33  ;;  %v2451_v49 = vrot.slane %v634_v46, 2  ;;  %661 = vst [vmem:[#allocation1] ss:$4 sm:$0xff] %v2448_v45  ;;  %v2105_v56 = vld [vmem:[#allocation4 + $0x98] sm:$0xff]  ;;  %v2114_v57 = vld [vmem:[#allocation4 + $0xe0] sm:$0xff]  ;;  %v2088_v60 = vld [vmem:[#allocation4 + $0x10] sm:$0xff] }
  0x4f   : > { %1026 = vmatpush.bf16.msra.mxu2 %v2108_v34  ;;  %v2454_v50 = vsel %vm629_vm3, %v596_v40, %v624_v42  ;;  %v640_v51 = vsel %vm633_vm4, %v596_v40, %v624_v42  ;;  %v600_v55 = vld [vmem:[#allocation2 + $0x14] sm:$0x3]  ;;  %v655_v58 = vsel %vm633_vm4, %v599_v43, %v627_v52  ;;  %v598_v61 = vld [vmem:[#allocation2 + $0xc] sm:$0xf]  ;;  %v597_v1 = vld [vmem:[#allocation2 + $0x8] sm:$0x3]  ;;  %v2481_v12 = vsel %vm629_vm3, %v599_v43, %v627_v52 }
  0x50   : > { %1191 = vmatpush.bf16.msra.mxu3 %v2116_v39  ;;  %v2457_v53 = vrot.slane %v640_v51, 2  ;;  %664 = vst [vmem:[#allocation1 + $0x1] ss:$4 sm:$0xff] %v2451_v49  ;;  %v628_v59 = vrot.slane %v600_v55, 2  ;;  %v2104_v62 = vld [vmem:[#allocation4 + $0x90] sm:$0xff]  ;;  %v2464_v63 = vrot.slane %v655_v58, 2  ;;  %vm2539_vm7 = vmor %vm892_vm5, %vm893_vm6 }
  0x51   : > { %666 = vst [vmem:[#allocation1 + $0x2] ss:$4 sm:$0xff] %v2454_v50  ;;  %v626_v0 = vrot.slane %v598_v61, 2  ;;  %v625_v3 = vrot.slane %v597_v1, 2  ;;  %v2087_v5 = vld [vmem:[#allocation4 + $0x8] sm:$0xff]  ;;  %v2086_v13 = vld [vmem:[#allocation4] sm:$0xff]  ;;  %vm2552_vm9 = vmor %vm629_vm3, %vm1058_vm8 }
  0x52   : > { %2151 = vmatpush.bf16.msra.mxu1 %v2091_v36  ;;  %738 = vmatpush.bf16.msra.mxu0 %v2091_v36  ;;  %669 = vst [vmem:[#allocation1 + $0x3] ss:$4 sm:$0xff] %v2457_v53  ;;  %v2467_v2 = vsel %vm629_vm3, %v600_v55, %v628_v59  ;;  %v2103_v7 = vld [vmem:[#allocation4 + $0x88] sm:$0xff]  ;;  %v2101_v14 = vld [vmem:[#allocation4 + $0x78] sm:$0xff]  ;;  %v2102_v15 = vld [vmem:[#allocation4 + $0x80] sm:$0xff] }
  0x53   : > { %1027 = vmatpush.bf16.msra.mxu2 %v2107_v38  ;;  %v649_v4 = vsel %vm633_vm4, %v598_v61, %v626_v0  ;;  %v2472_v8 = vsel %vm629_vm3, %v597_v1, %v625_v3  ;;  %v2475_v9 = vsel %vm629_vm3, %v598_v61, %v626_v0  ;;  %678 = vst [vmem:[#allocation1 + $0x23] ss:$4 sm:$0xff] %v2481_v12  ;;  %v2100_v16 = vld [vmem:[#allocation4 + $0x70] sm:$0xff]  ;;  %v2125_v18 = vld [vmem:[#allocation4 + $0x138] sm:$0xff]  ;;  %v2099_v20 = vld [vmem:[#allocation4 + $0x68] sm:$0xff] }
  0x54   : > { %1192 = vmatpush.bf16.msra.mxu3 %v2115_v48  ;;  %v2477_v11 = vrot.slane %v649_v4, 2  ;;  %671 = vst [vmem:[#allocation1 + $0x20] ss:$4 sm:$0xff] %v2472_v8  ;;  %v2113_v19 = vld [vmem:[#allocation4 + $0xd8] sm:$0xff]  ;;  %v2112_v21 = vld [vmem:[#allocation4 + $0xd0] sm:$0xff]  ;;  %v2111_v24 = vld [vmem:[#allocation4 + $0xc8] sm:$0xff] }
  0x55   : > { %673 = vst [vmem:[#allocation1 + $0x21] ss:$4 sm:$0xff] %v2475_v9  ;;  %v2124_v22 = vld [vmem:[#allocation4 + $0x130] sm:$0xff]  ;;  %v2098_v25 = vld [vmem:[#allocation4 + $0x60] sm:$0xff]  ;;  %v2123_v26 = vld [vmem:[#allocation4 + $0x128] sm:$0xff] }
  0x56   : > { %2152 = vmatpush.bf16.msra.mxu1 %v2090_v44  ;;  %739 = vmatpush.bf16.msra.mxu0 %v2090_v44  ;;  %676 = vst [vmem:[#allocation1 + $0x22] ss:$4 sm:$0xff] %v2477_v11  ;;  %v2110_v28 = vld [vmem:[#allocation4 + $0xc0] sm:$0xff]  ;;  %v2097_v29 = vld [vmem:[#allocation4 + $0x58] sm:$0xff]  ;;  %v2096_v32 = vld [vmem:[#allocation4 + $0x50] sm:$0xff] }
  0x57   : > { %1028 = vmatpush.bf16.msra.mxu2 %v2106_v47  ;;  %v2122_v30 = vld [vmem:[#allocation4 + $0x120] sm:$0xff]  ;;  %v2095_v34 = vld [vmem:[#allocation4 + $0x48] sm:$0xff]  ;;  %v2121_v35 = vld [vmem:[#allocation4 + $0x118] sm:$0xff] }
  0x58   : > { %1193 = vmatpush.bf16.msra.mxu3 %v2114_v57  ;;  %v2120_v36 = vld [vmem:[#allocation4 + $0x110] sm:$0xff]  ;;  %v2094_v37 = vld [vmem:[#allocation4 + $0x40] sm:$0xff]  ;;  %v2119_v39 = vld [vmem:[#allocation4 + $0x108] sm:$0xff] }
  0x59   : > { %v679_v6 = vld.sshfl [vmem:[#allocation1] sm:$0xff pattern:$0x73625140] }
  0x5a   : > { %2153 = vmatpush.bf16.msra.mxu1 %v2089_v54  ;;  %740 = vmatpush.bf16.msra.mxu0 %v2089_v54  ;;  %682 = vst [vmem:[#allocation1] ss:$4 sm:$0xff] %v2464_v63  ;;  %v2118_v40 = vld [vmem:[#allocation4 + $0x100] sm:$0xff] }
  0x5b   : > { %1029 = vmatpush.bf16.msra.mxu2 %v2105_v56  ;;  %683 = vst [vmem:[#allocation1 + $0x1] ss:$4 sm:$0xff] %v2467_v2 }
  0x5c   : > { %1194 = vmatpush.bf16.msra.mxu3 %v2113_v19 }
  0x5d   : > { %v680_v23 = vld.sshfl [vmem:[#allocation1 + $0x20] sm:$0xff pattern:$0x73625140] }
  0x5e   : > { %2154 = vmatpush.bf16.msra.mxu1 %v2088_v60  ;;  %741 = vmatpush.bf16.msra.mxu0 %v2088_v60  ;;  %796 = vst [vmem:[#allocation1 + $0x20] ss:$4 sm:$0xff] %v2472_v8 }
  0x5f   : > { %1030 = vmatpush.bf16.msra.mxu2 %v2104_v62  ;;  %798 = vst [vmem:[#allocation1 + $0x21] ss:$4 sm:$0xff] %v2475_v9 }
  0x60   : > { %1195 = vmatpush.bf16.msra.mxu3 %v2112_v21  ;;  %800 = vst [vmem:[#allocation1 + $0x22] ss:$4 sm:$0xff] %v2477_v11 }
  0x61   : > { %802 = vst [vmem:[#allocation1 + $0x23] ss:$4 sm:$0xff] %v2481_v12 }
  0x62   : > { %2155 = vmatpush.bf16.msra.mxu1 %v2087_v5  ;;  %742 = vmatpush.bf16.msra.mxu0 %v2087_v5  ;;  %v684_v17 = vld.sshfl [vmem:[#allocation1] sm:$0xff pattern:$0x73625140] }
  0x63   : > { %1031 = vmatpush.bf16.msra.mxu2 %v2103_v7  ;;  %788 = vst [vmem:[#allocation1] ss:$4 sm:$0xff] %v2448_v45 }
  0x64   : > { %790 = vst [vmem:[#allocation1 + $0x1] ss:$4 sm:$0xff] %v2451_v49  ;;  %1196 = vmatpush.bf16.msra.mxu3 %v2111_v24 }
  0x65   : > { %792 = vst [vmem:[#allocation1 + $0x2] ss:$4 sm:$0xff] %v2454_v50 }
  0x66   : > { %2156 = vmatpush.bf16.msra.mxu1 %v2086_v13  ;;  %743 = vmatpush.bf16.msra.mxu0 %v2086_v13  ;;  %794 = vst [vmem:[#allocation1 + $0x3] ss:$4 sm:$0xff] %v2457_v53 }
  0x67   : > { %1032 = vmatpush.bf16.msra.mxu2 %v2102_v15 }
  0x68   : > { %1197 = vmatpush.bf16.msra.mxu3 %v2110_v28  ;;  %v804_v31 = vld.sshfl [vmem:[#allocation1 + $0x20] sm:$0xff pattern:$0x73625140] }
  0x69   : > { %754 = vmatmul.bf16.vlgmr.msra.gmra.mxu1 %v684_v17  ;;  %744 = vmatmul.bf16.vlgmr.msra.gmra.mxu0 %v679_v6  ;;  %962 = vst [vmem:[#allocation1 + $0x20] ss:$4 sm:$0xff] %v2472_v8 }
  0x6a   : > { %859 = vmatpush.bf16.msrb.mxu1 %v2101_v14  ;;  %1356 = vmatpush.bf16.msrb.mxu0 %v2125_v18  ;;  %964 = vst [vmem:[#allocation1 + $0x21] ss:$4 sm:$0xff] %v2475_v9 }
  0x6b   : > { %2157 = vmatpush.bf16.msrb.mxu2 %v2125_v18  ;;  %966 = vst [vmem:[#allocation1 + $0x22] ss:$4 sm:$0xff] %v2477_v11 }
  0x6c   : > { %968 = vst [vmem:[#allocation1 + $0x23] ss:$4 sm:$0xff] %v2481_v12 }
  0x6d   : > { %v803_v27 = vld.sshfl [vmem:[#allocation1] sm:$0xff pattern:$0x73625140] }
  0x6e   : > { %860 = vmatpush.bf16.msrb.mxu1 %v2100_v16  ;;  %1357 = vmatpush.bf16.msrb.mxu0 %v2124_v22  ;;  %805 = vst [vmem:[#allocation1] ss:$4 sm:$0xff] %v2464_v63 }
  0x6f   : > { %2158 = vmatpush.bf16.msrb.mxu2 %v2124_v22  ;;  %806 = vst [vmem:[#allocation1 + $0x1] ss:$4 sm:$0xff] %v2467_v2 }
  0x72   : > { %861 = vmatpush.bf16.msrb.mxu1 %v2099_v20  ;;  %1358 = vmatpush.bf16.msrb.mxu0 %v2123_v26 }
  0x73   : > { %2159 = vmatpush.bf16.msrb.mxu2 %v2123_v26  ;;  %v970_v38 = vld.sshfl [vmem:[#allocation1 + $0x20] sm:$0xff pattern:$0x73625140] }
  0x74   : > { %1127 = vst [vmem:[#allocation1 + $0x20] ss:$4 sm:$0xff] %v2472_v8 }
  0x75   : > { %1129 = vst [vmem:[#allocation1 + $0x21] ss:$4 sm:$0xff] %v2475_v9 }
  0x76   : > { %862 = vmatpush.bf16.msrb.mxu1 %v2098_v25  ;;  %1359 = vmatpush.bf16.msrb.mxu0 %v2122_v30  ;;  %v807_v33 = vld.sshfl [vmem:[#allocation1] sm:$0xff pattern:$0x73625140]  ;;  %1131 = vst [vmem:[#allocation1 + $0x22] ss:$4 sm:$0xff] %v2477_v11 }
  0x77   : > { %2160 = vmatpush.bf16.msrb.mxu2 %v2122_v30  ;;  %954 = vst [vmem:[#allocation1] ss:$4 sm:$0xff] %v2448_v45 }
  0x78   : > { %956 = vst [vmem:[#allocation1 + $0x1] ss:$4 sm:$0xff] %v2451_v49 }
  0x79   : > { %749 = vmatmul.bf16.gmra.mxu0 %v680_v23  ;;  %958 = vst [vmem:[#allocation1 + $0x2] ss:$4 sm:$0xff] %v2454_v50 }
  0x7a   : > { %863 = vmatpush.bf16.msrb.mxu1 %v2097_v29  ;;  %1360 = vmatpush.bf16.msrb.mxu0 %v2121_v35  ;;  %960 = vst [vmem:[#allocation1 + $0x3] ss:$4 sm:$0xff] %v2457_v53 }
  0x7b   : > { %2161 = vmatpush.bf16.msrb.mxu2 %v2121_v35  ;;  %1133 = vst [vmem:[#allocation1 + $0x23] ss:$4 sm:$0xff] %v2481_v12 }
  0x7e   : > { %864 = vmatpush.bf16.msrb.mxu1 %v2096_v32  ;;  %1361 = vmatpush.bf16.msrb.mxu0 %v2120_v36 }
  0x7f   : > { %2162 = vmatpush.bf16.msrb.mxu2 %v2120_v36 }
  0x81   : > { %v969_v41 = vld.sshfl [vmem:[#allocation1] sm:$0xff pattern:$0x73625140] }
  0x82   : > { %865 = vmatpush.bf16.msrb.mxu1 %v2095_v34  ;;  %1362 = vmatpush.bf16.msrb.mxu0 %v2119_v39  ;;  %971 = vst [vmem:[#allocation1] ss:$4 sm:$0xff] %v2464_v63  ;;  %v1135_v42 = vld.sshfl [vmem:[#allocation1 + $0x20] sm:$0xff pattern:$0x73625140] }
  0x83   : > { %2163 = vmatpush.bf16.msrb.mxu2 %v2119_v39  ;;  %972 = vst [vmem:[#allocation1 + $0x1] ss:$4 sm:$0xff] %v2467_v2 }
  0x84   : > { %1033 = vmatmul.bf16.vlgmr.msra.gmra.mxu2 %v969_v41  ;;  %1293 = vst [vmem:[#allocation1 + $0x20] ss:$4 sm:$0xff] %v2472_v8 }
  0x85   : > { %1295 = vst [vmem:[#allocation1 + $0x21] ss:$4 sm:$0xff] %v2475_v9 }
  0x86   : > { %866 = vmatpush.bf16.msrb.mxu1 %v2094_v37  ;;  %1363 = vmatpush.bf16.msrb.mxu0 %v2118_v40  ;;  %1297 = vst [vmem:[#allocation1 + $0x22] ss:$4 sm:$0xff] %v2477_v11 }
  0x87   : > { %2164 = vmatpush.bf16.msrb.mxu2 %v2118_v40  ;;  %1299 = vst [vmem:[#allocation1 + $0x23] ss:$4 sm:$0xff] %v2481_v12 }
  0x89   : > { %867 = vmatmul.bf16.vlgmr.msrb.gmra.mxu1 %v803_v27 }
  0x8a   : > { %v973_v43 = vld.sshfl [vmem:[#allocation1] sm:$0xff pattern:$0x73625140] }
  0x8b   : > { %1119 = vst [vmem:[#allocation1] ss:$4 sm:$0xff] %v2448_v45 }
  0x8c   : > { %1121 = vst [vmem:[#allocation1 + $0x1] ss:$4 sm:$0xff] %v2451_v49 }
  0x8d   : > { %1123 = vst [vmem:[#allocation1 + $0x2] ss:$4 sm:$0xff] %v2454_v50 }
  0x8e   : > { %1125 = vst [vmem:[#allocation1 + $0x3] ss:$4 sm:$0xff] %v2457_v53  ;;  %v1301_v51 = vld.sshfl [vmem:[#allocation1 + $0x20] sm:$0xff pattern:$0x73625140] }
  0x94   : > { %1038 = vmatmul.bf16.gmra.mxu2 %v970_v38 }
  0x95   : > { %v1134_v44 = vld.sshfl [vmem:[#allocation1] sm:$0xff pattern:$0x73625140] }
  0x96   : > { %1136 = vst [vmem:[#allocation1] ss:$4 sm:$0xff] %v2464_v63  ;;  %1198 = vmatmul.bf16.vlgmr.msra.gmra.mxu3 %v1134_v44 }
  0x97   : > { %1137 = vst [vmem:[#allocation1 + $0x1] ss:$4 sm:$0xff] %v2467_v2 }
  0x99   : > { %872 = vmatmul.bf16.gmra.mxu1 %v804_v31 }
  0x9e   : > { %v1138_v46 = vld.sshfl [vmem:[#allocation1] sm:$0xff pattern:$0x73625140] }
  0x9f   : > { %1285 = vst [vmem:[#allocation1] ss:$4 sm:$0xff] %v2448_v45 }
  0xa0   : > { %1287 = vst [vmem:[#allocation1 + $0x1] ss:$4 sm:$0xff] %v2451_v49 }
  0xa1   : > { %1289 = vst [vmem:[#allocation1 + $0x2] ss:$4 sm:$0xff] %v2454_v50 }
  0xa2   : > { %1291 = vst [vmem:[#allocation1 + $0x3] ss:$4 sm:$0xff] %v2457_v53 }
  0xa4   : > { %1043 = vmatmul.bf16.gmra.mxu2 %v973_v43 }
  0xa6   : > { %1203 = vmatmul.bf16.gmra.mxu3 %v1135_v42 }
  0xa9   : > { %877 = vmatmul.bf16.gmra.mxu1 %v807_v33  ;;  %v1300_v47 = vld.sshfl [vmem:[#allocation1] sm:$0xff pattern:$0x73625140] }
  0xaa   : > { %1302 = vst [vmem:[#allocation1] ss:$4 sm:$0xff] %v2464_v63  ;;  %1364 = vmatmul.bf16.vlgmr.msrb.gmra.mxu0 %v1300_v47 }
  0xab   : > { %1303 = vst [vmem:[#allocation1 + $0x1] ss:$4 sm:$0xff] %v2467_v2 }
  0xb2   : > { %v1304_v48 = vld.sshfl [vmem:[#allocation1] sm:$0xff pattern:$0x73625140] }
  0xb4   : > { %1374 = vmatmul.bf16.vlgmr.msrb.gmra.mxu2 %v1304_v48 }
  0xb6   : > { %1208 = vmatmul.bf16.gmra.mxu3 %v1138_v46 }
  0xba   : > { %1369 = vmatmul.bf16.gmra.mxu0 %v1301_v51 }
  0xe6   : > { %v2527_v45 = vpop.f32.mrf.mxu1  ;;  %v745_v52 = vpop.f32.mrf.mxu0 }
  0xe7   : > { %v763_v21 = vrot.slane %v745_v52, 4 }
  0xee   : > { %v757_v49 = vpop.f32.mrf.mxu1  ;;  %v2529_v53 = vpop.f32.mrf.mxu0 }
  0xf6   : > { %v2533_v58 = vpop.f32.mrf.mxu0 }
  0xfe   : > { %v2549_v7 = vpop.f32.mrf.mxu0 }
 0x106   : > { %v868_v50 = vpop.f32.mrf.mxu1 }
 0x107   : > { %v1034_v54 = vpop.f32.mrf.mxu2  ;;  %v887_v61 = vrot.slane %v868_v50, 4  ;;  %v1964_v63 = vrot.slane %v868_v50, 9 }
 0x108   : > { %v1053_v2 = vrot.slane %v1034_v54, 4  ;;  %v2000_v17 = vrot.slane %v1034_v54, 10  ;;  %v764_v54 = vrot.slane %v2529_v53, 4 }
 0x109   : > { %v897_v0 = vrot.slane %v887_v61, 5 }
 0x10a   : > { %v1062_v11 = vrot.slane %v1053_v2, 6 }
 0x10b   : > { %v898_v6 = vsel %vm2539_vm7, %v1964_v63, %v897_v0  ;;  %v899_v15 = vrot.slane %v897_v0, 4 }
 0x10c   : > { %v929_v16 = vadd.f32 %v898_v6, %v745_v52  ;;  %v1063_v25 = vsel %vm2552_vm9, %v2000_v17, %v1062_v11  ;;  %v1064_v32 = vrot.slane %v1062_v11, 4 }
 0x10e   : > { %v870_v55 = vpop.f32.mrf.mxu1  ;;  %v1094_v30 = vadd.f32 %v1063_v25, %v929_v16 }
 0x10f   : > { %v1036_v56 = vpop.f32.mrf.mxu2  ;;  %v888_v8 = vrot.slane %v870_v55, 4  ;;  %v900_v9 = vrot.slane %v870_v55, 5 }
 0x110   : > { %v1054_v22 = vrot.slane %v1036_v56, 4  ;;  %v1065_v23 = vrot.slane %v1036_v56, 6 }
 0x111   : > { %v902_v19 = vrot.slane %v900_v9, 4  ;;  %v903_v20 = vrot.slane %v888_v8, 5  ;;  %v901_v24 = vsel %vm2539_vm7, %v899_v15, %v900_v9 }
 0x112   : > { %v930_v34 = vadd.f32 %v901_v24, %v763_v21  ;;  %v1067_v37 = vrot.slane %v1065_v23, 4  ;;  %v1068_v38 = vrot.slane %v1054_v22, 6  ;;  %v1066_v49 = vsel %vm2552_vm9, %v1064_v32, %v1065_v23 }
 0x113   : > { %v904_v33 = vsel %vm2539_vm7, %v902_v19, %v903_v20  ;;  %v905_v47 = vrot.slane %v903_v20, 4 }
 0x114   : > { %v931_v48 = vadd.f32 %v904_v33, %v2529_v53  ;;  %v1095_v56 = vadd.f32 %v1066_v49, %v930_v34  ;;  %v1069_v61 = vsel %vm2552_vm9, %v1067_v37, %v1068_v38  ;;  %v1070_v8 = vrot.slane %v1068_v38, 4 }
 0x116   : > { %v2531_v57 = vpop.f32.mrf.mxu1 }
 0x117   : > { %v2535_v59 = vpop.f32.mrf.mxu2  ;;  %v906_v36 = vrot.slane %v2531_v57, 5  ;;  %v1966_v19 = vrot.slane %v2531_v57, 13 }
 0x119   : > { %v1199_v62 = vpop.f32.mrf.mxu3  ;;  %v907_v55 = vsel %vm2539_vm7, %v905_v47, %v906_v36 }
 0x11a   : > { %v1218_v3 = vrot.slane %v1199_v62, 4  ;;  %v2036_v18 = vrot.slane %v1199_v62, 11  ;;  %v1071_v62 = vrot.slane %v2535_v59, 6 }
 0x11c   : > { %v1228_v12 = vrot.slane %v1218_v3, 7  ;;  %v1096_v3 = vadd.f32 %v1069_v61, %v931_v48  ;;  %v1072_v22 = vsel %vm2552_vm9, %v1070_v8, %v1071_v62 }
 0x11e   : > { %v2537_v60 = vpop.f32.mrf.mxu1  ;;  %v1229_v26 = vsel %vm2409_vm2, %v2036_v18, %v1228_v12  ;;  %v1230_v41 = vrot.slane %v1228_v12, 4  ;;  %v932_v12 = vadd.f32 %v907_v55, %v764_v54 }
 0x11f   : > { %v2543_v4 = vpop.f32.mrf.mxu2  ;;  %v1260_v39 = vadd.f32 %v1229_v26, %v1094_v30  ;;  %v890_v46 = vrot.slane %v2537_v60, 4  ;;  %v910_v52 = vrot.slane %v2537_v60, 5 }
 0x120   : > { %v1097_v30 = vadd.f32 %v1072_v22, %v932_v12 }
 0x121   : > { %v1201_v13 = vpop.f32.mrf.mxu3  ;;  %v913_v0 = vrot.slane %v890_v46, 5  ;;  %v912_v11 = vrot.slane %v910_v52, 4 }
 0x122   : > { %v1219_v27 = vrot.slane %v1201_v13, 4  ;;  %v1231_v28 = vrot.slane %v1201_v13, 7  ;;  %v1056_v13 = vrot.slane %v2543_v4, 4 }
 0x123   : > { %v915_v20 = vrot.slane %v913_v0, 4 }
 0x124   : > { %v1233_v42 = vrot.slane %v1231_v28, 4  ;;  %v1234_v43 = vrot.slane %v1219_v27, 7  ;;  %v1232_v50 = vsel %vm2409_vm2, %v1230_v41, %v1231_v28  ;;  %v911_v27 = vsel %vm2539_vm7, %v1966_v19, %v910_v52 }
 0x125   : > { %v1261_v6 = vadd.f32 %v1232_v50, %v1095_v56  ;;  %v914_v28 = vsel %vm2539_vm7, %v912_v11, %v913_v0  ;;  %v1078_v32 = vrot.slane %v1056_v13, 6  ;;  %v2002_v41 = vrot.slane %v2535_v59, 14 }
 0x126   : > { %v2545_v5 = vpop.f32.mrf.mxu1  ;;  %v1235_v63 = vsel %vm2409_vm2, %v1233_v42, %v1234_v43  ;;  %v1236_v18 = vrot.slane %v1234_v43, 4 }
 0x127   : > { %v2562_v29 = vpop.f32.mrf.mxu2  ;;  %v1365_v35 = vpop.f32.mrf.mxu0  ;;  %v916_v60 = vrot.slane %v2545_v5, 5  ;;  %v1262_v15 = vadd.f32 %v1235_v63, %v1096_v3  ;;  %v1967_v26 = vrot.slane %v2545_v5, 9  ;;  %v765_v5 = vrot.slane %v2533_v58, 4 }
 0x128   : > { %v1383_v40 = vrot.slane %v1365_v35, 4  ;;  %v1081_v33 = vrot.slane %v2562_v29, 6  ;;  %v766_v35 = vrot.slane %v2549_v7, 4  ;;  %v1080_v48 = vrot.slane %v1078_v32, 4 }
 0x129   : > { %v2567_v44 = vpop.f32.mrf.mxu3  ;;  %v918_v25 = vrot.slane %v916_v60, 4  ;;  %v917_v34 = vsel %vm2539_vm7, %v915_v20, %v916_v60  ;;  %v933_v46 = vadd.f32 %v911_v27, %v765_v5 }
 0x12a   : > { %v2571_v51 = vadd.f32 %v1383_v40, %v1260_v39  ;;  %v1237_v53 = vrot.slane %v2567_v44, 7  ;;  %v935_v43 = vadd.f32 %v917_v34, %v766_v35  ;;  %v1083_v49 = vrot.slane %v1081_v33, 4 }
 0x12b   : > { %v920_v39 = vsel %vm2539_vm7, %v918_v25, %v1967_v26  ;;  %v2038_v50 = vrot.slane %v2567_v44, 15  ;;  %v1082_v59 = vsel %vm2552_vm9, %v1080_v48, %v1081_v33 }
 0x12c   : > { %v1238_v57 = vsel %vm2409_vm2, %v1236_v18, %v1237_v53  ;;  %v936_v54 = vadd.f32 %v920_v39, %v2527_v45  ;;  %v1100_v62 = vadd.f32 %v1082_v59, %v935_v43 }
 0x12d   : > { %v1263_v38 = vadd.f32 %v1238_v57, %v1097_v30 }
 0x12e   : > { %v880_v31 = vpop.f32.mrf.mxu1 }
 0x12f   : > { %v1046_v2 = vpop.f32.mrf.mxu2  ;;  %v1367_v9 = vpop.f32.mrf.mxu0  ;;  %v1075_v31 = vrot.slane %v2543_v4, 6  ;;  %v934_v4 = vadd.f32 %v914_v28, %v2549_v7  ;;  %v2003_v7 = vrot.slane %v2562_v29, 10 }
 0x130   : > { %v1384_v16 = vrot.slane %v1367_v9, 4  ;;  %v2589_v17 = vadd.f32 %v1367_v9, %v1261_v6 }
 0x131   : > { %v1206_v21 = vpop.f32.mrf.mxu3  ;;  %v1077_v47 = vrot.slane %v1075_v31, 4  ;;  %v1076_v55 = vsel %vm2552_vm9, %v2002_v41, %v1075_v31  ;;  %v1085_v44 = vsel %vm2552_vm9, %v1083_v49, %v2003_v7 }
 0x132   : > { %v2594_v23 = vadd.f32 %v1384_v16, %v1262_v15  ;;  %v1221_v24 = vrot.slane %v1206_v21, 4  ;;  %v1241_v36 = vrot.slane %v1206_v21, 7  ;;  %v1098_v63 = vadd.f32 %v1076_v55, %v933_v46 }
 0x133   : > { %v1079_v6 = vsel %vm2552_vm9, %v1077_v47, %v1078_v32  ;;  %v1101_v60 = vadd.f32 %v1085_v44, %v936_v54 }
 0x134   : > { %v1244_v37 = vrot.slane %v1221_v24, 7  ;;  %v1243_v52 = vrot.slane %v1241_v36, 4  ;;  %v1242_v0 = vsel %vm2409_vm2, %v2038_v50, %v1241_v36  ;;  %v1099_v9 = vadd.f32 %v1079_v6, %v934_v4 }
 0x135   : > { %v1264_v11 = vadd.f32 %v1242_v0, %v1098_v63 }
 0x136   : > { %v1246_v56 = vrot.slane %v1244_v37, 4  ;;  %v1245_v29 = vsel %vm2409_vm2, %v1243_v52, %v1244_v37 }
 0x137   : > { %v1375_v40 = vpop.f32.mrf.mxu2  ;;  %v1370_v42 = vpop.f32.mrf.mxu0  ;;  %v1265_v19 = vadd.f32 %v1245_v29, %v1099_v9 }
 0x138   : > { %v2613_v58 = vadd.f32 %v1370_v42, %v1263_v38  ;;  %v1386_v15 = vrot.slane %v1375_v40, 4 }
 0x139   : > { %v1209_v1 = vpop.f32.mrf.mxu3 }
 0x13a   : > { %v1247_v61 = vrot.slane %v1209_v1, 7  ;;  %v2039_v3 = vrot.slane %v1209_v1, 11 }
 0x13c   : > { %v1248_v45 = vsel %vm2409_vm2, %v1246_v56, %v1247_v61  ;;  %v1249_v2 = vrot.slane %v1247_v61, 4 }
 0x13d   : > { %v1266_v8 = vadd.f32 %v1248_v45, %v1100_v62 }
 0x13e   : > { %v1251_v53 = vsel %vm2409_vm2, %v1249_v2, %v2039_v3  ;;  %1402 = sbr.rel (%p2072_p6) target bundleno = 373 (0x175), region = 101 }
 0x13f   : > { %v1377_v12 = vpop.f32.mrf.mxu2  ;;  %v1267_v13 = vadd.f32 %v1251_v53, %v1101_v60  ;;  %v2634_v16 = vadd.f32 %v1375_v40, %v1266_v8  ;;  %v1372_v18 = vpop.f32.mrf.mxu0 }
 0x140   : > { %v1385_v20 = vrot.slane %v1372_v18, 4  ;;  %v2636_v14 = vadd.f32 %v1372_v18, %v1264_v11 }
 0x141   : > { %v2638_v21 = vadd.f32 %v1386_v15, %v1267_v13  ;;  %v1211_v22 = vpop.f32.mrf.mxu3 }
 0x142   : > { %v2640_v24 = vadd.f32 %v1385_v20, %v1265_v19 }
 0x143   : > { %1411 = vst [vmem:[#allocation1] ss:$2 sm:$0xff] %v2571_v51  ;;  %v1483_v57 = vmul.f32 %v2571_v51, %v2571_v51  ;;  %v1484_v31 = vmul.f32 %v2589_v17, %v2589_v17  ;;  %v1485_v33 = vmul.f32 %v2594_v23, %v2594_v23  ;;  %v1486_v34 = vmul.f32 %v2613_v58, %v2613_v58 }
 0x144   : > { %1413 = vst [vmem:[#allocation1 + $0x1] ss:$2 sm:$0xff] %v2589_v17  ;;  %v1487_v35 = vmul.f32 %v2636_v14, %v2636_v14  ;;  %v1488_v37 = vmul.f32 %v2640_v24, %v2640_v24  ;;  %v1442_v38 = vpack.c.bf16 %v2571_v51, %v2571_v51  ;;  %v1489_v40 = vmul.f32 %v2634_v16, %v2634_v16 }
 0x145   : > { %1415 = vst [vmem:[#allocation1 + $0x10] ss:$2 sm:$0xff] %v2594_v23  ;;  %v1490_v4 = vmul.f32 %v2638_v21, %v2638_v21  ;;  %v1443_v42 = vpack.c.bf16 %v2636_v14, %v2636_v14  ;;  %v1446_v46 = vpack.c.bf16 %v2613_v58, %v2613_v58  ;;  %v1447_v48 = vpack.c.bf16 %v2638_v21, %v2638_v21 }
 0x146   : > { %1417 = vst [vmem:[#allocation1 + $0x11] ss:$2 sm:$0xff] %v2613_v58 }
 0x147   : > { %1421 = vst [vmem:[#allocation1 + $0x20] ss:$2 sm:$0xff] %v2636_v14 }
 0x148   : > { %1423 = vst [vmem:[#allocation1 + $0x21] ss:$2 sm:$0xff] %v2640_v24 }
 0x149   : > { %1425 = vst [vmem:[#allocation1 + $0x30] ss:$2 sm:$0xff] %v2634_v16 }
 0x14a   : > { %1427 = vst [vmem:[#allocation1 + $0x31] ss:$2 sm:$0xff] %v2638_v21 }
 0x14b   : > { %v1418_v10 = vld.sshfl [vmem:[#allocation1] sm:$0xff pattern:$0x75316420]  ;;  %1444 = vst [vmem:[%s2430_s3] sm:$0x1] %v1442_v38 }
 0x14c   : > { %1450 = vst [vmem:[#allocation1] ss:$2 sm:$0xff] %v2571_v51 }
 0x14d   : > { %1452 = vst [vmem:[#allocation1 + $0x1] ss:$2 sm:$0xff] %v2589_v17  ;;  %v1419_v25 = vld.sshfl [vmem:[#allocation1 + $0x10] sm:$0xff pattern:$0x75316420] }
 0x14e   : > { %1454 = vst [vmem:[#allocation1 + $0x10] ss:$2 sm:$0xff] %v2594_v23  ;;  %v2130_v26 = vpack.c.bf16 %v1419_v25, %v1418_v10 }
 0x14f   : > { %1456 = vst [vmem:[#allocation1 + $0x11] ss:$2 sm:$0xff] %v2613_v58  ;;  %v1428_v27 = vld.sshfl [vmem:[#allocation1 + $0x20] sm:$0xff pattern:$0x75316420] }
 0x150   : > { %2131 = vst [vmem:[%s2440_s22] sm:$0xff] %v2130_v26  }
 0x151   : > { %1460 = vst [vmem:[#allocation1 + $0x20] ss:$2 sm:$0xff] %v2636_v14  ;;  %v1429_v28 = vld.sshfl [vmem:[#allocation1 + $0x30] sm:$0xff pattern:$0x75316420] }
 0x152   : > { %1462 = vst [vmem:[#allocation1 + $0x21] ss:$2 sm:$0xff] %v2640_v24  ;;  %v2135_v30 = vpack.c.bf16 %v1429_v28, %v1428_v27 }
 0x153   : > { %1464 = vst [vmem:[#allocation1 + $0x30] ss:$2 sm:$0xff] %v2634_v16 }
 0x154   : > { %2147 = vst [vmem:[%s2440_s22 + $0x8] sm:$0xff] %v2135_v30   ;;  %v1457_v32 = vld.sshfl [vmem:[#allocation1] sm:$0xff pattern:$0x75316420] }
 0x155   : > { %1466 = vst [vmem:[#allocation1 + $0x31] ss:$2 sm:$0xff] %v2638_v21 }
 0x156   : > { %1499 = vst [vmem:[#allocation1] ss:$2 sm:$0xff] %v1483_v57  ;;  %v1458_v5 = vld.sshfl [vmem:[#allocation1 + $0x10] sm:$0xff pattern:$0x75316420] }
 0x157   : > { %1501 = vst [vmem:[#allocation1 + $0x1] ss:$2 sm:$0xff] %v1484_v31  ;;  %v1473_v36 = vadd.f32 %v1458_v5, %v1457_v32 }
 0x158   : > { %1503 = vst [vmem:[#allocation1 + $0x10] ss:$2 sm:$0xff] %v1485_v33 }
 0x159   : > { %1505 = vst [vmem:[#allocation1 + $0x11] ss:$2 sm:$0xff] %v1486_v34  ;;  %v1467_v39 = vld.sshfl [vmem:[#allocation1 + $0x20] sm:$0xff pattern:$0x75316420] }
 0x15a   : > { %v1474_v41 = vadd.f32 %v1473_v36, %v1467_v39  ;;  %1509 = vst [vmem:[#allocation1 + $0x20] ss:$2 sm:$0xff] %v1487_v35 }
 0x15b   : > { %1511 = vst [vmem:[#allocation1 + $0x21] ss:$2 sm:$0xff] %v1488_v37 }
 0x15c   : > { %v1468_v43 = vld.sshfl [vmem:[#allocation1 + $0x30] sm:$0xff pattern:$0x75316420]  ;;  %1445 = vst [vmem:[%s2430_s3 + $0x2] sm:$0x1] %v1443_v42 }
 0x15d   : > { %v1475_v47 = vadd.f32 %v1474_v41, %v1468_v43  ;;  %1513 = vst [vmem:[#allocation1 + $0x30] ss:$2 sm:$0xff] %v1489_v40 }
 0x15e   : > { %1515 = vst [vmem:[#allocation1 + $0x31] ss:$2 sm:$0xff] %v1490_v4  ;;  %v1506_v49 = vld.sshfl [vmem:[#allocation1] sm:$0xff pattern:$0x75316420] }
 0x15f   : > { %v1476_v50 = vrot.slane %v1475_v47, 4  ;;  %1448 = vst [vmem:[%s2430_s3] sm:$0x2] %v1446_v46 }
 0x160   : > { %v1507_v52 = vld.sshfl [vmem:[#allocation1 + $0x10] sm:$0xff pattern:$0x75316420]  ;;  %1449 = vst [vmem:[%s2430_s3 + $0x2] sm:$0x2] %v1447_v48 }
 0x161   : > { %v1477_v54 = vadd.f32 %v1476_v50, %v1475_v47  ;;  %v1522_v1 = vadd.f32 %v1507_v52, %v1506_v49 }
 0x162   : > { %v1516_v55 = vld.sshfl [vmem:[#allocation1 + $0x20] sm:$0xff pattern:$0x75316420] }
 0x163   : > { %v1478_v59 = vrot.slane %v1477_v54, 2  ;;  %v1523_v7 = vadd.f32 %v1522_v1, %v1516_v55 }
 0x165   : > { %v1479_v56 = vadd.f32 %v1478_v59, %v1477_v54  ;;  %v1517_v61 = vld.sshfl [vmem:[#allocation1 + $0x30] sm:$0xff pattern:$0x75316420] }
 0x166   : > { %v1524_v62 = vadd.f32 %v1523_v7, %v1517_v61 }
 0x167   : > { %v1480_v63 = vrot.slane %v1479_v56, 1 }
 0x168   : > { %v1525_v0 = vrot.slane %v1524_v62, 4 }
 0x169   : > { %v1481_v44 = vadd.f32 %v1480_v63, %v1479_v56 }
 0x16a   : > { %v1526_v45 = vadd.f32 %v1525_v0, %v1524_v62 }
 0x16b   : > { %1482 = vst [vmem:[%s2423_s15] sm:$0x1] %v1481_v44 }
 0x16c   : > { %v1527_v2 = vrot.slane %v1526_v45, 2 }
 0x16e   : > { %v1528_v3 = vadd.f32 %v1527_v2, %v1526_v45 }
 0x170   : > { %v1529_v6 = vrot.slane %v1528_v3, 1 }
 0x172   : > { %v1530_v29 = vadd.f32 %v1529_v6, %v1528_v3 }
 0x174   : > { %1531 = vst [vmem:[%s2435_s4] sm:$0x1] %v1530_v29 }
 0x175 PF: > { %1534 = sbr.rel (%p1899_p4) target bundleno = 413 (0x19d), region = 105  ;;  %s2074_s18 = sshll.u32 (!%p1899_p4), %s2333_s10, 4 }
 0x17a   : > { %1556 = vst [vmem:[#allocation1] ss:$2 sm:$0xff] %v2571_v51  ;;  %v1536_v60 = vlaneseq  ;;  %v1539_v8 = vstv %s2074_s18 }
 0x17b   : > { %1558 = vst [vmem:[#allocation1 + $0x1] ss:$2 sm:$0xff] %v2589_v17 }
 0x17c   : > { %1560 = vst [vmem:[#allocation1 + $0x10] ss:$2 sm:$0xff] %v2594_v23  ;;  %v1537_v53 = vshrl.u32 %v1536_v60, 7 }
 0x17d   : > { %1562 = vst [vmem:[#allocation1 + $0x11] ss:$2 sm:$0xff] %v2613_v58 }
 0x17e   : > { %1570 = vst [vmem:[#allocation1 + $0x30] ss:$2 sm:$0xff] %v2634_v16  ;;  %v1538_v9 = vadd.s32 8, %v1537_v53  ;;  %v1540_v11 = vadd.s32 %v1539_v8, %v1537_v53 }
 0x17f   : > { %1572 = vst [vmem:[#allocation1 + $0x31] ss:$2 sm:$0xff] %v2638_v21 }
 0x180   : > { %1566 = vst [vmem:[#allocation1 + $0x20] ss:$2 sm:$0xff] %v2636_v14  ;;  %v1541_v51 = vadd.s32 %v1539_v8, %v1538_v9  ;;  %vm1542_vm10 = vcmp.lt.s32.totalorder %v1540_v11, 40 }
 0x181   : > { %1568 = vst [vmem:[#allocation1 + $0x21] ss:$2 sm:$0xff] %v2640_v24 }
 0x182   : > { %vm1543_vm11 = vcmp.lt.s32.totalorder %v1541_v51, 40  ;;  %v1563_v17 = vld.sshfl [vmem:[#allocation1] sm:$0xff pattern:$0x75316420] }
 0x183   : > { %v1579_v23 = vsel %vm1542_vm10, %v1563_v17, 0.0 }
 0x184   : > { %v1564_v12 = vld.sshfl [vmem:[#allocation1 + $0x10] sm:$0xff pattern:$0x75316420]  ;;  %v1615_v58 = vmul.f32 %v1579_v23, %v1579_v23  ;;  %v1583_v13 = vpack.c.bf16 %v1579_v23, %v1579_v23 }
 0x185   : > { %v1580_v15 = vsel %vm1543_vm11, %v1564_v12, 0.0 }
 0x186   : > { %v1574_v16 = vld.sshfl [vmem:[#allocation1 + $0x30] sm:$0xff pattern:$0x75316420]  ;;  %v2140_v18 = vpack.c.bf16 %v1580_v15, %v1579_v23  ;;  %v1605_v19 = vadd.f32 %v1580_v15, %v1579_v23  ;;  %v1616_v20 = vmul.f32 %v1580_v15, %v1580_v15  ;;  %1591 = vst [vmem:[%s2430_s3] sm:$0x1] %v1583_v13  ;;  %v1584_v14 = vpack.c.bf16 %v1580_v15, %v1580_v15 }
 0x187   : > { %v1582_v21 = vsel %vm1543_vm11, %v1574_v16, 0.0 }
 0x188   : > { %2141 = vst [vmem:[%s2440_s22] sm:$0xff] %v2140_v18   ;;  %v1586_v22 = vpack.c.bf16 %v1582_v21, %v1582_v21  ;;  %v1573_v24 = vld.sshfl [vmem:[#allocation1 + $0x20] sm:$0xff pattern:$0x75316420]  ;;  %v1619_v10 = vadd.f32 %v1616_v20, %v1615_v58  ;;  %v1618_v26 = vmul.f32 %v1582_v21, %v1582_v21 }
 0x189   : > { %1594 = vst.sshfl [vmem:[#allocation1] sm:$0xff pattern:$0x75643120] %v1584_v14  ;;  %v1581_v25 = vsel %vm1542_vm10, %v1573_v24, 0.0 }
 0x18a   : > { %1598 = vst.sshfl [vmem:[#allocation1 + $0x10] sm:$0xff pattern:$0x75643120] %v1586_v22  ;;  %v2145_v27 = vpack.c.bf16 %v1582_v21, %v1581_v25  ;;  %v1617_v28 = vmul.f32 %v1581_v25, %v1581_v25  ;;  %v1585_v30 = vpack.c.bf16 %v1581_v25, %v1581_v25  ;;  %v1606_v57 = vadd.f32 %v1605_v19, %v1581_v25 }
 0x18c   : > { %2148 = vst [vmem:[%s2440_s22 + $0x8] sm:$0xff] %v2145_v27   ;;  %v1607_v31 = vadd.f32 %v1606_v57, %v1582_v21  ;;  %v1620_v32 = vadd.f32 %v1619_v10, %v1617_v28 }
 0x18d   : > { %1592 = vst [vmem:[%s2430_s3 + $0x2] sm:$0x1] %v1585_v30 }
 0x18e   : > { %v1608_v33 = vrot.slane %v1607_v31, 4  ;;  %v1621_v34 = vadd.f32 %v1620_v32, %v1618_v26 }
 0x190   : > { %v1596_v5 = vld [vmem:[#allocation1 + $0x1] ss:$2 sm:$0xff]  ;;  %v1609_v35 = vadd.f32 %v1608_v33, %v1607_v31  ;;  %v1622_v36 = vrot.slane %v1621_v34, 4 }
 0x191   : > { %1603 = vst [vmem:[%s2430_s3] sm:$0x2] %v1596_v5  ;;  %v1600_v37 = vld [vmem:[#allocation1 + $0x11] ss:$2 sm:$0xff] }
 0x192   : > { %1604 = vst [vmem:[%s2430_s3 + $0x2] sm:$0x2] %v1600_v37  ;;  %v1610_v38 = vrot.slane %v1609_v35, 2  ;;  %v1623_v39 = vadd.f32 %v1622_v36, %v1621_v34 }
 0x194   : > { %v1611_v40 = vadd.f32 %v1610_v38, %v1609_v35  ;;  %v1624_v41 = vrot.slane %v1623_v39, 2 }
 0x196   : > { %v1612_v4 = vrot.slane %v1611_v40, 1  ;;  %v1625_v42 = vadd.f32 %v1624_v41, %v1623_v39 }
 0x198   : > { %v1613_v43 = vadd.f32 %v1612_v4, %v1611_v40  ;;  %v1626_v46 = vrot.slane %v1625_v42, 1 }
 0x19a   : > { %1614 = vst [vmem:[%s2423_s15] sm:$0x1] %v1613_v43  ;;  %v1627_v47 = vadd.f32 %v1626_v46, %v1625_v42 }
 0x19c   : > { %1628 = vst [vmem:[%s2435_s4] sm:$0x1] %v1627_v47 }
 0x19d PF: > { %1646 = sbr.rel (!%p2352_p5) target bundleno = 418 (0x1a2), region = 109  ;;  %s2126_s23 = sshll.u32 (%p2352_p5), %s2333_s10, 3  ;;  %v1666_v48 = vld [vmem:[%s2440_s22] sm:$0xff] (%p2352_p5)   ;;  %v1670_v49 = vld [vmem:[%s2440_s22 + $0x8] sm:$0xff] (%p2352_p5)  }
 0x19e   : > { %s1649_s26 = scalar_lea.vmem (%p2352_p5), %s2736_s6, %s2126_s23 }
 0x19f   : > { %1667 = vst [vmem:[%s1649_s26] sm:$0xff] (%p2352_p5), %v1666_v48  }
 0x1a0   : > { %1671 = vst [vmem:[%s1649_s26 + $0x18] sm:$0xff] (%p2352_p5), %v1670_v49  }
 0x1a2 PF: > { %p18_p7 = scmp.ge.s32.totalorder %s2336_s11, 5   ;;  %s2750_s3 = smov %s2256_s30 }
 0x1a3   : > { %s2751_s30 = smov %s2346_s14  ;;  %s2752_s4 = smov %s2336_s11 }
 0x1a4   :  { %20 = sbr.rel (!%p18_p7) target bundleno = 2 (0x2), region = 295 }
 0x1a9   :  { %1744 = vsyncpa [#allocation5], 1 }
 0x1aa   :  { %1746 = vsyncpa [#allocation5 + $0x1], 1 }

</bundles_post_ra>
